<compile_context>
chip_gen: v7x
topology: tpu7x:2x2x1
jax: 0.10.0
libtpu: 0.0.40
codegen_flags: <defaults>
</compile_context>

<pallas_src>
import jax
import jax.numpy as jnp
from jax import lax
from jax.experimental import pallas as pl
from jax.experimental.pallas import tpu as pltpu


def _round_up(x, m):
    return ((x + m - 1) // m) * m


def _cyl_vfe_kernel(feat_ref, nvox_ref,
                    w1a_ref, w1b_ref, c1_ref,
                    w2a_ref, w2b_ref, c2_ref,
                    w3a_ref, w3b_ref, c3_ref,
                    out_ref):
    bk, t, f_in = feat_ref.shape
    u1 = w2a_ref.shape[0]
    u2 = w3a_ref.shape[0]
    u3 = w3a_ref.shape[1]
    n = bk * t

    feats = feat_ref[...]                          # [bk, t, 4]  f32
    nvox = nvox_ref[...]                           # [bk, 1]     f32

    # Padding mask: point index < num_voxels[k]  (get_paddings_indicator)
    t_idx = lax.broadcasted_iota(jnp.int32, (bk, t, 1), 1).astype(jnp.float32)
    mask3 = (t_idx < nvox[:, :, None]).astype(jnp.float32)            # [bk,t,1]

    # ---- input normalisation (CylVoxelFeatureExtractor preamble) -----------
    # Relative coordinates use the *raw* xyz (matches the in-place PyTorch
    # ordering: mean/rel computed before the channel rescaling).
    xyz = feats[:, :, :3]
    mean3 = jnp.sum(xyz, axis=1, keepdims=True) / nvox[:, :, None]    # [bk,1,3]
    rel = xyz - mean3                                                 # [bk,t,3]

    # Channel rescaling done with Python scalars (no captured jnp constants):
    #   ch0 /= 40 ; ch2 = (ch2 + 1) / 2 ; ch1, ch3 unchanged.
    f0 = feats[:, :, 0:1] * (1.0 / 40.0)                              # [bk,t,1]
    f1 = feats[:, :, 1:2]
    f2 = feats[:, :, 2:3] * 0.5 + 0.5
    f3 = feats[:, :, 3:4]

    # ---- VFE1: (4 + 3) -> u1 : broadcast MACs on the VPU -------------------
    w1a = w1a_ref[...]                             # [4, u1] (BN-folded)
    w1b = w1b_ref[...]                             # [3, u1]
    z1 = (f0 * w1a[0:1, :] + f1 * w1a[1:2, :]
          + f2 * w1a[2:3, :] + f3 * w1a[3:4, :]
          + rel[:, :, 0:1] * w1b[0:1, :]
          + rel[:, :, 1:2] * w1b[1:2, :]
          + rel[:, :, 2:3] * w1b[2:3, :])                             # [bk,t,u1]
    pw1 = jnp.maximum(mask3 * z1 + c1_ref[...], 0.0)                  # [bk,t,u1]
    agg1 = jnp.max(pw1, axis=1)                                       # [bk,u1]

    # ---- VFE2: 2*u1 -> u2 (concat eliminated via split weights) ------------
    z2 = jnp.dot(pw1.reshape(n, u1), w2a_ref[...],
                 preferred_element_type=jnp.float32).reshape(bk, t, u2)
    z2b = jnp.dot(agg1, w2b_ref[...],
                  preferred_element_type=jnp.float32)[:, None, :]     # [bk,1,u2]
    pw2 = jnp.maximum(mask3 * (z2 + z2b) + c2_ref[...], 0.0)          # [bk,t,u2]
    agg2 = jnp.max(pw2, axis=1)                                       # [bk,u2]

    # ---- final linear + BN + ReLU, mask, max over points -------------------
    z3 = jnp.dot(pw2.reshape(n, u2), w3a_ref[...],
                 preferred_element_type=jnp.float32).reshape(bk, t, u3)
    z3b = jnp.dot(agg2, w3b_ref[...],
                  preferred_element_type=jnp.float32)[:, None, :]     # [bk,1,u3]
    x3 = jnp.maximum(mask3 * (z3 + z3b) + c3_ref[...], 0.0) * mask3   # [bk,t,u3]
    out_ref[...] = jnp.max(x3, axis=1).astype(out_ref.dtype)          # [bk,u3]


def cyl_voxel_feature_extractor(features, num_voxels, params, *,
                                eps=1e-5, block_k=256):
    """features: [K, T, 4]; num_voxels: [K] ints; returns [K, 128] float32."""
    K, T, F = features.shape
    assert F == 4, "module hard-codes 7 = 4 raw channels + 3 relative coords"
    f32 = jnp.float32

    def fold(w, b, g, beta, rm, rv):
        # Fold Linear bias + eval-mode BatchNorm1d into scaled weight & shift.
        scale = g / jnp.sqrt(rv + eps)
        w_s = (w.T * scale).astype(f32)            # [in, out]
        c = ((b - rm) * scale + beta).astype(f32)  # [out]
        return w_s, c

    w1s, c1 = fold(params["w1"], params["b1"], params["g1"], params["be1"],
                   params["rm1"], params["rv1"])
    w2s, c2 = fold(params["w2"], params["b2"], params["g2"], params["be2"],
                   params["rm2"], params["rv2"])
    w3s, c3 = fold(params["w3"], params["b3"], params["g3"], params["be3"],
                   params["rm3"], params["rv3"])

    U1, U2, U3 = w1s.shape[1], w2s.shape[1], w3s.shape[1]
    assert w2s.shape[0] == 2 * U1 and w3s.shape[0] == 2 * U2

    # Split each weight at the [pointwise | repeated-max] seam.
    w1a, w1b = w1s[:F], w1s[F:]            # [4,U1], [3,U1]
    w2a, w2b = w2s[:U1], w2s[U1:]          # [U1,U2] x 2
    w3a, w3b = w3s[:U2], w3s[U2:]          # [U2,U3] x 2
    c1 = c1.reshape(1, U1)
    c2 = c2.reshape(1, U2)
    c3 = c3.reshape(1, U3)

    # Pad K to a multiple of block_k (a multiple of 8 sublanes): no tail block,
    # every DMA / store is a full unmasked tile.
    block_k = max(8, min(_round_up(block_k, 8), _round_up(K, 8)))
    K_pad = _round_up(K, block_k)
    x = features.astype(f32)
    nv = num_voxels.astype(f32).reshape(K, 1)
    if K_pad != K:
        x = jnp.pad(x, ((0, K_pad - K), (0, 0), (0, 0)))
        nv = jnp.pad(nv, ((0, K_pad - K), (0, 0)), constant_values=1.0)

    grid = (pl.cdiv(K_pad, block_k),)

    flops = (2 * K_pad * T * (7 * U1 + U1 * U2 + U2 * U3)
             + 2 * K_pad * (U1 * U2 + U2 * U3))
    bytes_accessed = 4 * (K_pad * T * F + K_pad + K_pad * U3
                          + 7 * U1 + 2 * U1 * U2 + 2 * U2 * U3 + U1 + U2 + U3)

    out = pl.pallas_call(
        _cyl_vfe_kernel,
        out_shape=jax.ShapeDtypeStruct((K_pad, U3), f32),
        grid_spec=pltpu.PrefetchScalarGridSpec(
            num_scalar_prefetch=0,
            grid=grid,
            in_specs=[
                pl.BlockSpec((block_k, T, F), lambda i: (i, 0, 0)),
                pl.BlockSpec((block_k, 1), lambda i: (i, 0)),
                pl.BlockSpec((F, U1), lambda i: (0, 0)),
                pl.BlockSpec((3, U1), lambda i: (0, 0)),
                pl.BlockSpec((1, U1), lambda i: (0, 0)),
                pl.BlockSpec((U1, U2), lambda i: (0, 0)),
                pl.BlockSpec((U1, U2), lambda i: (0, 0)),
                pl.BlockSpec((1, U2), lambda i: (0, 0)),
                pl.BlockSpec((U2, U3), lambda i: (0, 0)),
                pl.BlockSpec((U2, U3), lambda i: (0, 0)),
                pl.BlockSpec((1, U3), lambda i: (0, 0)),
            ],
            out_specs=pl.BlockSpec((block_k, U3), lambda i: (i, 0)),
        ),
        compiler_params=pltpu.CompilerParams(
            dimension_semantics=("parallel",),
            vmem_limit_bytes=32 * 1024 * 1024,
        ),
        cost_estimate=pl.CostEstimate(
            flops=flops, transcendentals=0, bytes_accessed=bytes_accessed),
    )(x, nv, w1a, w1b, c1, w2a, w2b, c2, w3a, w3b, c3)

    return out[:K]


def cyl_voxel_feature_extractor_ref(features, num_voxels, params, eps=1e-5):
    """Pure-JAX reference mirroring the PyTorch forward (eval-mode BN)."""
    f = features.astype(jnp.float32)
    nv = num_voxels.astype(jnp.float32)
    K, T, _ = f.shape

    xyz = f[:, :, :3]
    points_mean = jnp.sum(xyz, axis=1, keepdims=True) / nv.reshape(-1, 1, 1)
    rel = xyz - points_mean
    fm = f.at[..., 0].set(f[..., 0] / 40.0)
    fm = fm.at[..., 2].set((fm[..., 2] + 1.0) / 2.0)
    feat = jnp.concatenate([fm, rel], axis=-1)

    mask = (jnp.arange(T)[None, :] < nv[:, None]).astype(jnp.float32)[:, :, None]
    feat = feat * mask

    def bn(y, g, be, rm, rv):
        return (y - rm) / jnp.sqrt(rv + eps) * g + be

    def vfe(xin, w, b, g, be, rm, rv):
        y = jnp.einsum("ktf,uf->ktu", xin, w) + b
        y = bn(y, g, be, rm, rv)
        pw = jnp.maximum(y, 0.0)
        agg = jnp.max(pw, axis=1, keepdims=True)
        rep = jnp.broadcast_to(agg, pw.shape)
        return jnp.concatenate([pw, rep], axis=-1)

    p = params
    xx = vfe(feat, p["w1"], p["b1"], p["g1"], p["be1"], p["rm1"], p["rv1"]) * mask
    xx = vfe(xx, p["w2"], p["b2"], p["g2"], p["be2"], p["rm2"], p["rv2"]) * mask
    y = jnp.einsum("ktf,uf->ktu", xx, p["w3"]) + p["b3"]
    y = bn(y, p["g3"], p["be3"], p["rm3"], p["rv3"])
    y = jnp.maximum(y, 0.0) * mask
    return jnp.max(y, axis=1)


if __name__ == "__main__":
    # Small shapes consistent with the module: K voxels, T points per voxel,
    # 4 raw cylindrical channels (-> 7 after adding relative coords),
    # num_filters = [32, 128] -> units 16 / 64, final width 128.
    K, T, F = 90, 8, 4           # K deliberately not a multiple of block_k
    U1, U2, U3 = 16, 64, 128

    key = jax.random.PRNGKey(0)
    ks = jax.random.split(key, 24)

    features = jax.random.normal(ks[0], (K, T, F), jnp.float32)
    num_voxels = jax.random.randint(ks[1], (K,), 1, T + 1, dtype=jnp.int32)

    def lin(kw, kb, out_c, in_c):
        w = jax.random.normal(kw, (out_c, in_c), jnp.float32) / jnp.sqrt(float(in_c))
        b = 0.1 * jax.random.normal(kb, (out_c,), jnp.float32)
        return w, b

    def bn_params(k1, k2, k3, k4, c):
        g = 1.0 + 0.1 * jax.random.normal(k1, (c,), jnp.float32)
        be = 0.1 * jax.random.normal(k2, (c,), jnp.float32)
        rm = 0.1 * jax.random.normal(k3, (c,), jnp.float32)
        rv = 1.0 + 0.1 * jnp.abs(jax.random.normal(k4, (c,), jnp.float32))
        return g, be, rm, rv

    w1, b1 = lin(ks[2], ks[3], U1, 7)
    g1, be1, rm1, rv1 = bn_params(ks[4], ks[5], ks[6], ks[7], U1)
    w2, b2 = lin(ks[8], ks[9], U2, 2 * U1)
    g2, be2, rm2, rv2 = bn_params(ks[10], ks[11], ks[12], ks[13], U2)
    w3, b3 = lin(ks[14], ks[15], U3, 2 * U2)
    g3, be3, rm3, rv3 = bn_params(ks[16], ks[17], ks[18], ks[19], U3)

    params = dict(w1=w1, b1=b1, g1=g1, be1=be1, rm1=rm1, rv1=rv1,
                  w2=w2, b2=b2, g2=g2, be2=be2, rm2=rm2, rv2=rv2,
                  w3=w3, b3=b3, g3=g3, be3=be3, rm3=rm3, rv3=rv3)

    out = cyl_voxel_feature_extractor(features, num_voxels, params, block_k=32)
    out = jax.block_until_ready(out)

    ref = cyl_voxel_feature_extractor_ref(features, num_voxels, params)
    assert out.shape == (K, U3), out.shape
    max_err = float(jnp.max(jnp.abs(out - ref)))
    assert jnp.allclose(out, ref, atol=5e-3, rtol=1e-2), max_err

    print("KERNEL_OK")
</pallas_src>

<mosaic_0001>
module attributes {stable_mosaic.version = 11 : i64} {
  func.func @_cyl_vfe_kernel(%arg0: i32, %arg1: memref<32x8x4xf32, #tpu.memory_space<vmem>>, %arg2: memref<32x1xf32, #tpu.memory_space<vmem>>, %arg3: memref<4x16xf32, #tpu.memory_space<vmem>>, %arg4: memref<3x16xf32, #tpu.memory_space<vmem>>, %arg5: memref<1x16xf32, #tpu.memory_space<vmem>>, %arg6: memref<16x64xf32, #tpu.memory_space<vmem>>, %arg7: memref<16x64xf32, #tpu.memory_space<vmem>>, %arg8: memref<1x64xf32, #tpu.memory_space<vmem>>, %arg9: memref<64x128xf32, #tpu.memory_space<vmem>>, %arg10: memref<64x128xf32, #tpu.memory_space<vmem>>, %arg11: memref<1x128xf32, #tpu.memory_space<vmem>>, %arg12: memref<32x128xf32, #tpu.memory_space<vmem>>) attributes {dimension_semantics = [#tpu.dimension_semantics<parallel>], iteration_bounds = array<i64: 3>, scalar_prefetch = 0 : i64, scratch_operands = 0 : i64, tpu.core_type = #tpu.core_type<tc>, window_params = [{transform_indices = @transform_0, window_bounds = array<i64: 32, 8, 4>}, {transform_indices = @transform_1, window_bounds = array<i64: 32, 1>}, {pipeline_mode = #tpu.pipeline_mode<synchronous>, transform_indices = @transform_2, window_bounds = array<i64: 4, 16>}, {pipeline_mode = #tpu.pipeline_mode<synchronous>, transform_indices = @transform_3, window_bounds = array<i64: 3, 16>}, {pipeline_mode = #tpu.pipeline_mode<synchronous>, transform_indices = @transform_4, window_bounds = array<i64: 1, 16>}, {pipeline_mode = #tpu.pipeline_mode<synchronous>, transform_indices = @transform_5, window_bounds = array<i64: 16, 64>}, {pipeline_mode = #tpu.pipeline_mode<synchronous>, transform_indices = @transform_6, window_bounds = array<i64: 16, 64>}, {pipeline_mode = #tpu.pipeline_mode<synchronous>, transform_indices = @transform_7, window_bounds = array<i64: 1, 64>}, {pipeline_mode = #tpu.pipeline_mode<synchronous>, transform_indices = @transform_8, window_bounds = array<i64: 64, 128>}, {pipeline_mode = #tpu.pipeline_mode<synchronous>, transform_indices = @transform_9, window_bounds = array<i64: 64, 128>}, {pipeline_mode = #tpu.pipeline_mode<synchronous>, transform_indices = @transform_10, window_bounds = array<i64: 1, 128>}, {transform_indices = @transform_11, window_bounds = array<i64: 32, 128>}]} {
    %c0 = arith.constant 0 : index
    %c0_0 = arith.constant 0 : index
    %c0_1 = arith.constant 0 : index
    %0 = vector.load %arg1[%c0, %c0_0, %c0_1] : memref<32x8x4xf32, #tpu.memory_space<vmem>>, vector<32x8x4xf32>
    %c0_2 = arith.constant 0 : index
    %c0_3 = arith.constant 0 : index
    %1 = vector.load %arg2[%c0_2, %c0_3] : memref<32x1xf32, #tpu.memory_space<vmem>>, vector<32x1xf32>
    %2 = tpu.iota {dimensions = array<i32: 1>} : vector<32x8x1xi32>
    %3 = arith.sitofp %2 : vector<32x8x1xi32> to vector<32x8x1xf32>
    %4 = vector.shape_cast %1 : vector<32x1xf32> to vector<32x1x1xf32>
    %5 = vector.broadcast %4 : vector<32x1x1xf32> to vector<32x8x1xf32>
    %6 = arith.cmpf olt, %3, %5 : vector<32x8x1xf32>
    %7 = arith.extui %6 : vector<32x8x1xi1> to vector<32x8x1xi32>
    %8 = arith.sitofp %7 : vector<32x8x1xi32> to vector<32x8x1xf32>
    %9 = vector.extract_strided_slice %0 {offsets = [0, 0, 0], sizes = [32, 8, 3], strides = [1, 1, 1]} : vector<32x8x4xf32> to vector<32x8x3xf32>
    %cst = arith.constant dense<0.000000e+00> : vector<32x3xf32>
    %10 = vector.multi_reduction <add>, %9, %cst [1] : vector<32x8x3xf32> to vector<32x3xf32>
    %11 = vector.shape_cast %10 : vector<32x3xf32> to vector<32x1x3xf32>
    %12 = vector.shape_cast %1 : vector<32x1xf32> to vector<32x1x1xf32>
    %13 = vector.broadcast %12 : vector<32x1x1xf32> to vector<32x1x3xf32>
    %14 = arith.divf %11, %13 : vector<32x1x3xf32>
    %15 = vector.broadcast %14 : vector<32x1x3xf32> to vector<32x8x3xf32>
    %16 = arith.subf %9, %15 : vector<32x8x3xf32>
    %17 = vector.extract_strided_slice %0 {offsets = [0, 0, 0], sizes = [32, 8, 1], strides = [1, 1, 1]} : vector<32x8x4xf32> to vector<32x8x1xf32>
    %cst_4 = arith.constant 2.500000e-02 : f32
    %18 = vector.broadcast %cst_4 : f32 to vector<32x8x1xf32>
    %19 = arith.mulf %17, %18 : vector<32x8x1xf32>
    %20 = vector.extract_strided_slice %0 {offsets = [0, 0, 1], sizes = [32, 8, 1], strides = [1, 1, 1]} : vector<32x8x4xf32> to vector<32x8x1xf32>
    %21 = vector.extract_strided_slice %0 {offsets = [0, 0, 2], sizes = [32, 8, 1], strides = [1, 1, 1]} : vector<32x8x4xf32> to vector<32x8x1xf32>
    %cst_5 = arith.constant 5.000000e-01 : f32
    %22 = vector.broadcast %cst_5 : f32 to vector<32x8x1xf32>
    %23 = arith.mulf %21, %22 : vector<32x8x1xf32>
    %cst_6 = arith.constant 5.000000e-01 : f32
    %24 = vector.broadcast %cst_6 : f32 to vector<32x8x1xf32>
    %25 = arith.addf %23, %24 : vector<32x8x1xf32>
    %26 = vector.extract_strided_slice %0 {offsets = [0, 0, 3], sizes = [32, 8, 1], strides = [1, 1, 1]} : vector<32x8x4xf32> to vector<32x8x1xf32>
    %c0_7 = arith.constant 0 : index
    %c0_8 = arith.constant 0 : index
    %27 = vector.load %arg3[%c0_7, %c0_8] : memref<4x16xf32, #tpu.memory_space<vmem>>, vector<4x16xf32>
    %c0_9 = arith.constant 0 : index
    %c0_10 = arith.constant 0 : index
    %28 = vector.load %arg4[%c0_9, %c0_10] : memref<3x16xf32, #tpu.memory_space<vmem>>, vector<3x16xf32>
    %29 = vector.extract_strided_slice %27 {offsets = [0, 0], sizes = [1, 16], strides = [1, 1]} : vector<4x16xf32> to vector<1x16xf32>
    %30 = vector.shape_cast %29 : vector<1x16xf32> to vector<1x1x16xf32>
    %31 = vector.broadcast %19 : vector<32x8x1xf32> to vector<32x8x16xf32>
    %32 = vector.broadcast %30 : vector<1x1x16xf32> to vector<32x8x16xf32>
    %33 = arith.mulf %31, %32 : vector<32x8x16xf32>
    %34 = vector.extract_strided_slice %27 {offsets = [1, 0], sizes = [1, 16], strides = [1, 1]} : vector<4x16xf32> to vector<1x16xf32>
    %35 = vector.shape_cast %34 : vector<1x16xf32> to vector<1x1x16xf32>
    %36 = vector.broadcast %20 : vector<32x8x1xf32> to vector<32x8x16xf32>
    %37 = vector.broadcast %35 : vector<1x1x16xf32> to vector<32x8x16xf32>
    %38 = arith.mulf %36, %37 : vector<32x8x16xf32>
    %39 = arith.addf %33, %38 : vector<32x8x16xf32>
    %40 = vector.extract_strided_slice %27 {offsets = [2, 0], sizes = [1, 16], strides = [1, 1]} : vector<4x16xf32> to vector<1x16xf32>
    %41 = vector.shape_cast %40 : vector<1x16xf32> to vector<1x1x16xf32>
    %42 = vector.broadcast %25 : vector<32x8x1xf32> to vector<32x8x16xf32>
    %43 = vector.broadcast %41 : vector<1x1x16xf32> to vector<32x8x16xf32>
    %44 = arith.mulf %42, %43 : vector<32x8x16xf32>
    %45 = arith.addf %39, %44 : vector<32x8x16xf32>
    %46 = vector.extract_strided_slice %27 {offsets = [3, 0], sizes = [1, 16], strides = [1, 1]} : vector<4x16xf32> to vector<1x16xf32>
    %47 = vector.shape_cast %46 : vector<1x16xf32> to vector<1x1x16xf32>
    %48 = vector.broadcast %26 : vector<32x8x1xf32> to vector<32x8x16xf32>
    %49 = vector.broadcast %47 : vector<1x1x16xf32> to vector<32x8x16xf32>
    %50 = arith.mulf %48, %49 : vector<32x8x16xf32>
    %51 = arith.addf %45, %50 : vector<32x8x16xf32>
    %52 = vector.extract_strided_slice %16 {offsets = [0, 0, 0], sizes = [32, 8, 1], strides = [1, 1, 1]} : vector<32x8x3xf32> to vector<32x8x1xf32>
    %53 = vector.extract_strided_slice %28 {offsets = [0, 0], sizes = [1, 16], strides = [1, 1]} : vector<3x16xf32> to vector<1x16xf32>
    %54 = vector.shape_cast %53 : vector<1x16xf32> to vector<1x1x16xf32>
    %55 = vector.broadcast %52 : vector<32x8x1xf32> to vector<32x8x16xf32>
    %56 = vector.broadcast %54 : vector<1x1x16xf32> to vector<32x8x16xf32>
    %57 = arith.mulf %55, %56 : vector<32x8x16xf32>
    %58 = arith.addf %51, %57 : vector<32x8x16xf32>
    %59 = vector.extract_strided_slice %16 {offsets = [0, 0, 1], sizes = [32, 8, 1], strides = [1, 1, 1]} : vector<32x8x3xf32> to vector<32x8x1xf32>
    %60 = vector.extract_strided_slice %28 {offsets = [1, 0], sizes = [1, 16], strides = [1, 1]} : vector<3x16xf32> to vector<1x16xf32>
    %61 = vector.shape_cast %60 : vector<1x16xf32> to vector<1x1x16xf32>
    %62 = vector.broadcast %59 : vector<32x8x1xf32> to vector<32x8x16xf32>
    %63 = vector.broadcast %61 : vector<1x1x16xf32> to vector<32x8x16xf32>
    %64 = arith.mulf %62, %63 : vector<32x8x16xf32>
    %65 = arith.addf %58, %64 : vector<32x8x16xf32>
    %66 = vector.extract_strided_slice %16 {offsets = [0, 0, 2], sizes = [32, 8, 1], strides = [1, 1, 1]} : vector<32x8x3xf32> to vector<32x8x1xf32>
    %67 = vector.extract_strided_slice %28 {offsets = [2, 0], sizes = [1, 16], strides = [1, 1]} : vector<3x16xf32> to vector<1x16xf32>
    %68 = vector.shape_cast %67 : vector<1x16xf32> to vector<1x1x16xf32>
    %69 = vector.broadcast %66 : vector<32x8x1xf32> to vector<32x8x16xf32>
    %70 = vector.broadcast %68 : vector<1x1x16xf32> to vector<32x8x16xf32>
    %71 = arith.mulf %69, %70 : vector<32x8x16xf32>
    %72 = arith.addf %65, %71 : vector<32x8x16xf32>
    %73 = vector.broadcast %8 : vector<32x8x1xf32> to vector<32x8x16xf32>
    %74 = arith.mulf %73, %72 : vector<32x8x16xf32>
    %c0_11 = arith.constant 0 : index
    %c0_12 = arith.constant 0 : index
    %75 = vector.load %arg5[%c0_11, %c0_12] : memref<1x16xf32, #tpu.memory_space<vmem>>, vector<1x16xf32>
    %76 = vector.shape_cast %75 : vector<1x16xf32> to vector<1x1x16xf32>
    %77 = vector.broadcast %76 : vector<1x1x16xf32> to vector<32x8x16xf32>
    %78 = arith.addf %74, %77 : vector<32x8x16xf32>
    %cst_13 = arith.constant 0.000000e+00 : f32
    %79 = vector.broadcast %cst_13 : f32 to vector<32x8x16xf32>
    %80 = arith.maximumf %78, %79 : vector<32x8x16xf32>
    %cst_14 = arith.constant dense<0xFF800000> : vector<32x16xf32>
    %81 = vector.multi_reduction <maximumf>, %80, %cst_14 [1] : vector<32x8x16xf32> to vector<32x16xf32>
    %82 = vector.shape_cast %80 : vector<32x8x16xf32> to vector<256x16xf32>
    %c0_15 = arith.constant 0 : index
    %c0_16 = arith.constant 0 : index
    %83 = vector.load %arg6[%c0_15, %c0_16] : memref<16x64xf32, #tpu.memory_space<vmem>>, vector<16x64xf32>
    %cst_17 = arith.constant dense<0.000000e+00> : vector<256x64xf32>
    %84 = tpu.matmul %82, %83, %cst_17 {dimension_numbers = #tpu.dot_dimension_numbers<[1], [0], [0], [1], [0, 0, 1, 1], [], []>} : vector<256x16xf32>, vector<16x64xf32>, vector<256x64xf32> -> vector<256x64xf32>
    %85 = vector.shape_cast %84 : vector<256x64xf32> to vector<32x8x64xf32>
    %c0_18 = arith.constant 0 : index
    %c0_19 = arith.constant 0 : index
    %86 = vector.load %arg7[%c0_18, %c0_19] : memref<16x64xf32, #tpu.memory_space<vmem>>, vector<16x64xf32>
    %cst_20 = arith.constant dense<0.000000e+00> : vector<32x64xf32>
    %87 = tpu.matmul %81, %86, %cst_20 {dimension_numbers = #tpu.dot_dimension_numbers<[1], [0], [0], [1], [0, 0, 1, 1], [], []>} : vector<32x16xf32>, vector<16x64xf32>, vector<32x64xf32> -> vector<32x64xf32>
    %88 = vector.shape_cast %87 : vector<32x64xf32> to vector<32x1x64xf32>
    %89 = vector.broadcast %88 : vector<32x1x64xf32> to vector<32x8x64xf32>
    %90 = arith.addf %85, %89 : vector<32x8x64xf32>
    %91 = vector.broadcast %8 : vector<32x8x1xf32> to vector<32x8x64xf32>
    %92 = arith.mulf %91, %90 : vector<32x8x64xf32>
    %c0_21 = arith.constant 0 : index
    %c0_22 = arith.constant 0 : index
    %93 = vector.load %arg8[%c0_21, %c0_22] : memref<1x64xf32, #tpu.memory_space<vmem>>, vector<1x64xf32>
    %94 = vector.shape_cast %93 : vector<1x64xf32> to vector<1x1x64xf32>
    %95 = vector.broadcast %94 : vector<1x1x64xf32> to vector<32x8x64xf32>
    %96 = arith.addf %92, %95 : vector<32x8x64xf32>
    %cst_23 = arith.constant 0.000000e+00 : f32
    %97 = vector.broadcast %cst_23 : f32 to vector<32x8x64xf32>
    %98 = arith.maximumf %96, %97 : vector<32x8x64xf32>
    %cst_24 = arith.constant dense<0xFF800000> : vector<32x64xf32>
    %99 = vector.multi_reduction <maximumf>, %98, %cst_24 [1] : vector<32x8x64xf32> to vector<32x64xf32>
    %100 = vector.shape_cast %98 : vector<32x8x64xf32> to vector<256x64xf32>
    %c0_25 = arith.constant 0 : index
    %c0_26 = arith.constant 0 : index
    %101 = vector.load %arg9[%c0_25, %c0_26] : memref<64x128xf32, #tpu.memory_space<vmem>>, vector<64x128xf32>
    %cst_27 = arith.constant dense<0.000000e+00> : vector<256x128xf32>
    %102 = tpu.matmul %100, %101, %cst_27 {dimension_numbers = #tpu.dot_dimension_numbers<[1], [0], [0], [1], [0, 0, 1, 1], [], []>} : vector<256x64xf32>, vector<64x128xf32>, vector<256x128xf32> -> vector<256x128xf32>
    %103 = vector.shape_cast %102 : vector<256x128xf32> to vector<32x8x128xf32>
    %c0_28 = arith.constant 0 : index
    %c0_29 = arith.constant 0 : index
    %104 = vector.load %arg10[%c0_28, %c0_29] : memref<64x128xf32, #tpu.memory_space<vmem>>, vector<64x128xf32>
    %cst_30 = arith.constant dense<0.000000e+00> : vector<32x128xf32>
    %105 = tpu.matmul %99, %104, %cst_30 {dimension_numbers = #tpu.dot_dimension_numbers<[1], [0], [0], [1], [0, 0, 1, 1], [], []>} : vector<32x64xf32>, vector<64x128xf32>, vector<32x128xf32> -> vector<32x128xf32>
    %106 = vector.shape_cast %105 : vector<32x128xf32> to vector<32x1x128xf32>
    %107 = vector.broadcast %106 : vector<32x1x128xf32> to vector<32x8x128xf32>
    %108 = arith.addf %103, %107 : vector<32x8x128xf32>
    %109 = vector.broadcast %8 : vector<32x8x1xf32> to vector<32x8x128xf32>
    %110 = arith.mulf %109, %108 : vector<32x8x128xf32>
    %c0_31 = arith.constant 0 : index
    %c0_32 = arith.constant 0 : index
    %111 = vector.load %arg11[%c0_31, %c0_32] : memref<1x128xf32, #tpu.memory_space<vmem>>, vector<1x128xf32>
    %112 = vector.shape_cast %111 : vector<1x128xf32> to vector<1x1x128xf32>
    %113 = vector.broadcast %112 : vector<1x1x128xf32> to vector<32x8x128xf32>
    %114 = arith.addf %110, %113 : vector<32x8x128xf32>
    %cst_33 = arith.constant 0.000000e+00 : f32
    %115 = vector.broadcast %cst_33 : f32 to vector<32x8x128xf32>
    %116 = arith.maximumf %114, %115 : vector<32x8x128xf32>
    %117 = vector.broadcast %8 : vector<32x8x1xf32> to vector<32x8x128xf32>
    %118 = arith.mulf %116, %117 : vector<32x8x128xf32>
    %cst_34 = arith.constant dense<0xFF800000> : vector<32x128xf32>
    %119 = vector.multi_reduction <maximumf>, %118, %cst_34 [1] : vector<32x8x128xf32> to vector<32x128xf32>
    %c0_35 = arith.constant 0 : index
    %c0_36 = arith.constant 0 : index
    %120 = vector.load %arg12[%c0_35, %c0_36] : memref<32x128xf32, #tpu.memory_space<vmem>>, vector<32x128xf32>
    tpu.vector_store %arg12[%c0_35, %c0_36], %119 {strides = array<i32>} : memref<32x128xf32, #tpu.memory_space<vmem>>, vector<32x128xf32>,
    return
  }
  func.func @transform_0(%arg0: i32) -> (i32, i32, i32) {
    %c0_i32 = arith.constant 0 : i32
    %c0_i32_0 = arith.constant 0 : i32
    %c0_i32_1 = arith.constant 0 : i32
    return %arg0, %c0_i32, %c0_i32_0 : i32, i32, i32
  }
  func.func @transform_1(%arg0: i32) -> (i32, i32) {
    %c0_i32 = arith.constant 0 : i32
    %c0_i32_0 = arith.constant 0 : i32
    return %arg0, %c0_i32 : i32, i32
  }
  func.func @transform_2(%arg0: i32) -> (i32, i32) {
    %c0_i32 = arith.constant 0 : i32
    %c0_i32_0 = arith.constant 0 : i32
    %c0_i32_1 = arith.constant 0 : i32
    return %c0_i32, %c0_i32_0 : i32, i32
  }
  func.func @transform_3(%arg0: i32) -> (i32, i32) {
    %c0_i32 = arith.constant 0 : i32
    %c0_i32_0 = arith.constant 0 : i32
    %c0_i32_1 = arith.constant 0 : i32
    return %c0_i32, %c0_i32_0 : i32, i32
  }
  func.func @transform_4(%arg0: i32) -> (i32, i32) {
    %c0_i32 = arith.constant 0 : i32
    %c0_i32_0 = arith.constant 0 : i32
    %c0_i32_1 = arith.constant 0 : i32
    return %c0_i32, %c0_i32_0 : i32, i32
  }
  func.func @transform_5(%arg0: i32) -> (i32, i32) {
    %c0_i32 = arith.constant 0 : i32
    %c0_i32_0 = arith.constant 0 : i32
    %c0_i32_1 = arith.constant 0 : i32
    return %c0_i32, %c0_i32_0 : i32, i32
  }
  func.func @transform_6(%arg0: i32) -> (i32, i32) {
    %c0_i32 = arith.constant 0 : i32
    %c0_i32_0 = arith.constant 0 : i32
    %c0_i32_1 = arith.constant 0 : i32
    return %c0_i32, %c0_i32_0 : i32, i32
  }
  func.func @transform_7(%arg0: i32) -> (i32, i32) {
    %c0_i32 = arith.constant 0 : i32
    %c0_i32_0 = arith.constant 0 : i32
    %c0_i32_1 = arith.constant 0 : i32
    return %c0_i32, %c0_i32_0 : i32, i32
  }
  func.func @transform_8(%arg0: i32) -> (i32, i32) {
    %c0_i32 = arith.constant 0 : i32
    %c0_i32_0 = arith.constant 0 : i32
    %c0_i32_1 = arith.constant 0 : i32
    return %c0_i32, %c0_i32_0 : i32, i32
  }
  func.func @transform_9(%arg0: i32) -> (i32, i32) {
    %c0_i32 = arith.constant 0 : i32
    %c0_i32_0 = arith.constant 0 : i32
    %c0_i32_1 = arith.constant 0 : i32
    return %c0_i32, %c0_i32_0 : i32, i32
  }
  func.func @transform_10(%arg0: i32) -> (i32, i32) {
    %c0_i32 = arith.constant 0 : i32
    %c0_i32_0 = arith.constant 0 : i32
    %c0_i32_1 = arith.constant 0 : i32
    return %c0_i32, %c0_i32_0 : i32, i32
  }
  func.func @transform_11(%arg0: i32) -> (i32, i32) {
    %c0_i32 = arith.constant 0 : i32
    %c0_i32_0 = arith.constant 0 : i32
    return %arg0, %c0_i32 : i32, i32
  }
}

</mosaic_0001>

<bundles_post_ra>
// kernel: tpu_custom_call.1
= control target key start
LH: loop header
LB: loop body
LE: loop exit
PB: predicated region body
PF: predicated region fallthrough
CT: control target
= control target key end

     0   :  { %16 = vsyncpa [#allocation3], 0  ;;  %s10424_s0 = inlined_call_operand.vmem [shape: f32[96,8,4], index: 0, kind: input, shape index: {}]   ;;  %s10425_s1 = inlined_call_operand.vmem [shape: f32[96,1], index: 1, kind: input, shape index: {}]   ;;  %s10426_s2 = inlined_call_operand.vmem [shape: f32[4,16], index: 2, kind: input, shape index: {}]   ;;  %s10427_s3 = inlined_call_operand.vmem [shape: f32[3,16], index: 3, kind: input, shape index: {}]   ;;  %s10428_s4 = inlined_call_operand.vmem [shape: f32[1,16], index: 4, kind: input, shape index: {}]   ;;  %s10429_s5 = inlined_call_operand.vmem [shape: f32[16,64], index: 5, kind: input, shape index: {}]   ;;  %s10430_s6 = inlined_call_operand.vmem [shape: f32[16,64], index: 6, kind: input, shape index: {}]   ;;  %s10431_s7 = inlined_call_operand.vmem [shape: f32[1,64], index: 7, kind: input, shape index: {}]   ;;  %s10432_s8 = inlined_call_operand.vmem [shape: f32[64,128], index: 8, kind: input, shape index: {}]   ;;  %s10433_s9 = inlined_call_operand.vmem [shape: f32[64,128], index: 9, kind: input, shape index: {}]   ;;  %s10434_s10 = inlined_call_operand.vmem [shape: f32[1,128], index: 10, kind: input, shape index: {}]   ;;  %s10435_s11 = inlined_call_operand.hbm [shape: f32[96,128], index: 11, kind: output, shape index: {}]  }
   0x1   :  { %18 = vsyncpa [#allocation3 + $0x1], 0  ;;  %s6937_s17 = smov 0   ;;  %s6939_s18 = smov 0  }
   0x2   :  { %s6941_s19 = smov 0   ;;  %s6943_s20 = smov 0  }
   0x3 LB: > { %s6958_s21 = sadd.s32 4294967295, %s6866_s20   ;;  %s6106_s22 = sadd.s32 4294967294, %s6866_s20   ;;  %s6866_s20 = sphi %s6943_s20, %s11227_s20   ;;  %s6862_s19 = sphi %s6941_s19, %s11226_s19   ;;  %s6858_s18 = sphi %s6939_s18, %s11225_s18   ;;  %s6854_s17 = sphi %s6937_s17, %s11224_s17  }
   0x4   : > { %s6962_s23 = sadd.s32 1, %s6866_s20   ;;  %s272_s24 = sadd.s32 1, %s6862_s19 }
   0x5   : > { %s269_s25 = ssub.s32 %s6866_s20, %s6962_s23  ;;  %p282_p0 = scmp.ne.s32.totalorder %s6862_s19, %s6858_s18 }
   0x6   : > { %p270_p1 = scmp.eq.s32.totalorder %s269_s25, 0  ;;  %p283_p2 = scmp.eq.s32.totalorder %s6958_s21, 2 }
   0x7   : > { %p288_p3 = scmp.ne.s32.totalorder %s6858_s18, %s6854_s17  ;;  %p289_p4 = scmp.eq.s32.totalorder %s6106_s22, 2 }
   0x8   : > { %s6973_s26 = scalar_select %p270_p1, %s6862_s19, %s272_s24  }
   0x9   : > { %p6975_p5 = por %p283_p2, %p282_p0  ;;  %p6979_p6 = por %p289_p4, %p288_p3 }
   0xa   : > { %p6109_p7 = scmp.ge.s32.totalorder %s6866_s20, 1  ;;  %p352_p8 = scmp.lt.s32.totalorder %s6866_s20, 4 }
   0xc   : > { %p353_p9 = pnand %p6109_p7, %p352_p8 }
   0xe   : > { %356 = sbr.rel (%p353_p9) target bundleno = 1526 (0x5f6), region = 64 }
  0x15   : > { %s6113_s29 = sshll.u32 %s6958_s21, 2  ;;  %v446_v0 = vlaneseq  ;;  %v10436_v1 = vmov 0   ;;  %v6869_v2 = vmov 1966171168   ;;  %s6111_s15 = sshll.u32 %s6958_s21, 5  ;;  %vm905_vm0 = vcmask 23552  }
  0x16   : > { %6555 = vset.pattern.permute.xlu0 %v10436_v1  ;;  %p404_p10 = scmp.lt.s32.totalorder %s6113_s29, 11  ;;  %v455_v3 = vunpack.c.l.s4 %v6869_v2  ;;  %6556 = vset.pattern.permute.xlu1 %v10436_v1  ;;  %p398_p11 = scmp.lt.s32.totalorder %s6111_s15, 95 }
  0x17   : > { %v6988_v4 = vshrl.u32 %v446_v0, 7  ;;  %s394_s13 = sand.u32 1, %s6858_s18   ;;  %s6874_s12 = smov [#allocation2]  }
  0x18   : > { %s11229_s29 = smov (!%p404_p10, %s6113_s29), 11  ;;  %v456_v5 = vunpack.c.0.s8 %v455_v3  ;;  %s11231_s15 = smov (!%p398_p11, %s6111_s15), 95 }
  0x19   : > { %10616 = vst [vmem:[#allocation5_spill] sm:$0xff] %v6988_v4  ;;  %s6114_s30 = sshll.u32 %s11229_s29, 3  ;;  %s6112_s16 = sshll.u32 %s11231_s15, 3 }
  0x1a   : > { %v6991_v6 = vsub.s32 %v456_v5, %v6988_v4  ;;  %s6996_s14 = scalar_lea.vmem %s10425_s1, %s6114_s30  ;;  %s7151_s25 = scalar_lea.vmem %s10424_s0, %s6112_s16  ;;  %v10440_v5 = vmov 3  }
  0x1b   : > { %v442_v7 = vld [vmem:[%s6996_s14] sm:$0xff]  ;;  %v443_v8 = vld [vmem:[%s6996_s14 + $0x8] sm:$0xff]  ;;  %v444_v31 = vld [vmem:[%s6996_s14 + $0x10] sm:$0xff]  ;;  %s6227_s15 = sshll.u32 %s6958_s21, 9  ;;  %s10383_s21 = scalar_lea.sflag [#allocation3], %s394_s13 }
  0x1c   : > { %10617 = vst [vmem:[#allocation6_spill] sm:$0xff] %v6991_v6  ;;  %v460_v9 = vrot.slane %v442_v7, %v6991_v6  ;;  %v509_v10 = vrot.slane %v443_v8, %v6991_v6  ;;  %v453_v14 = vcombine.high %v442_v7, %v442_v7  ;;  %v502_v24 = vcombine.high %v443_v8, %v443_v8  ;;  %v445_v45 = vld [vmem:[%s6996_s14 + $0x18] sm:$0xff]  ;;  %v7159_v63 = vld [vmem:[%s7151_s25 + $0x8] sm:$0xff]  ;;  %v7164_v0 = vld [vmem:[%s7151_s25] sm:$0xff]  ;;  %s6110_s14 = sshll.u32 %s394_s13, 5  ;;  %s10374_s29 = scalar_lea.hbm %s10435_s11, %s6227_s15 }
  0x1d   : > { %v558_v34 = vrot.slane %v444_v31, %v6991_v6  ;;  %v551_v38 = vcombine.high %v444_v31, %v444_v31  ;;  %v607_v48 = vrot.slane %v445_v45, %v6991_v6  ;;  %v600_v52 = vcombine.high %v445_v45, %v445_v45  ;;  %v7168_v3 = vld [vmem:[%s7151_s25 + $0x18] sm:$0xff]  ;;  %v7173_v7 = vld [vmem:[%s7151_s25 + $0x40] sm:$0xff] }
  0x1e   : > { %v7003_v11 = vrot.slane %v460_v9, %v6991_v6  ;;  %v517_v12 = vcombine.high %v509_v10, %v509_v10  ;;  %v468_v13 = vcombine.high %v460_v9, %v460_v9  ;;  %v7011_v16 = vrot.slane %v509_v10, %v6991_v6  ;;  %v7177_v9 = vld [vmem:[%s7151_s25 + $0x28] sm:$0xff]  ;;  %v7218_v45 = vld [vmem:[%s7151_s25 + $0x98] sm:$0xff] }
  0x1f   : > { %v467_v19 = vrot.slane %v453_v14, %v6991_v6  ;;  %v516_v27 = vrot.slane %v502_v24, %v6991_v6  ;;  %v566_v37 = vcombine.high %v558_v34, %v558_v34  ;;  %v7078_v39 = vrot.slane %v558_v34, %v6991_v6  ;;  %v7205_v34 = vld [vmem:[%s7151_s25 + $0x78] sm:$0xff] }
  0x20   : > { %10618 = vst [vmem:[#allocation7_spill] sm:$0xff] %v7003_v11  ;;  %1131 = vperm.xlu0 %6555, %v7003_v11   ;;  %v7008_v15 = vcombine.high %v7003_v11, %v7003_v11  ;;  %10620 = vst [vmem:[#allocation9_spill] sm:$0xff] %v7011_v16  ;;  %v7015_v17 = vrot.slane %v517_v12, %v6991_v6  ;;  %v7018_v18 = vrot.slane %v468_v13, %v6991_v6  ;;  %v7182_v12 = vld [vmem:[%s7151_s25 + $0x38] sm:$0xff] }
  0x21   : > { %v469_v21 = vcombine.high %v467_v19, %v467_v19  ;;  %v7029_v22 = vrot.slane %v467_v19, %v6991_v6  ;;  %v7049_v28 = vcombine.high %v7011_v16, %v7011_v16  ;;  %v518_v30 = vcombine.high %v516_v27, %v516_v27  ;;  %10634 = vst [vmem:[#allocation23_spill] sm:$0xff] %v7078_v39  ;;  %v7186_v13 = vld [vmem:[%s7151_s25 + $0x58] sm:$0xff]  ;;  %v7190_v19 = vld [vmem:[%s7151_s25 + $0x48] sm:$0xff] }
  0x22   : > { %10619 = vst [vmem:[#allocation8_spill] sm:$0xff] %v7008_v15  ;;  %1147 = vperm.xlu1 %6556, %v7008_v15   ;;  %10621 = vst [vmem:[#allocation10_spill] sm:$0xff] %v7015_v17  ;;  %v7025_v20 = vcombine.high %v7018_v18, %v7018_v18  ;;  %v7054_v29 = vcombine.high %v7015_v17, %v7015_v17  ;;  %v7059_v32 = vrot.slane %v516_v27, %v6991_v6 }
  0x23   : > { %10622 = vst [vmem:[#allocation11_spill] sm:$0xff] %v7018_v18  ;;  %10624 = vst [vmem:[#allocation13_spill] sm:$0xff] %v7029_v22  ;;  %v7033_v23 = vrot.slane %v469_v21, %v6991_v6  ;;  %v7038_v25 = vcombine.high %v7029_v22, %v7029_v22  ;;  %v7063_v33 = vrot.slane %v518_v30, %v6991_v6  ;;  %v1483_v2 = vmul.f32 0.025, %v7159_v63  ;;  %v7194_v21 = vld [vmem:[%s7151_s25 + $0x68] sm:$0xff] }
  0x24   : > { %1195 = vperm.xlu0 %6555, %v7011_v16   ;;  %10623 = vst [vmem:[#allocation12_spill] sm:$0xff] %v7025_v20  ;;  %10628 = vst [vmem:[#allocation17_spill] sm:$0xff] %v7049_v28  ;;  %v7069_v35 = vcombine.high %v7059_v32, %v7059_v32  ;;  %v7082_v40 = vrot.slane %v566_v37, %v6991_v6  ;;  %v565_v41 = vrot.slane %v551_v38, %v6991_v6  ;;  %v7201_v30 = vld [vmem:[%s7151_s25 + $0x88] sm:$0xff] }
  0x25   : > { %10625 = vst [vmem:[#allocation14_spill] sm:$0xff] %v7033_v23  ;;  %10626 = vst [vmem:[#allocation15_spill] sm:$0xff] %v7038_v25  ;;  %v7043_v26 = vcombine.high %v7033_v23, %v7033_v23  ;;  %v7074_v36 = vcombine.high %v7063_v33, %v7063_v33  ;;  %v7088_v42 = vcombine.high %v7078_v39, %v7078_v39  ;;  %v1485_v8 = vmul.f32 0.025, %v7168_v3  ;;  %v7209_v37 = vld [vmem:[%s7151_s25 + $0xc8] sm:$0xff] }
  0x26   : > { %1203 = vperm.xlu1 %6556, %v7015_v17   ;;  %10629 = vst [vmem:[#allocation18_spill] sm:$0xff] %v7054_v29  ;;  %10630 = vst [vmem:[#allocation19_spill] sm:$0xff] %v7059_v32  ;;  %v7093_v43 = vcombine.high %v7082_v40, %v7082_v40  ;;  %v567_v44 = vcombine.high %v565_v41, %v565_v41  ;;  %v7098_v46 = vrot.slane %v565_v41, %v6991_v6  ;;  %v7214_v41 = vld [vmem:[%s7151_s25 + $0xd0] sm:$0xff] }
  0x27   : > { %10627 = vst [vmem:[#allocation16_spill] sm:$0xff] %v7043_v26  ;;  %10631 = vst [vmem:[#allocation20_spill] sm:$0xff] %v7063_v33  ;;  %v615_v51 = vcombine.high %v607_v48, %v607_v48  ;;  %v7118_v53 = vrot.slane %v607_v48, %v6991_v6  ;;  %v614_v55 = vrot.slane %v600_v52, %v6991_v6  ;;  %v1487_v10 = vmul.f32 0.025, %v7177_v9  ;;  %v7222_v48 = vld [vmem:[%s7151_s25 + $0xe0] sm:$0xff]  ;;  %v7226_v52 = vld [vmem:[%s7151_s25 + $0xa8] sm:$0xff] }
  0x28   : > { %1139 = vperm.xlu0 %6555, %v7018_v18   ;;  %10632 = vst [vmem:[#allocation21_spill] sm:$0xff] %v7069_v35  ;;  %10633 = vst [vmem:[#allocation22_spill] sm:$0xff] %v7074_v36  ;;  %v7102_v47 = vrot.slane %v567_v44, %v6991_v6  ;;  %v7108_v49 = vcombine.high %v7098_v46, %v7098_v46  ;;  %v1489_v14 = vmul.f32 0.025, %v7182_v12  ;;  %v1491_v24 = vmul.f32 0.025, %v7190_v19 }
  0x29   : > { %10635 = vst [vmem:[#allocation24_spill] sm:$0xff] %v7082_v40  ;;  %10636 = vst [vmem:[#allocation25_spill] sm:$0xff] %v7088_v42  ;;  %v7122_v54 = vrot.slane %v615_v51, %v6991_v6  ;;  %v7128_v56 = vcombine.high %v7118_v53, %v7118_v53  ;;  %v616_v58 = vcombine.high %v614_v55, %v614_v55  ;;  %v1493_v27 = vmul.f32 0.025, %v7186_v13  ;;  %v7346_v18 = vld [vmem:[%s7151_s25 + $0x90] sm:$0xff] }
  0x2a   : > { %1155 = vperm.xlu1 %6556, %v7025_v20   ;;  %10637 = vst [vmem:[#allocation26_spill] sm:$0xff] %v7093_v43  ;;  %10638 = vst [vmem:[#allocation27_spill] sm:$0xff] %v7098_v46  ;;  %v7113_v50 = vcombine.high %v7102_v47, %v7102_v47  ;;  %v7137_v59 = vrot.slane %v614_v55, %v6991_v6  ;;  %v1495_v31 = vmul.f32 0.025, %v7194_v21  ;;  %v1497_v38 = vmul.f32 0.025, %v7205_v34 }
  0x2b   : > { %10639 = vst [vmem:[#allocation28_spill] sm:$0xff] %v7102_v47  ;;  %10640 = vst [vmem:[#allocation29_spill] sm:$0xff] %v7108_v49  ;;  %v7133_v57 = vcombine.high %v7122_v54, %v7122_v54  ;;  %v7141_v60 = vrot.slane %v616_v58, %v6991_v6  ;;  %v1499_v44 = vmul.f32 0.025, %v7201_v30  ;;  %v1501_v51 = vmul.f32 0.025, %v7218_v45 }
  0x2c   : > { %1163 = vperm.xlu0 %6555, %v7029_v22   ;;  %10641 = vst [vmem:[#allocation30_spill] sm:$0xff] %v7113_v50  ;;  %10642 = vst [vmem:[#allocation31_spill] sm:$0xff] %v7118_v53  ;;  %v7146_v61 = vcombine.high %v7137_v59, %v7137_v59  ;;  %v7230_v55 = vld [vmem:[%s7151_s25 + $0xe8] sm:$0xff]  ;;  %v1503_v58 = vmul.f32 0.025, %v7226_v52  ;;  %v7334_v22 = vld [vmem:[%s7151_s25 + $0x80] sm:$0xff] }
  0x2d   : > { %10643 = vst [vmem:[#allocation32_spill] sm:$0xff] %v7122_v54  ;;  %10644 = vst [vmem:[#allocation33_spill] sm:$0xff] %v7128_v56  ;;  %v7156_v62 = vcombine.high %v7141_v60, %v7141_v60 }
  0x2e   : > { %1171 = vperm.xlu1 %6556, %v7033_v23   ;;  %10645 = vst [vmem:[#allocation34_spill] sm:$0xff] %v7133_v57  ;;  %10646 = vst [vmem:[#allocation35_spill] sm:$0xff] %v7137_v59 }
  0x2f   : > { %10647 = vst [vmem:[#allocation36_spill] sm:$0xff] %v7141_v60  ;;  %10648 = vst [vmem:[#allocation37_spill] sm:$0xff] %v7146_v61 }
  0x30   : > { %1179 = vperm.xlu0 %6555, %v7038_v25   ;;  %10649 = vst [vmem:[#allocation38_spill] sm:$0xff] %v7156_v62 }
  0x32   : > { %1187 = vperm.xlu1 %6556, %v7043_v26  }
  0x34   : > { %1211 = vperm.xlu0 %6555, %v7049_v28   ;;  %v997_v28 = vsel %vm905_vm0, %v7194_v21, 0.0 }
  0x35   : > { %v998_v20 = vrot.slane %v997_v28, 4 }
  0x36   : > { %1219 = vperm.xlu1 %6556, %v7054_v29  }
  0x38   : > { %1227 = vperm.xlu0 %6555, %v7059_v32  }
  0x3a   : > { %1235 = vperm.xlu1 %6556, %v7063_v33  }
  0x3c   : > { %1243 = vperm.xlu0 %6555, %v7069_v35  }
  0x3e   : > { %1251 = vperm.xlu1 %6556, %v7074_v36  }
  0x40   : > { %1259 = vperm.xlu0 %6555, %v7078_v39   ;;  %v7303_v39 = vsub.s32 0, %v6988_v4 }
  0x42   : > { %1267 = vperm.xlu1 %6556, %v7082_v40  }
  0x44   : > { %1275 = vperm.xlu0 %6555, %v7088_v42   ;;  %v983_v42 = vsel %vm905_vm0, %v7186_v13, 0.0 }
  0x45   : > { %v984_v33 = vrot.slane %v983_v42, 4 }
  0x46   : > { %1283 = vperm.xlu1 %6556, %v7093_v43  }
  0x48   : > { %1291 = vperm.xlu0 %6555, %v7098_v46  }
  0x4a   : > { %1299 = vperm.xlu1 %6556, %v7102_v47  }
  0x4c   : > { %1307 = vperm.xlu0 %6555, %v7108_v49   ;;  %v7297_v49 = vld [vmem:[%s7151_s25 + $0x50] sm:$0xff] }
  0x4e   : > { %1315 = vperm.xlu1 %6556, %v7113_v50  }
  0x50   : > { %1323 = vperm.xlu0 %6555, %v7118_v53  }
  0x52   : > { %1331 = vperm.xlu1 %6556, %v7122_v54  }
  0x54   : > { %1339 = vperm.xlu0 %6555, %v7128_v56  }
  0x56   : > { %1347 = vperm.xlu1 %6556, %v7133_v57  }
  0x58   : > { %1355 = vperm.xlu0 %6555, %v7137_v59   ;;  %v906_v59 = vsel %vm905_vm0, %v7164_v0, 0.0 }
  0x59   : > { %v907_v50 = vrot.slane %v906_v59, 4 }
  0x5a   : > { %1363 = vperm.xlu1 %6556, %v7141_v60  }
  0x5b   : > { %v908_v40 = vadd.f32 %v907_v50, %v906_v59 }
  0x5c   : > { %1371 = vperm.xlu0 %6555, %v7146_v61   ;;  %v7309_v61 = vld [vmem:[%s7151_s25 + $0x60] sm:$0xff] }
  0x5d   : > { %v909_v50 = vrot.slane %v908_v40, 2 }
  0x5e   : > { %1379 = vperm.xlu1 %6556, %v7156_v62  }
  0x5f   : > { %v910_v32 = vadd.f32 %v909_v50, %v908_v40 }
  0x60   : > { %6559 = vset.pattern.permute.xlu0 %v10440_v5  ;;  %v7280_v5 = vld [vmem:[%s7151_s25 + $0x30] sm:$0xff] }
  0x61   : > { %2233 = vperm.xlu0 %6559, %v7164_v0   ;;  %v911_v40 = vrot.slane %v910_v32, 1 }
  0x62   : > { %1587 = vperm.xlu1 %6556, %v1483_v2   ;;  %v7234_v2 = vld [vmem:[%s7151_s25 + $0xb8] sm:$0xff] }
  0x65   : > { %2265 = vperm.xlu0 %6559, %v7173_v7  }
  0x66   : > { %1597 = vperm.xlu1 %6556, %v1485_v8   ;;  %v1505_v8 = vmul.f32 0.025, %v7234_v2 }
  0x69   : > { %2245 = vperm.xlu0 %6559, %v7168_v3  }
  0x6a   : > { %1607 = vperm.xlu1 %6556, %v1487_v10   ;;  %v1507_v10 = vmul.f32 0.025, %v7209_v37 }
  0x6d   : > { %2277 = vperm.xlu0 %6559, %v7186_v13  }
  0x6e   : > { %1617 = vperm.xlu1 %6556, %v1489_v14   ;;  %v7241_v14 = vld [vmem:[%s7151_s25 + $0xd8] sm:$0xff] }
  0x71   : > { %2285 = vperm.xlu0 %6559, %v7194_v21  }
  0x72   : > { %1627 = vperm.xlu1 %6556, %v1491_v24   ;;  %v10438_v24 = vmov 1  }
  0x75   : > { %2261 = vperm.xlu0 %6559, %v7182_v12  }
  0x76   : > { %1637 = vperm.xlu1 %6556, %v1493_v27   ;;  %v1509_v27 = vmul.f32 0.025, %v7241_v14 }
  0x79   : > { %2301 = vperm.xlu0 %6559, %v7201_v30  }
  0x7a   : > { %1647 = vperm.xlu1 %6556, %v1495_v31   ;;  %v1511_v31 = vmul.f32 0.025, %v7230_v55 }
  0x7d   : > { %2333 = vperm.xlu0 %6559, %v7209_v37  }
  0x7e   : > { %1657 = vperm.xlu1 %6556, %v1497_v38   ;;  %v7249_v38 = vld [vmem:[%s7151_s25 + $0xf8] sm:$0xff] }
  0x81   : > { %2337 = vperm.xlu0 %6559, %v7214_v41  }
  0x82   : > { %1667 = vperm.xlu1 %6556, %v1499_v44   ;;  %v1513_v44 = vmul.f32 0.025, %v7249_v38 }
  0x85   : > { %2345 = vperm.xlu0 %6559, %v7222_v48  }
  0x86   : > { %1677 = vperm.xlu1 %6556, %v1501_v51  }
  0x89   : > { %2349 = vperm.xlu0 %6559, %v7230_v55  }
  0x8a   : > { %1687 = vperm.xlu1 %6556, %v1503_v58  }
  0x8d   : > { %2325 = vperm.xlu0 %6559, %v7234_v2  }
  0x8e   : > { %1697 = vperm.xlu1 %6556, %v1505_v8  }
  0x91   : > { %6628 = vset.pattern.permute.xlu0 %v10438_v24 }
  0x92   : > { %1707 = vperm.xlu1 %6556, %v1507_v10   ;;  %1778 = vperm.xlu0 %6628, %v7164_v0  }
  0x96   : > { %1717 = vperm.xlu1 %6556, %v1509_v27   ;;  %1793 = vperm.xlu0 %6628, %v7168_v3   ;;  %v7265_v27 = vld [vmem:[%s7151_s25 + $0x10] sm:$0xff] }
  0x97   : > { %v920_v43 = vsel %vm905_vm0, %v7265_v27, 0.0 }
  0x98   : > { %v921_v47 = vrot.slane %v920_v43, 4 }
  0x9a   : > { %1727 = vperm.xlu1 %6556, %v1511_v31   ;;  %1803 = vperm.xlu0 %6628, %v7177_v9  }
  0x9e   : > { %1737 = vperm.xlu1 %6556, %v1513_v44   ;;  %1813 = vperm.xlu0 %6628, %v7182_v12   ;;  %v7271_v44 = vld [vmem:[%s7151_s25 + $0x20] sm:$0xff] }
  0x9f   : > { %v1132_v51 = vpop.permute.xlu0 %1131 }
  0xa0   : > { %v1137_v57 = vrot.slane %v1132_v51, %v7303_v39  ;;  %v941_v51 = vsel %vm905_vm0, %v7177_v9, 0.0 }
  0xa1   : > { %v7254_v58 = vpop.permute.xlu1 %1147 }
  0xa2   : > { %6557 = vset.pattern.permute.xlu1 %v10438_v24  ;;  %1823 = vperm.xlu0 %6628, %v7190_v19   ;;  %6713 = vrcp.f32 %v1137_v57  ;;  %v1153_v25 = vrot.slane %v7254_v58, %v7303_v39  ;;  %v942_v57 = vrot.slane %v941_v51, 4 }
  0xa3   : > { %1783 = vperm.xlu1 %6557, %v7159_v63   ;;  %v7259_v8 = vpop.permute.xlu0 %1195 }
  0xa4   : > { %10650 = vst [vmem:[#allocation39_spill] sm:$0xff] %v7259_v8  ;;  %6715 = vrcp.f32 %v1153_v25  ;;  %v943_v11 = vadd.f32 %v942_v57, %v941_v51  ;;  %v912_v25 = vadd.f32 %v911_v40, %v910_v32  ;;  %v999_v32 = vadd.f32 %v998_v20, %v997_v28 }
  0xa5   : > { %v7261_v10 = vpop.permute.xlu1 %1203 }
  0xa6   : > { %10651 = vst [vmem:[#allocation40_spill] sm:$0xff] %v7261_v10  ;;  %1833 = vperm.xlu0 %6628, %v7186_v13  }
  0xa7   : > { %1788 = vperm.xlu1 %6557, %v7265_v27   ;;  %v7268_v31 = vpop.permute.xlu0 %1139 }
  0xa9   : > { %v7273_v1 = vpop.permute.xlu1 %1155 }
  0xaa   : > { %10652 = vst [vmem:[#allocation41_spill] sm:$0xff] %v7273_v1  ;;  %1843 = vperm.xlu0 %6628, %v7194_v21  }
  0xab   : > { %1798 = vperm.xlu1 %6557, %v7271_v44   ;;  %v7277_v24 = vpop.permute.xlu0 %1163 }
  0xac   : > { %10653 = vst [vmem:[#allocation42_spill] sm:$0xff] %v7277_v24  ;;  %v6714_v36 = vpop.eup %6713 }
  0xad   : > { %v7282_v6 = vpop.permute.xlu1 %1171  ;;  %v1387_v29 = vmul.f32 %v6714_v36, %v912_v25 }
  0xae   : > { %1853 = vperm.xlu0 %6628, %v7205_v34   ;;  %v1177_v35 = vrot.slane %v7282_v6, %v7303_v39  ;;  %v6716_v36 = vpop.eup %6715 }
  0xaf   : > { %1808 = vperm.xlu1 %6557, %v7280_v5   ;;  %v7286_v60 = vpop.permute.xlu0 %1179 }
  0xb0   : > { %10654 = vst [vmem:[#allocation43_spill] sm:$0xff] %v7286_v60  ;;  %v7321_v60 = vld [vmem:[%s7151_s25 + $0x70] sm:$0xff] }
  0xb1   : > { %v7290_v54 = vpop.permute.xlu1 %1187 }
  0xb2   : > { %1863 = vperm.xlu0 %6628, %v7201_v30  }
  0xb3   : > { %1818 = vperm.xlu1 %6557, %v7173_v7   ;;  %v7294_v56 = vpop.permute.xlu0 %1211 }
  0xb4   : > { %10655 = vst [vmem:[#allocation44_spill] sm:$0xff] %v7294_v56  ;;  %v1000_v56 = vrot.slane %v999_v32, 2 }
  0xb5   : > { %v1220_v46 = vpop.permute.xlu1 %1219 }
  0xb6   : > { %1873 = vperm.xlu0 %6628, %v7218_v45   ;;  %v1225_v58 = vrot.slane %v1220_v46, %v7303_v39  ;;  %v1011_v46 = vsel %vm905_vm0, %v7205_v34, 0.0 }
  0xb7   : > { %1828 = vperm.xlu1 %6557, %v7297_v49   ;;  %v7306_v62 = vpop.permute.xlu0 %1227  ;;  %v1012_v23 = vrot.slane %v1011_v46, 4 }
  0xb8   : > { %10656 = vst [vmem:[#allocation45_spill] sm:$0xff] %v7306_v62  ;;  %v922_v62 = vadd.f32 %v921_v47, %v920_v43  ;;  %v985_v47 = vadd.f32 %v984_v33, %v983_v42  ;;  %6717 = vrcp.f32 %v1225_v58 }
  0xb9   : > { %v7312_v53 = vpop.permute.xlu1 %1235  ;;  %6719 = vrcp.f32 %v1177_v35  ;;  %v1013_v25 = vadd.f32 %v1012_v23, %v1011_v46 }
  0xba   : > { %1883 = vperm.xlu0 %6628, %v7226_v52   ;;  %v923_v43 = vrot.slane %v922_v62, 2  ;;  %v986_v42 = vrot.slane %v985_v47, 2  ;;  %v1241_v6 = vrot.slane %v7312_v53, %v7303_v39  ;;  %v7380_v53 = vsub.f32 %v7164_v0, %v1387_v29 }
  0xbb   : > { %1838 = vperm.xlu1 %6557, %v7309_v61   ;;  %v7318_v59 = vpop.permute.xlu0 %1243  ;;  %v1001_v29 = vadd.f32 %v1000_v56, %v999_v32  ;;  %v1014_v10 = vrot.slane %v1013_v25, 2  ;;  %v1095_v56 = vsel %vm905_vm0, %v7241_v14, 0.0 }
  0xbc   : > { %10657 = vst [vmem:[#allocation46_spill] sm:$0xff] %v7318_v59  ;;  %v924_v33 = vadd.f32 %v923_v43, %v922_v62  ;;  %v7361_v43 = vld [vmem:[%s7151_s25 + $0xa0] sm:$0xff]  ;;  %v944_v59 = vrot.slane %v943_v11, 2  ;;  %10662 = vst [vmem:[#allocation51_spill] sm:$0xff] %v7380_v53  ;;  %6721 = vrcp.f32 %v1241_v6 }
  0xbd   : > { %v7323_v26 = vpop.permute.xlu1 %1251 }
  0xbe   : > { %1893 = vperm.xlu0 %6628, %v7234_v2   ;;  %v925_v57 = vrot.slane %v924_v33, 1  ;;  %v945_v16 = vadd.f32 %v944_v59, %v943_v11  ;;  %v1032_v59 = vsel %vm905_vm0, %v7346_v18, 0.0 }
  0xbf   : > { %1848 = vperm.xlu1 %6557, %v7321_v60   ;;  %v7331_v1 = vpop.permute.xlu0 %1259  ;;  %v1033_v6 = vrot.slane %v1032_v59, 4 }
  0xc0   : > { %v926_v20 = vadd.f32 %v925_v57, %v924_v33  ;;  %v7390_v57 = vld [vmem:[%s7151_s25 + $0xc0] sm:$0xff] }
  0xc1   : > { %v7338_v17 = vpop.permute.xlu1 %1267 }
  0xc2   : > { %10658 = vst [vmem:[#allocation47_spill] sm:$0xff] %v7338_v17  ;;  %1903 = vperm.xlu0 %6628, %v7209_v37   ;;  %v955_v17 = vsel %vm905_vm0, %v7182_v12, 0.0  ;;  %v1391_v23 = vmul.f32 %v6716_v36, %v926_v20  ;;  %v6718_v15 = vpop.eup %6717  ;;  %v1002_v36 = vrot.slane %v1001_v29, 1 }
  0xc3   : > { %1858 = vperm.xlu1 %6557, %v7334_v22   ;;  %v7343_v50 = vpop.permute.xlu0 %1275  ;;  %v956_v51 = vrot.slane %v955_v17, 4 }
  0xc5   : > { %v7350_v24 = vpop.permute.xlu1 %1283 }
  0xc6   : > { %10659 = vst [vmem:[#allocation48_spill] sm:$0xff] %v7350_v24  ;;  %1913 = vperm.xlu0 %6628, %v7241_v14   ;;  %v987_v24 = vadd.f32 %v986_v42, %v985_v47  ;;  %v1018_v47 = vsel %vm905_vm0, %v7334_v22, 0.0  ;;  %v7374_v42 = vld [vmem:[%s7151_s25 + $0xb0] sm:$0xff] }
  0xc7   : > { %1868 = vperm.xlu1 %6557, %v7346_v18   ;;  %v7358_v62 = vpop.permute.xlu0 %1291 }
  0xc8   : > { %10660 = vst [vmem:[#allocation49_spill] sm:$0xff] %v7358_v62  ;;  %v957_v62 = vadd.f32 %v956_v51, %v955_v17  ;;  %v988_v28 = vrot.slane %v987_v24, 1  ;;  %v1019_v17 = vrot.slane %v1018_v47, 4  ;;  %v1193_v51 = vrot.slane %v7290_v54, %v7303_v39 }
  0xc9   : > { %v7363_v40 = vpop.permute.xlu1 %1299 }
  0xca   : > { %1923 = vperm.xlu0 %6628, %v7230_v55   ;;  %v958_v11 = vrot.slane %v957_v62, 2  ;;  %v989_v46 = vadd.f32 %v988_v28, %v987_v24  ;;  %v1020_v54 = vadd.f32 %v1019_v17, %v1018_v47  ;;  %6723 = vrcp.f32 %v1193_v51  ;;  %v6720_v47 = vpop.eup %6719 }
  0xcb   : > { %1878 = vperm.xlu1 %6557, %v7361_v43   ;;  %v7369_v58 = vpop.permute.xlu0 %1307  ;;  %v7403_v24 = vsub.f32 %v7265_v27, %v1391_v23  ;;  %v1265_v17 = vrot.slane %v7331_v1, %v7303_v39 }
  0xcc   : > { %10661 = vst [vmem:[#allocation50_spill] sm:$0xff] %v7369_v58  ;;  %v946_v58 = vrot.slane %v945_v16, 1  ;;  %v959_v20 = vadd.f32 %v958_v11, %v957_v62  ;;  %v1409_v32 = vmul.f32 %v6718_v15, %v989_v46  ;;  %v1096_v62 = vrot.slane %v1095_v56, 4 }
  0xcd   : > { %v7376_v35 = vpop.permute.xlu1 %1315  ;;  %10666 = vst [vmem:[#allocation55_spill] sm:$0xff] %v7403_v24  ;;  %v1053_v11 = vsel %vm905_vm0, %v7226_v52, 0.0 }
  0xce   : > { %1933 = vperm.xlu0 %6628, %v7249_v38   ;;  %v947_v28 = vadd.f32 %v946_v58, %v945_v16  ;;  %v960_v16 = vrot.slane %v959_v20, 1  ;;  %v7414_v58 = vsub.f32 %v7186_v13, %v1409_v32  ;;  %v1054_v46 = vrot.slane %v1053_v11, 4 }
  0xcf   : > { %1888 = vperm.xlu1 %6557, %v7374_v42   ;;  %v7385_v33 = vpop.permute.xlu0 %1323 }
  0xd0   : > { %10663 = vst [vmem:[#allocation52_spill] sm:$0xff] %v7385_v33  ;;  %v1257_v33 = vrot.slane %v7323_v26, %v7303_v39  ;;  %v1015_v26 = vadd.f32 %v1014_v10, %v1013_v25  ;;  %10668 = vst [vmem:[#allocation57_spill] sm:$0xff] %v7414_v58  ;;  %v1397_v1 = vmul.f32 %v6720_v47, %v947_v28  ;;  %v6722_v25 = vpop.eup %6721  ;;  %v1514_v47 = vmul.f32 0.5, %v7164_v0 }
  0xd1   : > { %v7392_v4 = vpop.permute.xlu1 %1331  ;;  %v1003_v10 = vadd.f32 %v1002_v36, %v1001_v29  ;;  %v961_v28 = vadd.f32 %v960_v16, %v959_v20  ;;  %v7428_v36 = vld [vmem:[%s7151_s25 + $0xf0] sm:$0xff]  ;;  %v1067_v0 = vsel %vm905_vm0, %v7234_v2, 0.0 }
  0xd2   : > { %10664 = vst [vmem:[#allocation53_spill] sm:$0xff] %v7392_v4  ;;  %2657 = vperm.xlu0 %6628, %v7380_v53   ;;  %v1021_v4 = vrot.slane %v1020_v54, 2  ;;  %6725 = vrcp.f32 %v1257_v33  ;;  %v1016_v33 = vrot.slane %v1015_v26, 1  ;;  %v1097_v53 = vadd.f32 %v1096_v62, %v1095_v56  ;;  %10671 = vst [vmem:[#allocation60_spill] sm:$0xff] %v7428_v36 }
  0xd3   : > { %1898 = vperm.xlu1 %6557, %v7390_v57   ;;  %v7398_v8 = vpop.permute.xlu0 %1339  ;;  %6727 = vrcp.f32 %v1265_v17  ;;  %v7425_v29 = vsub.f32 %v7177_v9, %v1397_v1  ;;  %v1109_v17 = vsel %vm905_vm0, %v7230_v55, 0.0 }
  0xd4   : > { %10665 = vst [vmem:[#allocation54_spill] sm:$0xff] %v7398_v8  ;;  %v1034_v8 = vadd.f32 %v1033_v6, %v1032_v59  ;;  %v1281_v59 = vrot.slane %v7343_v50, %v7303_v39  ;;  %v1022_v6 = vadd.f32 %v1021_v4, %v1020_v54  ;;  %v1413_v50 = vmul.f32 %v6722_v25, %v1003_v10 }
  0xd5   : > { %v1348_v51 = vpop.permute.xlu1 %1347  ;;  %10670 = vst [vmem:[#allocation59_spill] sm:$0xff] %v7425_v29  ;;  %v1055_v54 = vadd.f32 %v1054_v46, %v1053_v11  ;;  %v1017_v56 = vadd.f32 %v1016_v33, %v1015_v26  ;;  %v1098_v16 = vrot.slane %v1097_v53, 2  ;;  %v1110_v10 = vrot.slane %v1109_v17, 4 }
  0xd6   : > { %2665 = vperm.xlu0 %6628, %v7403_v24   ;;  %6729 = vrcp.f32 %v1281_v59  ;;  %v1023_v20 = vrot.slane %v1022_v6, 1  ;;  %v1353_v1 = vrot.slane %v1348_v51, %v7303_v39  ;;  %v7443_v59 = vsub.f32 %v7194_v21, %v1413_v50 }
  0xd7   : > { %1908 = vperm.xlu1 %6557, %v7214_v41   ;;  %v7411_v15 = vpop.permute.xlu0 %1355  ;;  %v1546_v11 = vadd.f32 0.5, %v1514_v47  ;;  %v1516_v26 = vmul.f32 0.5, %v7265_v27  ;;  %v1068_v24 = vrot.slane %v1067_v0, 4  ;;  %v10498_v50 = vmov 2  }
  0xd8   : > { %10667 = vst [vmem:[#allocation56_spill] sm:$0xff] %v7411_v15  ;;  %v1035_v15 = vrot.slane %v1034_v8, 2  ;;  %v1024_v51 = vadd.f32 %v1023_v20, %v1022_v6  ;;  %6731 = vrcp.f32 %v1353_v1 }
  0xd9   : > { %v7418_v23 = vpop.permute.xlu1 %1363 }
  0xda   : > { %2701 = vperm.xlu0 %6628, %v7414_v58   ;;  %v6724_v58 = vpop.eup %6723  ;;  %v1036_v62 = vadd.f32 %v1035_v15, %v1034_v8  ;;  %v1056_v15 = vrot.slane %v1055_v54, 2 }
  0xdb   : > { %1918 = vperm.xlu1 %6557, %v7222_v48   ;;  %v7422_v32 = vpop.permute.xlu0 %1371  ;;  %v1401_v46 = vmul.f32 %v6724_v58, %v961_v28  ;;  %v1111_v58 = vadd.f32 %v1110_v10, %v1109_v17  ;;  %v1123_v28 = vsel %vm905_vm0, %v7249_v38, 0.0  ;;  %v1069_v10 = vadd.f32 %v1068_v24, %v1067_v0 }
  0xdc   : > { %10669 = vst [vmem:[#allocation58_spill] sm:$0xff] %v7422_v32  ;;  %v6726_v33 = vpop.eup %6725  ;;  %v1037_v32 = vrot.slane %v1036_v62, 1  ;;  %v1057_v17 = vadd.f32 %v1056_v15, %v1055_v54 }
  0xdd   : > { %v7433_v4 = vpop.permute.xlu1 %1379  ;;  %v7457_v6 = vsub.f32 %v7182_v12, %v1401_v46  ;;  %v1417_v20 = vmul.f32 %v6726_v33, %v1017_v56  ;;  %v1124_v46 = vrot.slane %v1123_v28, 4  ;;  %v1519_v33 = vmul.f32 0.5, %v7177_v9 }
  0xde   : > { %2677 = vperm.xlu0 %6628, %v7425_v29   ;;  %v1099_v29 = vadd.f32 %v1098_v16, %v1097_v53  ;;  %v1548_v53 = vadd.f32 0.5, %v1516_v26  ;;  %v1517_v16 = vmul.f32 0.5, %v7168_v3  ;;  %v1038_v1 = vadd.f32 %v1037_v32, %v1036_v62 }
  0xdf   : > { %1928 = vperm.xlu1 %6557, %v7428_v36   ;;  %v6728_v36 = vpop.eup %6727  ;;  %v7468_v3 = vsub.f32 %v7205_v34, %v1417_v20  ;;  %v1070_v54 = vrot.slane %v1069_v10, 2  ;;  %v1321_v62 = vrot.slane %v7376_v35, %v7303_v39  ;;  %v1551_v9 = vadd.f32 0.5, %v1519_v33 }
  0xe0   : > { %v7440_v25 = vpop.permute.xlu0 %2233  ;;  %v1549_v56 = vadd.f32 0.5, %v1517_v16  ;;  %v1058_v20 = vrot.slane %v1057_v17, 1 }
  0xe1   : > { %10672 = vst [vmem:[#allocation61_spill] sm:$0xff] %v7440_v25  ;;  %v7446_v8 = vpop.permute.xlu1 %1587  ;;  %v1305_v25 = vrot.slane %v7363_v40, %v7303_v39  ;;  %v1419_v40 = vmul.f32 %v6728_v36, %v1024_v51  ;;  %v1100_v36 = vrot.slane %v1099_v29, 1  ;;  %v1521_v51 = vmul.f32 0.5, %v7182_v12 }
  0xe2   : > { %10673 = vst [vmem:[#allocation62_spill] sm:$0xff] %v7446_v8  ;;  %2709 = vperm.xlu0 %6628, %v7443_v59   ;;  %v1071_v35 = vadd.f32 %v1070_v54, %v1069_v10 }
  0xe3   : > { %6558 = vset.pattern.permute.xlu1 %v10498_v50  ;;  %v6730_v50 = vpop.eup %6729  ;;  %6733 = vrcp.f32 %v1305_v25  ;;  %v7475_v24 = vsub.f32 %v7334_v22, %v1419_v40  ;;  %v1125_v25 = vadd.f32 %v1124_v46, %v1123_v28  ;;  %v1553_v12 = vadd.f32 0.5, %v1521_v51 }
  0xe4   : > { %2006 = vperm.xlu1 %6558, %v1546_v11   ;;  %v7454_v47 = vpop.permute.xlu0 %2265  ;;  %v1369_v11 = vrot.slane %v7418_v23, %v7303_v39  ;;  %v1423_v23 = vmul.f32 %v6730_v50, %v1038_v1  ;;  %v6732_v16 = vpop.eup %6731  ;;  %v1523_v1 = vmul.f32 0.5, %v7190_v19  ;;  %v1072_v33 = vrot.slane %v1071_v35, 1 }
  0xe5   : > { %10674 = vst [vmem:[#allocation63_spill] sm:$0xff] %v7454_v47  ;;  %v7460_v8 = vpop.permute.xlu1 %1597  ;;  %v1112_v47 = vrot.slane %v1111_v58, 2 }
  0xe6   : > { %10675 = vst [vmem:[#allocation64_spill] sm:$0xff] %v7460_v8  ;;  %2685 = vperm.xlu0 %6628, %v7457_v6   ;;  %6735 = vrcp.f32 %v1369_v11  ;;  %v7486_v50 = vsub.f32 %v7346_v18, %v1423_v23  ;;  %v1059_v11 = vadd.f32 %v1058_v20, %v1057_v17  ;;  %v1555_v54 = vadd.f32 0.5, %v1523_v1 }
  0xe7   : > { %v1113_v0 = vadd.f32 %v1112_v47, %v1111_v58  ;;  %6737 = vrcp.f32 %v1321_v62  ;;  %v1385_v58 = vrot.slane %v7433_v4, %v7303_v39  ;;  %v1126_v47 = vrot.slane %v1125_v25, 2 }
  0xe8   : > { %2016 = vperm.xlu1 %6558, %v1548_v53   ;;  %v7465_v26 = vpop.permute.xlu0 %2245  ;;  %v1101_v53 = vadd.f32 %v1100_v36, %v1099_v29  ;;  %10680 = vst [vmem:[#allocation69_spill] sm:$0xff] %v7486_v50 }
  0xe9   : > { %10676 = vst [vmem:[#allocation65_spill] sm:$0xff] %v7465_v26  ;;  %v7471_v32 = vpop.permute.xlu1 %1607  ;;  %v1114_v28 = vrot.slane %v1113_v0, 1  ;;  %6739 = vrcp.f32 %v1385_v58  ;;  %v1127_v36 = vadd.f32 %v1126_v47, %v1125_v25 }
  0xea   : > { %10677 = vst [vmem:[#allocation66_spill] sm:$0xff] %v7471_v32  ;;  %2717 = vperm.xlu0 %6628, %v7468_v3   ;;  %v1441_v29 = vmul.f32 %v6732_v16, %v1101_v53  ;;  %v1073_v53 = vadd.f32 %v1072_v33, %v1071_v35 }
  0xeb   : > { %v1115_v10 = vadd.f32 %v1114_v28, %v1113_v0  ;;  %v1128_v20 = vrot.slane %v1127_v36, 1  ;;  %v1527_v28 = vmul.f32 0.5, %v7194_v21 }
  0xec   : > { %2021 = vperm.xlu1 %6558, %v1549_v56   ;;  %v7479_v15 = vpop.permute.xlu0 %2277  ;;  %v7499_v23 = vsub.f32 %v7241_v14, %v1441_v29 }
  0xed   : > { %10678 = vst [vmem:[#allocation67_spill] sm:$0xff] %v7479_v15  ;;  %v7482_v26 = vpop.permute.xlu1 %1617  ;;  %v6734_v46 = vpop.eup %6733  ;;  %v1559_v1 = vadd.f32 0.5, %v1527_v28 }
  0xee   : > { %10679 = vst [vmem:[#allocation68_spill] sm:$0xff] %v7482_v26  ;;  %2721 = vperm.xlu0 %6628, %v7475_v24   ;;  %10684 = vst [vmem:[#allocation73_spill] sm:$0xff] %v7499_v23  ;;  %v1429_v62 = vmul.f32 %v6734_v46, %v1059_v11  ;;  %v1529_v46 = vmul.f32 0.5, %v7205_v34  ;;  %v1515_v34 = vmul.f32 0.5, %v7159_v63 }
  0xf0   : > { %2031 = vperm.xlu1 %6558, %v1551_v9   ;;  %v7490_v40 = vpop.permute.xlu0 %2285  ;;  %v1525_v9 = vmul.f32 0.5, %v7186_v13  ;;  %v6736_v17 = vpop.eup %6735  ;;  %v7508_v25 = vsub.f32 %v7226_v52, %v1429_v62  ;;  %v1129_v13 = vadd.f32 %v1128_v20, %v1127_v36 }
  0xf1   : > { %10681 = vst [vmem:[#allocation70_spill] sm:$0xff] %v7490_v40  ;;  %v7493_v56 = vpop.permute.xlu1 %1627  ;;  %v1445_v58 = vmul.f32 %v6736_v17, %v1115_v10  ;;  %v6738_v47 = vpop.eup %6737 }
  0xf2   : > { %10682 = vst [vmem:[#allocation71_spill] sm:$0xff] %v7493_v56  ;;  %2729 = vperm.xlu0 %6628, %v7486_v50   ;;  %10687 = vst [vmem:[#allocation76_spill] sm:$0xff] %v7508_v25  ;;  %v1557_v16 = vadd.f32 0.5, %v1525_v9  ;;  %v1433_v11 = vmul.f32 %v6738_v47, %v1073_v53  ;;  %v1531_v9 = vmul.f32 0.5, %v7201_v30  ;;  %v1547_v30 = vadd.f32 0.5, %v1515_v34 }
  0xf3   : > { %v7517_v35 = vsub.f32 %v7230_v55, %v1445_v58  ;;  %v6740_v33 = vpop.eup %6739  ;;  %v1533_v58 = vmul.f32 0.5, %v7218_v45  ;;  %v1518_v47 = vmul.f32 0.5, %v7271_v44  ;;  %v1520_v45 = vmul.f32 0.5, %v7280_v5 }
  0xf4   : > { %2041 = vperm.xlu1 %6558, %v1553_v12   ;;  %v7496_v4 = vpop.permute.xlu0 %2261  ;;  %v7526_v36 = vsub.f32 %v7234_v2, %v1433_v11  ;;  %v1449_v62 = vmul.f32 %v6740_v33, %v1129_v13  ;;  %v1535_v11 = vmul.f32 0.5, %v7226_v52  ;;  %v10700_v33 = vmov 2  }
  0xf5   : > { %10683 = vst [vmem:[#allocation72_spill] sm:$0xff] %v7496_v4  ;;  %v7502_v51 = vpop.permute.xlu1 %1637  ;;  %10690 = vst [vmem:[#allocation79_spill] sm:$0xff] %v7517_v35  ;;  %v1537_v34 = vmul.f32 0.5, %v7234_v2  ;;  %v1522_v52 = vmul.f32 0.5, %v7173_v7  ;;  %v10762_v4 = vld [vmem:[#allocation59_spill] sm:$0xff] }
  0xf6   : > { %10685 = vst [vmem:[#allocation74_spill] sm:$0xff] %v7502_v51  ;;  %2765 = vperm.xlu0 %6628, %v7499_v23   ;;  %10693 = vst [vmem:[#allocation82_spill] sm:$0xff] %v7526_v36  ;;  %v7536_v20 = vsub.f32 %v7249_v38, %v1449_v62 }
  0xf7   : > { %v1554_v5 = vadd.f32 0.5, %v1522_v52 }
  0xf8   : > { %2051 = vperm.xlu1 %6558, %v1555_v54   ;;  %v7505_v0 = vpop.permute.xlu0 %2301  ;;  %v1561_v54 = vadd.f32 0.5, %v1529_v46  ;;  %10696 = vst [vmem:[#allocation85_spill] sm:$0xff] %v7536_v20 }
  0xf9   : > { %10686 = vst [vmem:[#allocation75_spill] sm:$0xff] %v7505_v0  ;;  %v7511_v12 = vpop.permute.xlu1 %1647  ;;  %v1539_v0 = vmul.f32 0.5, %v7209_v37 }
  0xfa   : > { %10688 = vst [vmem:[#allocation77_spill] sm:$0xff] %v7511_v12  ;;  %2741 = vperm.xlu0 %6628, %v7508_v25  }
  0xfb   : > { %v1571_v2 = vadd.f32 0.5, %v1539_v0  ;;  %v913_v0 = vsel %vm905_vm0, %v7159_v63, 0.0 }
  0xfc   : > { %2061 = vperm.xlu1 %6558, %v1557_v16   ;;  %v7514_v29 = vpop.permute.xlu0 %2333  ;;  %v1563_v16 = vadd.f32 0.5, %v1531_v9  ;;  %v1567_v9 = vadd.f32 0.5, %v1535_v11  ;;  %v1541_v11 = vmul.f32 0.5, %v7241_v14 }
  0xfd   : > { %10689 = vst [vmem:[#allocation78_spill] sm:$0xff] %v7514_v29  ;;  %v7520_v10 = vpop.permute.xlu1 %1657 }
  0xfe   : > { %10691 = vst [vmem:[#allocation80_spill] sm:$0xff] %v7520_v10  ;;  %2773 = vperm.xlu0 %6628, %v7517_v35  }
 0x100   : > { %2071 = vperm.xlu1 %6558, %v1559_v1   ;;  %v7523_v21 = vpop.permute.xlu0 %2337  ;;  %v1565_v1 = vadd.f32 0.5, %v1533_v58  ;;  %v1552_v58 = vadd.f32 0.5, %v1520_v45 }
 0x101   : > { %10692 = vst [vmem:[#allocation81_spill] sm:$0xff] %v7523_v21  ;;  %v7529_v17 = vpop.permute.xlu1 %1667 }
 0x102   : > { %10694 = vst [vmem:[#allocation83_spill] sm:$0xff] %v7529_v17  ;;  %2749 = vperm.xlu0 %6628, %v7526_v36   ;;  %v914_v17 = vrot.slane %v913_v0, 4  ;;  %v10726_v36 = vld [vmem:[#allocation8_spill] sm:$0xff] }
 0x104   : > { %2081 = vperm.xlu1 %6558, %v1561_v54   ;;  %v7533_v53 = vpop.permute.xlu0 %2345  ;;  %v1550_v54 = vadd.f32 0.5, %v1518_v47 }
 0x105   : > { %10695 = vst [vmem:[#allocation84_spill] sm:$0xff] %v7533_v53  ;;  %v7539_v28 = vpop.permute.xlu1 %1677 }
 0x106   : > { %10697 = vst [vmem:[#allocation86_spill] sm:$0xff] %v7539_v28  ;;  %2781 = vperm.xlu0 %6628, %v7536_v20  }
 0x108   : > { %2091 = vperm.xlu1 %6558, %v1563_v16   ;;  %v7543_v13 = vpop.permute.xlu0 %2349 }
 0x109   : > { %10698 = vst [vmem:[#allocation87_spill] sm:$0xff] %v7543_v13  ;;  %v7546_v46 = vpop.permute.xlu1 %1687  ;;  %v1569_v13 = vadd.f32 0.5, %v1537_v34  ;;  %v1526_v34 = vmul.f32 0.5, %v7309_v61 }
 0x10a   : > { %10699 = vst [vmem:[#allocation88_spill] sm:$0xff] %v7546_v46  ;;  %6651 = vset.pattern.permute.xlu0 %v10700_v33  ;;  %v915_v46 = vadd.f32 %v914_v17, %v913_v0  ;;  %v1534_v17 = vmul.f32 0.5, %v7361_v43  ;;  %v962_v0 = vsel %vm905_vm0, %v7173_v7, 0.0  ;;  %v1536_v43 = vmul.f32 0.5, %v7374_v42  ;;  %v10720_v42 = vld [vmem:[#allocation39_spill] sm:$0xff] }
 0x10b   : > { %2011 = vperm.xlu0 %6651, %v1547_v30   ;;  %v1558_v14 = vadd.f32 0.5, %v1526_v34 }
 0x10c   : > { %2101 = vperm.xlu1 %6558, %v1565_v1   ;;  %v7550_v62 = vpop.permute.xlu0 %2325  ;;  %v1524_v1 = vmul.f32 0.5, %v7297_v49  ;;  %v1568_v29 = vadd.f32 0.5, %v1536_v43 }
 0x10d   : > { %10701 = vst [vmem:[#allocation89_spill] sm:$0xff] %v7550_v62  ;;  %v7553_v16 = vpop.permute.xlu1 %1697  ;;  %v1573_v62 = vadd.f32 0.5, %v1541_v11 }
 0x10e   : > { %10702 = vst [vmem:[#allocation90_spill] sm:$0xff] %v7553_v16  ;;  %v1543_v16 = vmul.f32 0.5, %v7230_v55 }
 0x10f   : > { %2026 = vperm.xlu0 %6651, %v1550_v54  }
 0x110   : > { %2111 = vperm.xlu1 %6558, %v1567_v9   ;;  %v1556_v9 = vadd.f32 0.5, %v1524_v1  ;;  %v1545_v1 = vmul.f32 0.5, %v7249_v38 }
 0x111   : > { %v7557_v30 = vpop.permute.xlu1 %1707  ;;  %v7559_v47 = vpop.permute.xlu0 %1778 }
 0x112   : > { %10703 = vst [vmem:[#allocation91_spill] sm:$0xff] %v7557_v30  ;;  %10704 = vst [vmem:[#allocation92_spill] sm:$0xff] %v7559_v47  ;;  %v1577_v53 = vadd.f32 0.5, %v1545_v1  ;;  %v969_v1 = vsel %vm905_vm0, %v7190_v19, 0.0  ;;  %v1538_v30 = vmul.f32 0.5, %v7390_v57  ;;  %v10723_v57 = vld [vmem:[#allocation40_spill] sm:$0xff] }
 0x113   : > { %2036 = vperm.xlu0 %6651, %v1552_v58   ;;  %v970_v7 = vrot.slane %v969_v1, 4 }
 0x114   : > { %2121 = vperm.xlu1 %6558, %v1569_v13   ;;  %v1528_v13 = vmul.f32 0.5, %v7321_v60 }
 0x115   : > { %v7563_v54 = vpop.permute.xlu1 %1717  ;;  %v7565_v45 = vpop.permute.xlu0 %1793 }
 0x116   : > { %10705 = vst [vmem:[#allocation93_spill] sm:$0xff] %v7563_v54  ;;  %10706 = vst [vmem:[#allocation94_spill] sm:$0xff] %v7565_v45  ;;  %v1560_v55 = vadd.f32 0.5, %v1528_v13  ;;  %v1201_v54 = vrot.slane %v10720_v42, %v7303_v39 }
 0x117   : > { %2046 = vperm.xlu0 %6651, %v1554_v5   ;;  %v1575_v5 = vadd.f32 0.5, %v1543_v16  ;;  %v1532_v16 = vmul.f32 0.5, %v7346_v18 }
 0x118   : > { %2131 = vperm.xlu1 %6558, %v1571_v2  }
 0x119   : > { %v7569_v58 = vpop.permute.xlu1 %1727  ;;  %v7571_v52 = vpop.permute.xlu0 %1803 }
 0x11a   : > { %10707 = vst [vmem:[#allocation95_spill] sm:$0xff] %v7569_v58  ;;  %10708 = vst [vmem:[#allocation96_spill] sm:$0xff] %v7571_v52  ;;  %v1530_v58 = vmul.f32 0.5, %v7334_v22  ;;  %v1564_v22 = vadd.f32 0.5, %v1532_v16  ;;  %v976_v16 = vsel %vm905_vm0, %v7297_v49, 0.0 }
 0x11b   : > { %2056 = vperm.xlu0 %6651, %v1556_v9   ;;  %v977_v28 = vrot.slane %v976_v16, 4 }
 0x11c   : > { %2141 = vperm.xlu1 %6558, %v1573_v62   ;;  %v1145_v62 = vrot.slane %v7268_v31, %v7303_v39  ;;  %v1562_v38 = vadd.f32 0.5, %v1530_v58 }
 0x11d   : > { %v7577_v2 = vpop.permute.xlu1 %1737  ;;  %v7579_v11 = vpop.permute.xlu0 %1813 }
 0x11e   : > { %10709 = vst [vmem:[#allocation97_spill] sm:$0xff] %v7577_v2  ;;  %10710 = vst [vmem:[#allocation98_spill] sm:$0xff] %v7579_v11  ;;  %v916_v2 = vrot.slane %v915_v46, 2  ;;  %6741 = vrcp.f32 %v1145_v62 }
 0x11f   : > { %2066 = vperm.xlu0 %6651, %v1558_v14   ;;  %6743 = vrcp.f32 %v1201_v54 }
 0x120   : > { %2151 = vperm.xlu1 %6558, %v1575_v5   ;;  %v10715_v5 = vmov 3   ;;  %v917_v31 = vadd.f32 %v916_v2, %v915_v46 }
 0x121   : > { %v7582_v9 = vpop.permute.xlu0 %1823 }
 0x122   : > { %10711 = vst [vmem:[#allocation99_spill] sm:$0xff] %v7582_v9  ;;  %v7584_v34 = vpop.permute.xlu1 %1783  ;;  %v918_v62 = vrot.slane %v917_v31, 1 }
 0x123   : > { %10712 = vst [vmem:[#allocation100_spill] sm:$0xff] %v7584_v34  ;;  %2076 = vperm.xlu0 %6651, %v1560_v55   ;;  %v1566_v55 = vadd.f32 0.5, %v1534_v17 }
 0x124   : > { %2161 = vperm.xlu1 %6558, %v1577_v53   ;;  %v963_v53 = vrot.slane %v962_v0, 4 }
 0x125   : > { %v7589_v14 = vpop.permute.xlu0 %1833 }
 0x126   : > { %10713 = vst [vmem:[#allocation101_spill] sm:$0xff] %v7589_v14  ;;  %v7591_v13 = vpop.permute.xlu1 %1788  ;;  %v964_v2 = vadd.f32 %v963_v53, %v962_v0  ;;  %v1570_v53 = vadd.f32 0.5, %v1538_v30  ;;  %v10725_v30 = vld [vmem:[#allocation5_spill] sm:$0xff] }
 0x127   : > { %10714 = vst [vmem:[#allocation102_spill] sm:$0xff] %v7591_v13  ;;  %2086 = vperm.xlu0 %6651, %v1562_v38  }
 0x128   : > { %6560 = vset.pattern.permute.xlu1 %v10715_v5  ;;  %v6742_v17 = vpop.eup %6741  ;;  %v965_v0 = vrot.slane %v964_v2, 2 }
 0x129   : > { %v7597_v58 = vpop.permute.xlu0 %1843  ;;  %2237 = vperm.xlu1 %6560, %v7159_v63  }
 0x12a   : > { %10716 = vst [vmem:[#allocation103_spill] sm:$0xff] %v7597_v58  ;;  %v7600_v18 = vpop.permute.xlu1 %1798 }
 0x12b   : > { %10717 = vst [vmem:[#allocation104_spill] sm:$0xff] %v7600_v18  ;;  %2096 = vperm.xlu0 %6651, %v1564_v22   ;;  %v919_v22 = vadd.f32 %v918_v62, %v917_v31  ;;  %v1209_v31 = vrot.slane %v10723_v57, %v7303_v39  ;;  %v660_v57 = vrot.slane %v10726_v36, %v7303_v39 }
 0x12d   : > { %v7605_v38 = vpop.permute.xlu0 %1853  ;;  %2241 = vperm.xlu1 %6560, %v7265_v27   ;;  %v971_v27 = vadd.f32 %v970_v7, %v969_v1  ;;  %v1389_v43 = vmul.f32 %v6742_v17, %v919_v22  ;;  %v1004_v1 = vsel %vm905_vm0, %v7321_v60, 0.0  ;;  %v1542_v22 = vmul.f32 0.5, %v7222_v48  ;;  %v10727_v17 = vld [vmem:[#allocation44_spill] sm:$0xff]  ;;  %v10731_v48 = vld [vmem:[#allocation9_spill] sm:$0xff] }
 0x12e   : > { %10718 = vst [vmem:[#allocation105_spill] sm:$0xff] %v7605_v38  ;;  %v7608_v46 = vpop.permute.xlu1 %1808  ;;  %6745 = vrcp.f32 %v1209_v31  ;;  %v10732_v31 = vld [vmem:[#allocation60_spill] sm:$0xff] }
 0x12f   : > { %10719 = vst [vmem:[#allocation106_spill] sm:$0xff] %v7608_v46  ;;  %2106 = vperm.xlu0 %6651, %v1566_v55   ;;  %v1540_v55 = vmul.f32 0.5, %v7214_v41  ;;  %v972_v42 = vrot.slane %v971_v27, 2 }
 0x131   : > { %v7615_v21 = vpop.permute.xlu0 %1863  ;;  %2269 = vperm.xlu1 %6560, %v7190_v19   ;;  %v978_v19 = vadd.f32 %v977_v28, %v976_v16  ;;  %v1572_v54 = vadd.f32 0.5, %v1540_v55  ;;  %v1217_v28 = vrot.slane %v10727_v17, %v7303_v39  ;;  %v7639_v16 = vsub.f32 %v7159_v63, %v1389_v43 }
 0x132   : > { %10721 = vst [vmem:[#allocation39_spill] sm:$0xff] %v7615_v21  ;;  %v7618_v20 = vpop.permute.xlu1 %1818  ;;  %v7631_v21 = vcvt.s32.f32 %v10725_v30  ;;  %v1574_v55 = vadd.f32 0.5, %v1542_v22  ;;  %v1544_v63 = vmul.f32 0.5, %v10732_v31  ;;  %v6744_v22 = vpop.eup %6743 }
 0x133   : > { %10722 = vst [vmem:[#allocation107_spill] sm:$0xff] %v7618_v20  ;;  %2116 = vperm.xlu0 %6651, %v1568_v29   ;;  %v966_v29 = vadd.f32 %v965_v0, %v964_v2  ;;  %v10729_v2 = vmov 0   ;;  %v973_v0 = vadd.f32 %v972_v42, %v971_v27  ;;  %v979_v23 = vrot.slane %v978_v19, 2  ;;  %v10733_v42 = vld [vmem:[#allocation18_spill] sm:$0xff] }
 0x134   : > { %vm811_vm1 = vcmp.lt.f32.partialorder %v7631_v21, %v660_v57  ;;  %6747 = vrcp.f32 %v1217_v28  ;;  %v1081_v27 = vsel %vm905_vm0, %v7209_v37, 0.0  ;;  %v696_v17 = vrot.slane %v10733_v42, %v7303_v39 }
 0x135   : > { %v7623_v62 = vpop.permute.xlu0 %1873  ;;  %2273 = vperm.xlu1 %6560, %v7297_v49   ;;  %v967_v36 = vrot.slane %v966_v29, 1  ;;  %v980_v46 = vadd.f32 %v979_v23, %v978_v19  ;;  %v1082_v28 = vrot.slane %v1081_v27, 4  ;;  %v10737_v23 = vld [vmem:[#allocation46_spill] sm:$0xff] }
 0x136   : > { %10724 = vst [vmem:[#allocation40_spill] sm:$0xff] %v7623_v62  ;;  %v7628_v7 = vpop.permute.xlu1 %1828  ;;  %v1005_v62 = vrot.slane %v1004_v1, 4  ;;  %v1249_v19 = vrot.slane %v10737_v23, %v7303_v39  ;;  %vm7672_vm3 = vcmp.lt.f32.partialorder %v7631_v21, %v696_v17  ;;  %v10742_v23 = vld [vmem:[#allocation21_spill] sm:$0xff] }
 0x137   : > { %2126 = vperm.xlu0 %6651, %v1570_v53   ;;  %v684_v53 = vrot.slane %v10731_v48, %v7303_v39  ;;  %v10508_v48 = vmov 0.0   ;;  %v708_v13 = vrot.slane %v10742_v23, %v7303_v39  ;;  %v934_v23 = vsel %vm905_vm0, %v7271_v44, 0.0 }
 0x138   : > { %v1006_v43 = vadd.f32 %v1005_v62, %v1004_v1  ;;  %v7661_v57 = vsel %vm811_vm1, 1.0, %v10508_v48  ;;  %v10736_v62 = vld [vmem:[#allocation14_spill] sm:$0xff]  ;;  %v1576_v1 = vadd.f32 0.5, %v1544_v63  ;;  %v10741_v63 = vmov 0.0  }
 0x139   : > { %v7641_v35 = vpop.permute.xlu0 %1883  ;;  %6561 = vset.pattern.permute.xlu1 %v10729_v2  ;;  %v672_v37 = vrot.slane %v10736_v62, %v7303_v39  ;;  %vm817_vm2 = vcmp.lt.f32.partialorder %v7631_v21, %v684_v53  ;;  %6749 = vrcp.f32 %v1249_v19  ;;  %vm7705_vm5 = vcmp.lt.f32.partialorder %v7631_v21, %v708_v13  ;;  %v10752_v19 = vld [vmem:[#allocation53_spill] sm:$0xff] }
 0x13a   : > { %10728 = vst [vmem:[#allocation5_spill] sm:$0xff] %v7641_v35  ;;  %v7644_v20 = vpop.permute.xlu1 %1838  ;;  %2435 = vperm.xlu1 %6561, %v7639_v16   ;;  %v1007_v42 = vrot.slane %v1006_v43, 2  ;;  %v935_v13 = vrot.slane %v934_v23, 4 }
 0x13b   : > { %10730 = vst [vmem:[#allocation8_spill] sm:$0xff] %v7644_v20  ;;  %2136 = vperm.xlu0 %6651, %v1572_v54   ;;  %v974_v20 = vrot.slane %v973_v0, 1  ;;  %v968_v54 = vadd.f32 %v967_v36, %v966_v29  ;;  %v1088_v29 = vsel %vm905_vm0, %v7214_v41, 0.0  ;;  %v10743_v41 = vld [vmem:[#allocation22_spill] sm:$0xff]  ;;  %vm814_vm4 = vcmp.lt.f32.partialorder %v7631_v21, %v672_v37 }
 0x13c   : > { %v712_v38 = vrot.slane %v10743_v41, %v7303_v39  ;;  %v1008_v14 = vadd.f32 %v1007_v42, %v1006_v43  ;;  %v7697_v58 = vsel %vm814_vm4, 1.0, %v10741_v63  ;;  %v1337_v42 = vrot.slane %v10752_v19, %v7303_v39 }
 0x13d   : > { %v7655_v35 = vpop.permute.xlu0 %1893  ;;  %v975_v48 = vadd.f32 %v974_v20, %v973_v0  ;;  %v1403_v17 = vmul.f32 %v6744_v22, %v968_v54  ;;  %v1083_v20 = vadd.f32 %v1082_v28, %v1081_v27  ;;  %v1089_v0 = vrot.slane %v1088_v29, 4  ;;  %v10751_v28 = vld [vmem:[#allocation51_spill] sm:$0xff] }
 0x13e   : > { %10734 = vst [vmem:[#allocation44_spill] sm:$0xff] %v7655_v35  ;;  %v7657_v18 = vpop.permute.xlu1 %1848  ;;  %6562 = vset.pattern.permute.xlu1 %v10715_v5  ;;  %v7679_v35 = vsel %vm817_vm2, 1.0, %v10741_v63  ;;  %v7702_v27 = vsel %vm7672_vm3, 1.0, %v10741_v63  ;;  %vm7710_vm6 = vcmp.lt.f32.partialorder %v7631_v21, %v712_v38  ;;  %v1009_v38 = vrot.slane %v1008_v14, 1 }
 0x13f   : > { %10735 = vst [vmem:[#allocation9_spill] sm:$0xff] %v7657_v18  ;;  %2249 = vperm.xlu1 %6562, %v7271_v44   ;;  %2146 = vperm.xlu0 %6651, %v1574_v55   ;;  %v981_v55 = vrot.slane %v980_v46, 1  ;;  %v6746_v18 = vpop.eup %6745  ;;  %v1084_v36 = vrot.slane %v1083_v20, 2  ;;  %v7736_v37 = vsel %vm7705_vm5, 1.0, %v10741_v63  ;;  %v7741_v19 = vsel %vm7710_vm6, 1.0, %v10741_v63  ;;  %v6779_v44 = vld [vmem:[%s7151_s25 + $0x28] sm:$0xff] }
 0x140   : > { %v1405_v54 = vmul.f32 %v6746_v18, %v975_v48  ;;  %6751 = vrcp.f32 %v1337_v42  ;;  %v1010_v11 = vadd.f32 %v1009_v38, %v1008_v14 }
 0x141   : > { %v7676_v62 = vpop.permute.xlu0 %1903  ;;  %v982_v22 = vadd.f32 %v981_v55, %v980_v46  ;;  %v7717_v46 = vld [vmem:[%s7151_s25 + $0x40] sm:$0xff]  ;;  %v1090_v55 = vadd.f32 %v1089_v0, %v1088_v29  ;;  %v1116_v29 = vsel %vm905_vm0, %v10732_v31, 0.0  ;;  %v936_v0 = vadd.f32 %v935_v13, %v934_v23  ;;  %v10756_v23 = vld [vmem:[#allocation42_spill] sm:$0xff] }
 0x142   : > { %10740 = vst [vmem:[#allocation60_spill] sm:$0xff] %v7676_v62  ;;  %v7685_v53 = vpop.permute.xlu1 %1858  ;;  %v10745_v62 = vld [vmem:[#allocation55_spill] sm:$0xff]  ;;  %v7720_v48 = vsub.f32 %v7717_v46, %v1403_v17  ;;  %v1169_v13 = vrot.slane %v10756_v23, %v7303_v39 }
 0x143   : > { %10744 = vst [vmem:[#allocation18_spill] sm:$0xff] %v7685_v53  ;;  %6563 = vset.pattern.permute.xlu1 %v10729_v2  ;;  %2156 = vperm.xlu0 %6651, %v1576_v1   ;;  %v6748_v1 = vpop.eup %6747  ;;  %v6778_v53 = vld [vmem:[%s7151_s25 + $0x48] sm:$0xff]  ;;  %v1091_v10 = vrot.slane %v1090_v55, 2 }
 0x144   : > { %2440 = vperm.xlu1 %6563, %v10745_v62   ;;  %v7731_v17 = vsub.f32 %v6778_v53, %v1405_v54  ;;  %v1407_v34 = vmul.f32 %v6748_v1, %v982_v22  ;;  %v10754_v54 = vld [vmem:[#allocation54_spill] sm:$0xff]  ;;  %v1085_v1 = vadd.f32 %v1084_v36, %v1083_v20  ;;  %v1117_v53 = vrot.slane %v1116_v29, 4  ;;  %v6750_v12 = vpop.eup %6749  ;;  %v10759_v20 = vld [vmem:[#allocation11_spill] sm:$0xff] }
 0x145   : > { %v7694_v41 = vpop.permute.xlu0 %1913  ;;  %v1345_v22 = vrot.slane %v10754_v54, %v7303_v39  ;;  %v10758_v54 = vld [vmem:[#allocation7_spill] sm:$0xff]  ;;  %v656_v36 = vrot.slane %v10759_v20, %v7303_v39  ;;  %v1415_v14 = vmul.f32 %v6750_v12, %v1010_v11  ;;  %v1092_v38 = vadd.f32 %v1091_v10, %v1090_v55 }
 0x146   : > { %10746 = vst [vmem:[#allocation14_spill] sm:$0xff] %v7694_v41  ;;  %v7714_v18 = vpop.permute.xlu1 %1868  ;;  %v652_v51 = vrot.slane %v10758_v54, %v7303_v39  ;;  %v1118_v23 = vadd.f32 %v1117_v53, %v1116_v29  ;;  %v10769_v29 = vld [vmem:[#allocation12_spill] sm:$0xff] }
 0x147   : > { %2853 = vperm.xlu0 %6651, %v10751_v28   ;;  %6753 = vrcp.f32 %v1345_v22  ;;  %vm810_vm8 = vcmp.lt.f32.partialorder %v7631_v21, %v656_v36  ;;  %v10763_v22 = vld [vmem:[#allocation58_spill] sm:$0xff]  ;;  %v7788_v11 = vsub.f32 %v7321_v60, %v1415_v14 }
 0x148   : > { %2470 = vperm.xlu1 %6563, %v7720_v48   ;;  %6755 = vrcp.f32 %v1169_v13  ;;  %vm809_vm7 = vcmp.lt.f32.partialorder %v7631_v21, %v652_v51  ;;  %v1377_v20 = vrot.slane %v10763_v22, %v7303_v39  ;;  %v7782_v12 = vsel %vm810_vm8, 1.0, %v10741_v63 }
 0x149   : > { %v7728_v41 = vpop.permute.xlu0 %1923  ;;  %v1093_v51 = vrot.slane %v1092_v38, 1  ;;  %v1119_v55 = vrot.slane %v1118_v23, 2  ;;  %v10768_v22 = vmov 1  }
 0x14a   : > { %10753 = vst [vmem:[#allocation46_spill] sm:$0xff] %v7728_v41  ;;  %v7743_v9 = vpop.permute.xlu1 %1878  ;;  %v7757_v41 = vsub.f32 %v7297_v49, %v1407_v34  ;;  %v1086_v49 = vrot.slane %v1085_v1, 1  ;;  %v6752_v53 = vpop.eup %6751  ;;  %6757 = vrcp.f32 %v1377_v20 }
 0x14b   : > { %2889 = vperm.xlu0 %6651, %v7731_v17   ;;  %v1094_v60 = vadd.f32 %v1093_v51, %v1092_v38  ;;  %v6780_v51 = vld [vmem:[%s7151_s25 + $0xc8] sm:$0xff] }
 0x14c   : > { %6564 = vset.pattern.permute.xlu1 %v10715_v5  ;;  %v1087_v40 = vadd.f32 %v1086_v49, %v1085_v1 }
 0x14d   : > { %v7753_v43 = vpop.permute.xlu0 %1933  ;;  %2253 = vperm.xlu1 %6564, %v6779_v44   ;;  %v937_v44 = vrot.slane %v936_v0, 2 }
 0x14e   : > { %10755 = vst [vmem:[#allocation21_spill] sm:$0xff] %v7753_v43  ;;  %v7761_v42 = vpop.permute.xlu1 %1888  ;;  %v1437_v36 = vmul.f32 %v6752_v53, %v1087_v40  ;;  %v10770_v40 = vld [vmem:[#allocation10_spill] sm:$0xff] }
 0x14f   : > { %10757 = vst [vmem:[#allocation22_spill] sm:$0xff] %v7761_v42  ;;  %2893 = vperm.xlu0 %6651, %v7757_v41   ;;  %v938_v54 = vadd.f32 %v937_v44, %v936_v0  ;;  %v1120_v44 = vadd.f32 %v1119_v55, %v1118_v23  ;;  %v688_v38 = vrot.slane %v10770_v40, %v7303_v39  ;;  %v7822_v40 = vld [vmem:[%s7151_s25 + $0x18] sm:$0xff] }
 0x150   : > { %v7810_v55 = vsub.f32 %v6780_v51, %v1437_v36  ;;  %v927_v36 = vsel %vm905_vm0, %v7822_v40, 0.0 }
 0x151   : > { %2281 = vperm.xlu1 %6564, %v7309_v61   ;;  %v7769_v34 = vpop.permute.xlu0 %2657  ;;  %v7779_v61 = vsel %vm809_vm7, 1.0, %v10741_v63  ;;  %v939_v1 = vrot.slane %v938_v54, 1  ;;  %v6754_v49 = vpop.eup %6753  ;;  %vm818_vm10 = vcmp.lt.f32.partialorder %v7631_v21, %v688_v38  ;;  %v928_v26 = vrot.slane %v927_v36, 4 }
 0x152   : > { %10760 = vst [vmem:[#allocation55_spill] sm:$0xff] %v7769_v34  ;;  %v7771_v43 = vpop.permute.xlu1 %1898  ;;  %v6756_v34 = vpop.eup %6755  ;;  %10772 = vst [vmem:[#allocation59_spill] sm:$0xff] %v7810_v55  ;;  %v1439_v53 = vmul.f32 %v6754_v49, %v1094_v60  ;;  %v7829_v49 = vld [vmem:[%s7151_s25 + $0xd0] sm:$0xff] }
 0x153   : > { %10761 = vst [vmem:[#allocation51_spill] sm:$0xff] %v7771_v43  ;;  %2873 = vperm.xlu0 %6651, %v10762_v4   ;;  %v940_v20 = vadd.f32 %v939_v1, %v938_v54  ;;  %v7818_v1 = vld [vmem:[%s7151_s25 + $0x30] sm:$0xff]  ;;  %v929_v52 = vadd.f32 %v928_v26, %v927_v36  ;;  %v6785_v26 = vld [vmem:[%s7151_s25] sm:$0xff] }
 0x154   : > { %v1482_v36 = vmul.f32 0.025, %v6785_v26 }
 0x155   : > { %6565 = vset.pattern.permute.xlu1 %v10729_v2  ;;  %v7785_v10 = vpop.permute.xlu0 %2665  ;;  %v1395_v54 = vmul.f32 %v6756_v34, %v940_v20  ;;  %v6758_v34 = vpop.eup %6757 }
 0x156   : > { %10764 = vst [vmem:[#allocation53_spill] sm:$0xff] %v7785_v10  ;;  %v7792_v0 = vpop.permute.xlu1 %1908  ;;  %2480 = vperm.xlu1 %6565, %v7757_v41   ;;  %v664_v10 = vrot.slane %v10769_v29, %v7303_v39 }
 0x157   : > { %10765 = vst [vmem:[#allocation54_spill] sm:$0xff] %v7792_v0  ;;  %2909 = vperm.xlu0 %6651, %v7788_v11  }
 0x158   : > { %vm812_vm9 = vcmp.lt.f32.partialorder %v7631_v21, %v664_v10  ;;  %v7832_v10 = vsub.f32 %v7829_v49, %v1439_v53 }
 0x159   : > { %v7796_v13 = vpop.permute.xlu0 %2701  ;;  %v7836_v20 = vsel %vm812_vm9, 1.0, %v10741_v63 }
 0x15a   : > { %10766 = vst [vmem:[#allocation42_spill] sm:$0xff] %v7796_v13  ;;  %v7798_v14 = vpop.permute.xlu1 %1918  ;;  %6566 = vset.pattern.permute.xlu1 %v10768_v22  ;;  %v1121_v13 = vrot.slane %v1120_v44, 1  ;;  %10775 = vst [vmem:[#allocation10_spill] sm:$0xff] %v7832_v10 }
 0x15b   : > { %10767 = vst [vmem:[#allocation7_spill] sm:$0xff] %v7798_v14  ;;  %2661 = vperm.xlu1 %6566, %v7639_v16   ;;  %2917 = vperm.xlu0 %6651, %v7475_v24  }
 0x15c   : > { %v1122_v51 = vadd.f32 %v1121_v13, %v1120_v44  ;;  %v10777_v44 = vld [vmem:[#allocation17_spill] sm:$0xff] }
 0x15d   : > { %v7807_v23 = vpop.permute.xlu0 %2677  ;;  %v692_v38 = vrot.slane %v10777_v44, %v7303_v39  ;;  %v10781_v13 = vld [vmem:[#allocation57_spill] sm:$0xff] }
 0x15e   : > { %10771 = vst [vmem:[#allocation11_spill] sm:$0xff] %v7807_v23  ;;  %v7812_v29 = vpop.permute.xlu1 %1928  ;;  %v7839_v23 = vsel %vm818_vm10, 1.0, %v10741_v63 }
 0x15f   : > { %10773 = vst [vmem:[#allocation58_spill] sm:$0xff] %v7812_v29  ;;  %6567 = vset.pattern.permute.xlu1 %v10715_v5  ;;  %2953 = vperm.xlu0 %6651, %v7810_v55   ;;  %vm819_vm11 = vcmp.lt.f32.partialorder %v7631_v21, %v692_v38 }
 0x160   : > { %2257 = vperm.xlu1 %6567, %v7818_v1  }
 0x161   : > { %v7826_v60 = vpop.permute.xlu0 %2709 }
 0x162   : > { %10774 = vst [vmem:[#allocation12_spill] sm:$0xff] %v7826_v60  ;;  %v6784_v60 = vld [vmem:[%s7151_s25 + $0x20] sm:$0xff] }
 0x163   : > { %v7841_v29 = vpop.permute.xlu1 %2006  ;;  %2957 = vperm.xlu0 %6651, %v7832_v10   ;;  %v7845_v56 = vsub.f32 %v6784_v60, %v1395_v54  ;;  %v10779_v10 = vld [vmem:[#allocation13_spill] sm:$0xff] }
 0x164   : > { %10776 = vst [vmem:[#allocation108_spill] sm:$0xff] %v7841_v29  ;;  %6568 = vset.pattern.permute.xlu1 %v10729_v2  ;;  %v1447_v29 = vmul.f32 %v6758_v34, %v1122_v51  ;;  %v668_v14 = vrot.slane %v10779_v10, %v7303_v39  ;;  %v930_v10 = vrot.slane %v929_v52, 2 }
 0x165   : > { %2450 = vperm.xlu1 %6568, %v7845_v56   ;;  %v7853_v53 = vpop.permute.xlu0 %2685 }
 0x166   : > { %10778 = vst [vmem:[#allocation17_spill] sm:$0xff] %v7853_v53  ;;  %v7865_v44 = vsub.f32 %v10732_v31, %v1447_v29  ;;  %v10784_v53 = vld [vmem:[#allocation41_spill] sm:$0xff]  ;;  %vm813_vm12 = vcmp.lt.f32.partialorder %v7631_v21, %v668_v14  ;;  %v10787_v14 = vld [vmem:[#allocation15_spill] sm:$0xff] }
 0x167   : > { %v7857_v54 = vpop.permute.xlu1 %2016  ;;  %2937 = vperm.xlu0 %6651, %v7508_v25   ;;  %v1161_v51 = vrot.slane %v10784_v53, %v7303_v39  ;;  %v7875_v38 = vsel %vm813_vm12, 1.0, %v10741_v63  ;;  %v7878_v25 = vsel %vm819_vm11, 1.0, %v10741_v63  ;;  %v676_v53 = vrot.slane %v10787_v14, %v7303_v39 }
 0x168   : > { %10780 = vst [vmem:[#allocation13_spill] sm:$0xff] %v7857_v54  ;;  %10783 = vst [vmem:[#allocation109_spill] sm:$0xff] %v7865_v44 }
 0x169   : > { %2485 = vperm.xlu1 %6568, %v10781_v13   ;;  %v7862_v45 = vpop.permute.xlu0 %2717  ;;  %6759 = vrcp.f32 %v1161_v51  ;;  %vm815_vm13 = vcmp.lt.f32.partialorder %v7631_v21, %v676_v53  ;;  %v10791_v51 = vld [vmem:[#allocation16_spill] sm:$0xff] }
 0x16a   : > { %10782 = vst [vmem:[#allocation57_spill] sm:$0xff] %v7862_v45  ;;  %v6786_v45 = vld [vmem:[%s7151_s25 + $0x10] sm:$0xff]  ;;  %v680_v14 = vrot.slane %v10791_v51, %v7303_v39 }
 0x16b   : > { %v7869_v34 = vpop.permute.xlu1 %2021  ;;  %2973 = vperm.xlu0 %6651, %v7865_v44   ;;  %v931_v44 = vadd.f32 %v930_v10, %v929_v52  ;;  %v1484_v54 = vmul.f32 0.025, %v6786_v45  ;;  %v1486_v52 = vmul.f32 0.025, %v6784_v60  ;;  %v10793_v45 = vld [vmem:[#allocation20_spill] sm:$0xff]  ;;  %v6787_v51 = vld [vmem:[%s7151_s25 + $0x70] sm:$0xff] }
 0x16c   : > { %10785 = vst [vmem:[#allocation41_spill] sm:$0xff] %v7869_v34  ;;  %v10789_v34 = vld [vmem:[#allocation19_spill] sm:$0xff]  ;;  %v704_v10 = vrot.slane %v10793_v45, %v7303_v39  ;;  %vm816_vm15 = vcmp.lt.f32.partialorder %v7631_v21, %v680_v14 }
 0x16d   : > { %6569 = vset.pattern.permute.xlu1 %v10768_v22  ;;  %v7881_v31 = vpop.permute.xlu0 %2721 }
 0x16e   : > { %10786 = vst [vmem:[#allocation110_spill] sm:$0xff] %v7881_v31  ;;  %2689 = vperm.xlu1 %6569, %v7720_v48   ;;  %v700_v31 = vrot.slane %v10789_v34, %v7303_v39  ;;  %v7909_v34 = vsel %vm815_vm13, 1.0, %v10741_v63  ;;  %vm822_vm1 = vcmp.lt.f32.partialorder %v7631_v21, %v704_v10  ;;  %v1490_v10 = vmul.f32 0.025, %v7717_v46  ;;  %v7952_v46 = vld [vmem:[%s7151_s25 + $0x60] sm:$0xff] }
 0x16f   : > { %v7888_v26 = vpop.permute.xlu1 %2031  ;;  %6660 = vset.pattern.permute.xlu0 %v10729_v2  ;;  %v7928_v14 = vsel %vm822_vm1, 1.0, %v10741_v63 }
 0x170   : > { %10788 = vst [vmem:[#allocation15_spill] sm:$0xff] %v7888_v26  ;;  %1582 = vperm.xlu0 %6660, %v1482_v36   ;;  %v932_v26 = vrot.slane %v931_v44, 1  ;;  %vm821_vm14 = vcmp.lt.f32.partialorder %v7631_v21, %v700_v31  ;;  %v1488_v31 = vmul.f32 0.025, %v7818_v1 }
 0x171   : > { %v7894_v15 = vpop.permute.xlu0 %2729  ;;  %v7912_v53 = vsel %vm821_vm14, 1.0, %v10741_v63  ;;  %vm3311_vm14 = vcmask 130048  }
 0x172   : > { %10790 = vst [vmem:[#allocation19_spill] sm:$0xff] %v7894_v15  ;;  %2693 = vperm.xlu1 %6569, %v7731_v17  }
 0x173   : > { %v7900_v29 = vpop.permute.xlu1 %2041 }
 0x174   : > { %10792 = vst [vmem:[#allocation16_spill] sm:$0xff] %v7900_v29  ;;  %1592 = vperm.xlu0 %6660, %v1484_v54   ;;  %v933_v54 = vadd.f32 %v932_v26, %v931_v44  ;;  %v7925_v29 = vsel %vm816_vm15, 1.0, %v10741_v63 }
 0x175   : > { %v7904_v36 = vpop.permute.xlu0 %2765 }
 0x176   : > { %10794 = vst [vmem:[#allocation20_spill] sm:$0xff] %v7904_v36  ;;  %6570 = vset.pattern.permute.xlu1 %v10715_v5  ;;  %v6760_v36 = vpop.eup %6759 }
 0x177   : > { %2289 = vperm.xlu1 %6570, %v6787_v51   ;;  %v7916_v60 = vpop.permute.xlu1 %2051  ;;  %v1393_v26 = vmul.f32 %v6760_v36, %v933_v54  ;;  %v6788_v36 = vld [vmem:[%s7151_s25 + $0x50] sm:$0xff] }
 0x178   : > { %10795 = vst [vmem:[#allocation111_spill] sm:$0xff] %v7916_v60  ;;  %1602 = vperm.xlu0 %6660, %v1486_v52   ;;  %v1492_v54 = vmul.f32 0.025, %v6788_v36 }
 0x179   : > { %v7921_v15 = vpop.permute.xlu0 %2741  ;;  %v7942_v60 = vsub.f32 %v7822_v40, %v1393_v26 }
 0x17a   : > { %10796 = vst [vmem:[#allocation112_spill] sm:$0xff] %v7921_v15 }
 0x17b   : > { %6571 = vset.pattern.permute.xlu1 %v10729_v2  ;;  %v7931_v44 = vpop.permute.xlu1 %2061 }
 0x17c   : > { %10797 = vst [vmem:[#allocation113_spill] sm:$0xff] %v7931_v44  ;;  %2455 = vperm.xlu1 %6571, %v10762_v4   ;;  %1612 = vperm.xlu0 %6660, %v1488_v31   ;;  %v1494_v31 = vmul.f32 0.025, %v7952_v46 }
 0x17d   : > { %v7937_v45 = vpop.permute.xlu0 %2773 }
 0x17e   : > { %10798 = vst [vmem:[#allocation114_spill] sm:$0xff] %v7937_v45  ;;  %v7979_v45 = vld [vmem:[%s7151_s25 + $0x90] sm:$0xff] }
 0x17f   : > { %v7939_v15 = vpop.permute.xlu1 %2071 }
 0x180   : > { %10799 = vst [vmem:[#allocation115_spill] sm:$0xff] %v7939_v15  ;;  %6572 = vset.pattern.permute.xlu1 %v10768_v22  ;;  %1622 = vperm.xlu0 %6660, %v1490_v10   ;;  %v1496_v10 = vmul.f32 0.025, %v6787_v51  ;;  %v10812_v15 = vld [vmem:[#allocation45_spill] sm:$0xff] }
 0x181   : > { %2669 = vperm.xlu1 %6572, %v7942_v60   ;;  %v7947_v52 = vpop.permute.xlu0 %2749 }
 0x182   : > { %10800 = vst [vmem:[#allocation116_spill] sm:$0xff] %v7947_v52  ;;  %v7967_v52 = vld [vmem:[%s7151_s25 + $0x80] sm:$0xff] }
 0x183   : > { %v7949_v4 = vpop.permute.xlu1 %2081 }
 0x184   : > { %10801 = vst [vmem:[#allocation117_spill] sm:$0xff] %v7949_v4  ;;  %1632 = vperm.xlu0 %6660, %v1492_v54  }
 0x185   : > { %2697 = vperm.xlu1 %6572, %v7757_v41   ;;  %v7956_v40 = vpop.permute.xlu0 %2781  ;;  %v1498_v41 = vmul.f32 0.025, %v7967_v52 }
 0x186   : > { %10802 = vst [vmem:[#allocation118_spill] sm:$0xff] %v7956_v40 }
 0x187   : > { %v7958_v26 = vpop.permute.xlu1 %2091 }
 0x188   : > { %10803 = vst [vmem:[#allocation119_spill] sm:$0xff] %v7958_v26  ;;  %1642 = vperm.xlu0 %6660, %v1494_v31   ;;  %v6791_v31 = vld [vmem:[%s7151_s25 + $0x78] sm:$0xff] }
 0x189   : > { %6573 = vset.pattern.permute.xlu1 %v10700_v33 }
 0x18a   : > { %2857 = vperm.xlu1 %6573, %v7639_v16   ;;  %v7962_v36 = vpop.permute.xlu0 %2011  ;;  %v990_v16 = vsel %vm905_vm0, %v7952_v46, 0.0 }
 0x18b   : > { %10804 = vst [vmem:[#allocation120_spill] sm:$0xff] %v7962_v36  ;;  %v7964_v54 = vpop.permute.xlu1 %2101 }
 0x18c   : > { %10805 = vst [vmem:[#allocation121_spill] sm:$0xff] %v7964_v54  ;;  %1652 = vperm.xlu0 %6660, %v1496_v10   ;;  %v1500_v10 = vmul.f32 0.025, %v7979_v45  ;;  %v991_v54 = vrot.slane %v990_v16, 4 }
 0x18e   : > { %6574 = vset.pattern.permute.xlu1 %v10715_v5  ;;  %v7971_v40 = vpop.permute.xlu0 %2026 }
 0x18f   : > { %10806 = vst [vmem:[#allocation122_spill] sm:$0xff] %v7971_v40  ;;  %2293 = vperm.xlu1 %6574, %v6791_v31   ;;  %v7974_v51 = vpop.permute.xlu1 %2111  ;;  %v7989_v31 = vld [vmem:[%s7151_s25 + $0xa0] sm:$0xff]  ;;  %v992_v40 = vadd.f32 %v991_v54, %v990_v16 }
 0x190   : > { %10807 = vst [vmem:[#allocation123_spill] sm:$0xff] %v7974_v51  ;;  %1662 = vperm.xlu0 %6660, %v1498_v41   ;;  %v1502_v41 = vmul.f32 0.025, %v7989_v31  ;;  %v8009_v54 = vld [vmem:[%s7151_s25 + $0xc0] sm:$0xff] }
 0x191   : > { %v993_v32 = vrot.slane %v992_v40, 2  ;;  %v1506_v16 = vmul.f32 0.025, %v8009_v54 }
 0x192   : > { %v7982_v26 = vpop.permute.xlu0 %2036 }
 0x193   : > { %10808 = vst [vmem:[#allocation124_spill] sm:$0xff] %v7982_v26  ;;  %6575 = vset.pattern.permute.xlu1 %v10729_v2  ;;  %v7985_v36 = vpop.permute.xlu1 %2121  ;;  %v7998_v26 = vld [vmem:[%s7151_s25 + $0xb0] sm:$0xff] }
 0x194   : > { %10809 = vst [vmem:[#allocation125_spill] sm:$0xff] %v7985_v36  ;;  %2495 = vperm.xlu1 %6575, %v7443_v59   ;;  %1672 = vperm.xlu0 %6660, %v1500_v10   ;;  %v1504_v36 = vmul.f32 0.025, %v7998_v26  ;;  %v1233_v10 = vrot.slane %v10812_v15, %v7303_v39  ;;  %v994_v15 = vadd.f32 %v993_v32, %v992_v40 }
 0x196   : > { %v7992_v51 = vpop.permute.xlu0 %2046  ;;  %6761 = vrcp.f32 %v1233_v10  ;;  %v995_v0 = vrot.slane %v994_v15, 1 }
 0x197   : > { %10810 = vst [vmem:[#allocation126_spill] sm:$0xff] %v7992_v51  ;;  %v7994_v4 = vpop.permute.xlu1 %2131 }
 0x198   : > { %10811 = vst [vmem:[#allocation127_spill] sm:$0xff] %v7994_v4  ;;  %6576 = vset.pattern.permute.xlu1 %v10768_v22  ;;  %1682 = vperm.xlu0 %6660, %v1502_v41   ;;  %v948_v4 = vsel %vm905_vm0, %v7818_v1, 0.0 }
 0x199   : > { %2673 = vperm.xlu1 %6576, %v7845_v56  }
 0x19a   : > { %v8004_v44 = vpop.permute.xlu0 %2056 }
 0x19b   : > { %v8006_v8 = vpop.permute.xlu1 %2141 }
 0x19c   : > { %10813 = vst [vmem:[#allocation45_spill] sm:$0xff] %v8006_v8  ;;  %1692 = vperm.xlu0 %6660, %v1504_v36   ;;  %v1508_v36 = vmul.f32 0.025, %v7829_v49  ;;  %v949_v8 = vrot.slane %v948_v4, 4  ;;  %v996_v49 = vadd.f32 %v995_v0, %v994_v15 }
 0x19d   : > { %6577 = vset.pattern.permute.xlu1 %v10700_v33 }
 0x19e   : > { %2861 = vperm.xlu1 %6577, %v10745_v62   ;;  %v8014_v41 = vpop.permute.xlu0 %2066  ;;  %v8027_v62 = vld [vmem:[%s7151_s25 + $0xe0] sm:$0xff]  ;;  %v950_v40 = vadd.f32 %v949_v8, %v948_v4 }
 0x19f   : > { %10814 = vst [vmem:[#allocation128_spill] sm:$0xff] %v8014_v41  ;;  %v8018_v51 = vpop.permute.xlu1 %2151  ;;  %v1510_v32 = vmul.f32 0.025, %v8027_v62 }
 0x1a0   : > { %10815 = vst [vmem:[#allocation129_spill] sm:$0xff] %v8018_v51  ;;  %1702 = vperm.xlu0 %6660, %v1506_v16   ;;  %v6762_v51 = vpop.eup %6761  ;;  %v951_v8 = vrot.slane %v950_v40, 2 }
 0x1a1   : > { %v1411_v43 = vmul.f32 %v6762_v51, %v996_v49 }
 0x1a2   : > { %2885 = vperm.xlu1 %6577, %v7720_v48   ;;  %v8022_v10 = vpop.permute.xlu0 %2076  ;;  %v10819_v48 = vld [vmem:[#allocation43_spill] sm:$0xff]  ;;  %v952_v15 = vadd.f32 %v951_v8, %v950_v40 }
 0x1a3   : > { %10816 = vst [vmem:[#allocation130_spill] sm:$0xff] %v8022_v10  ;;  %v8024_v47 = vpop.permute.xlu1 %2161  ;;  %v1185_v10 = vrot.slane %v10819_v48, %v7303_v39 }
 0x1a4   : > { %10817 = vst [vmem:[#allocation131_spill] sm:$0xff] %v8024_v47  ;;  %1712 = vperm.xlu0 %6660, %v1508_v36   ;;  %v8039_v36 = vld [vmem:[%s7151_s25 + $0xf0] sm:$0xff] }
 0x1a5   : > { %10821 = vst [vmem:[#allocation133_spill] sm:$0xff] %v8039_v36  ;;  %v1512_v47 = vmul.f32 0.025, %v8039_v36  ;;  %6763 = vrcp.f32 %v1185_v10 }
 0x1a6   : > { %6578 = vset.pattern.permute.xlu1 %v10729_v2  ;;  %v8031_v16 = vpop.permute.xlu0 %2086 }
 0x1a7   : > { %10818 = vst [vmem:[#allocation132_spill] sm:$0xff] %v8031_v16  ;;  %2465 = vperm.xlu1 %6578, %v7457_v6   ;;  %v8050_v16 = vsub.f32 %v7952_v46, %v1411_v43 }
 0x1a8   : > { %v8036_v41 = vpop.permute.xlu1 %2237  ;;  %1722 = vperm.xlu0 %6660, %v1510_v32   ;;  %v8054_v32 = vld [vmem:[%s7151_s25 + $0x88] sm:$0xff] }
 0x1a9   : > { %10820 = vst [vmem:[#allocation43_spill] sm:$0xff] %v8036_v41  ;;  %v1025_v36 = vsel %vm905_vm0, %v8054_v32, 0.0 }
 0x1aa   : > { %v8042_v4 = vpop.permute.xlu0 %2096  ;;  %v1026_v40 = vrot.slane %v1025_v36, 4 }
 0x1ab   : > { %2500 = vperm.xlu1 %6578, %v7788_v11  }
 0x1ac   : > { %v8045_v0 = vpop.permute.xlu1 %2241  ;;  %1732 = vperm.xlu0 %6660, %v1512_v47   ;;  %v953_v47 = vrot.slane %v952_v15, 1  ;;  %v1027_v41 = vadd.f32 %v1026_v40, %v1025_v36 }
 0x1ad   : > { %10822 = vst [vmem:[#allocation134_spill] sm:$0xff] %v8045_v0 }
 0x1ae   : > { %v8047_v48 = vpop.permute.xlu0 %2106  ;;  %v954_v46 = vadd.f32 %v953_v47, %v952_v15  ;;  %v1028_v42 = vrot.slane %v1027_v41, 2  ;;  %v1102_v15 = vsel %vm905_vm0, %v8027_v62, 0.0 }
 0x1af   : > { %6579 = vset.pattern.permute.xlu1 %v10768_v22  ;;  %v6764_v49 = vpop.eup %6763 }
 0x1b0   : > { %2705 = vperm.xlu1 %6579, %v8050_v16   ;;  %v8059_v51 = vpop.permute.xlu1 %2269  ;;  %2430 = vperm.xlu0 %6660, %v10751_v28   ;;  %v10826_v28 = vld [vmem:[#allocation47_spill] sm:$0xff]  ;;  %v1029_v40 = vadd.f32 %v1028_v42, %v1027_v41  ;;  %v10833_v42 = vpack.i.bf16 %v7679_v35, %v7661_v57  ;;  %v10834_v41 = vld [vmem:[#allocation56_spill] sm:$0xff]  ;;  %v10837_v35 = vld [vmem:[#allocation25_spill] sm:$0xff] }
 0x1b1   : > { %10823 = vst [vmem:[#allocation135_spill] sm:$0xff] %v8059_v51  ;;  %v1273_v51 = vrot.slane %v10826_v28, %v7303_v39  ;;  %v724_v57 = vrot.slane %v10837_v35, %v7303_v39 }
 0x1b2   : > { %v8062_v10 = vpop.permute.xlu0 %2116 }
 0x1b3   : > { %10824 = vst [vmem:[#allocation136_spill] sm:$0xff] %v8062_v10  ;;  %v1399_v10 = vmul.f32 %v6764_v49, %v954_v46  ;;  %6765 = vrcp.f32 %v1273_v51  ;;  %v1103_v46 = vrot.slane %v1102_v15, 4  ;;  %v1060_v49 = vsel %vm905_vm0, %v7998_v26, 0.0 }
 0x1b4   : > { %6580 = vset.pattern.permute.xlu1 %v10700_v33  ;;  %v8065_v43 = vpop.permute.xlu1 %2273  ;;  %2475 = vperm.xlu0 %6660, %v7731_v17   ;;  %v1030_v51 = vrot.slane %v1029_v40, 1  ;;  %vm827_vm2 = vcmp.lt.f32.partialorder %v7631_v21, %v724_v57 }
 0x1b5   : > { %2865 = vperm.xlu1 %6580, %v7942_v60  }
 0x1b6   : > { %v8069_v8 = vpop.permute.xlu0 %2126 }
 0x1b7   : > { %10825 = vst [vmem:[#allocation137_spill] sm:$0xff] %v8069_v8 }
 0x1b8   : > { %2445 = vperm.xlu0 %6660, %v7942_v60   ;;  %v8084_v60 = vsub.f32 %v7818_v1, %v1399_v10  ;;  %v1104_v1 = vadd.f32 %v1103_v46, %v1102_v15  ;;  %v1061_v10 = vrot.slane %v1060_v49, 4 }
 0x1b9   : > { %6581 = vset.pattern.permute.xlu1 %v10729_v2  ;;  %v8075_v0 = vpop.permute.xlu1 %2435 }
 0x1ba   : > { %10827 = vst [vmem:[#allocation47_spill] sm:$0xff] %v8075_v0  ;;  %2505 = vperm.xlu1 %6581, %v7468_v3   ;;  %v8078_v17 = vpop.permute.xlu0 %2136  ;;  %v1062_v8 = vadd.f32 %v1061_v10, %v1060_v49  ;;  %v10839_v10 = vld [vmem:[#allocation31_spill] sm:$0xff] }
 0x1bb   : > { %10828 = vst [vmem:[#allocation138_spill] sm:$0xff] %v8078_v17  ;;  %v1031_v17 = vadd.f32 %v1030_v51, %v1029_v40 }
 0x1bc   : > { %2490 = vperm.xlu0 %6660, %v8050_v16   ;;  %v1063_v51 = vrot.slane %v1062_v8, 2 }
 0x1bd   : > { %v6766_v15 = vpop.eup %6765 }
 0x1be   : > { %6582 = vset.pattern.permute.xlu1 %v10768_v22  ;;  %v8087_v36 = vpop.permute.xlu1 %2249  ;;  %v8089_v47 = vpop.permute.xlu0 %2146  ;;  %v1421_v40 = vmul.f32 %v6766_v15, %v1031_v17  ;;  %v1064_v15 = vadd.f32 %v1063_v51, %v1062_v8  ;;  %v10846_v8 = vld [vmem:[#allocation38_spill] sm:$0xff] }
 0x1bf   : > { %10829 = vst [vmem:[#allocation139_spill] sm:$0xff] %v8087_v36  ;;  %10830 = vst [vmem:[#allocation140_spill] sm:$0xff] %v8089_v47  ;;  %2681 = vperm.xlu1 %6582, %v8084_v60   ;;  %v1361_v36 = vrot.slane %v10834_v41, %v7303_v39 }
 0x1c0   : > { %2460 = vperm.xlu0 %6660, %v8084_v60   ;;  %v1065_v51 = vrot.slane %v1064_v15, 1 }
 0x1c1   : > { %6767 = vrcp.f32 %v1361_v36 }
 0x1c2   : > { %v8095_v28 = vpop.permute.xlu0 %2156 }
 0x1c3   : > { %10831 = vst [vmem:[#allocation141_spill] sm:$0xff] %v8095_v28  ;;  %6583 = vset.pattern.permute.xlu1 %v10700_v33  ;;  %v8098_v0 = vpop.permute.xlu1 %2440  ;;  %v1105_v28 = vrot.slane %v1104_v1, 2 }
 0x1c4   : > { %10832 = vst [vmem:[#allocation142_spill] sm:$0xff] %v8098_v0  ;;  %2869 = vperm.xlu1 %6583, %v7845_v56   ;;  %6662 = vperm.xlu0 %6660, %v10833_v42   ;;  %v10836_v56 = vpack.i.bf16 %v7697_v58, %v7702_v27  ;;  %v10838_v42 = vld [vmem:[#allocation50_spill] sm:$0xff]  ;;  %v10840_v58 = vpack.i.bf16 %v7741_v19, %v7736_v37  ;;  %v6133_v19 = vsel %vm827_vm2, 1.0, %v10741_v63 }
 0x1c5   : > { %v1313_v41 = vrot.slane %v10838_v42, %v7303_v39  ;;  %v1106_v49 = vadd.f32 %v1105_v28, %v1104_v1  ;;  %v10841_v27 = vld [vmem:[#allocation34_spill] sm:$0xff]  ;;  %v8135_v28 = vsub.f32 %v8054_v32, %v1421_v40  ;;  %v10845_v32 = vld [vmem:[#allocation37_spill] sm:$0xff]  ;;  %v776_v42 = vrot.slane %v10846_v8, %v7303_v39 }
 0x1c6   : > { %v8106_v47 = vpop.permute.xlu0 %2853  ;;  %v760_v36 = vrot.slane %v10841_v27, %v7303_v39  ;;  %v772_v57 = vrot.slane %v10845_v32, %v7303_v39  ;;  %v3536_v8 = vld [vmem:[%s10429_s5] sm:$0xff] }
 0x1c7   : > { %v8108_v46 = vpop.permute.xlu1 %2470  ;;  %6769 = vrcp.f32 %v1313_v41  ;;  %10842 = vst [vmem:[#allocation25_spill] sm:$0xff] %v8135_v28  ;;  %v1107_v1 = vrot.slane %v1106_v49, 1  ;;  %vm840_vm7 = vcmp.lt.f32.partialorder %v7631_v21, %v776_v42 }
 0x1c8   : > { %10835 = vst [vmem:[#allocation56_spill] sm:$0xff] %v8108_v46  ;;  %2897 = vperm.xlu1 %6583, %v10781_v13   ;;  %6667 = vperm.xlu0 %6660, %v10836_v56   ;;  %v748_v46 = vrot.slane %v10839_v10, %v7303_v39  ;;  %v10843_v56 = vld [vmem:[#allocation28_spill] sm:$0xff]  ;;  %vm836_vm4 = vcmp.lt.f32.partialorder %v7631_v21, %v760_v36  ;;  %v6146_v32 = vsel %vm840_vm7, 1.0, %v10741_v63  ;;  %vm3901_vm7 = vcmask 1045509  }
 0x1c9   : > { %v736_v35 = vrot.slane %v10843_v56, %v7303_v39  ;;  %v1108_v40 = vadd.f32 %v1107_v1, %v1106_v49  ;;  %v6142_v27 = vsel %vm836_vm4, 1.0, %v10741_v63  ;;  %vm839_vm6 = vcmp.lt.f32.partialorder %v7631_v21, %v772_v57 }
 0x1ca   : > { %v8118_v0 = vpop.permute.xlu0 %2889  ;;  %vm833_vm3 = vcmp.lt.f32.partialorder %v7631_v21, %v748_v46  ;;  %v1066_v56 = vadd.f32 %v1065_v51, %v1064_v15  ;;  %v3537_v15 = vld [vmem:[%s10429_s5 + $0x8] sm:$0xff]  ;;  %vm3895_vm4 = vcmask 1042434  }
 0x1cb   : > { %v6768_v10 = vpop.eup %6767  ;;  %vm830_vm5 = vcmp.lt.f32.partialorder %v7631_v21, %v736_v35  ;;  %v6468_v51 = vpack.c.bf16 %v3537_v15, %v3536_v8  ;;  %v2166_v8 = vsub.s32 2, %v10725_v30  ;;  %v1578_v15 = vld [vmem:[%s10426_s2] sm:$0xf] }
 0x1cc   : > { %6584 = vset.pattern.permute.xlu1 %v10768_v22  ;;  %v8123_v13 = vpop.permute.xlu1 %2253  ;;  %6672 = vperm.xlu0 %6660, %v10840_v58   ;;  %v6136_v58 = vsel %vm830_vm5, 1.0, %v10741_v63  ;;  %v1443_v1 = vmul.f32 %v6768_v10, %v1108_v40  ;;  %vm3897_vm5 = vcmask 1043459  }
 0x1cd   : > { %2713 = vperm.xlu1 %6584, %v7788_v11   ;;  %v6139_v11 = vsel %vm833_vm3, 1.0, %v10741_v63  ;;  %6469 = vmatprep.subr.bf16.mxu0 %v6468_v51  ;;  %vm3893_vm3 = vcmask 1041409  }
 0x1ce   : > { %v8132_v17 = vpop.permute.xlu0 %2893  ;;  %v6676_v41 = vpack.i.bf16 %v6139_v11, %v6133_v19  ;;  %v10849_v19 = vpack.i.bf16 %v7782_v12, %v7779_v61  ;;  %v6145_v11 = vsel %vm839_vm6, 1.0, %v10741_v63  ;;  %v8182_v61 = vsub.f32 %v8027_v62, %v1443_v1  ;;  %6471 = vmatpush3.bf16.msra.mxu0 %v6468_v51 }
 0x1cf   : > { %v6704_v57 = vpack.i.bf16 %v6146_v32, %v6145_v11  ;;  %v10858_v1 = vpack.i.bf16 %v7836_v20, %v7839_v23  ;;  %v10863_v23 = vpack.i.bf16 %v7875_v38, %v7878_v25  ;;  %v10866_v25 = vpack.i.bf16 %v7909_v34, %v7912_v53 }
 0x1d0   : > { %v8140_v37 = vpop.permute.xlu1 %2281  ;;  %2515 = vperm.xlu0 %6660, %v8135_v28   ;;  %10852 = vst [vmem:[#allocation38_spill] sm:$0xff] %v8182_v61  ;;  %v1074_v53 = vsel %vm905_vm0, %v8009_v54, 0.0  ;;  %vm3899_vm6 = vcmask 1044484  }
 0x1d1   : > { %10844 = vst [vmem:[#allocation50_spill] sm:$0xff] %v8140_v37  ;;  %6585 = vset.pattern.permute.xlu1 %v10700_v33  ;;  %v6770_v35 = vpop.eup %6769  ;;  %v10918_v37 = vld [vmem:[#allocation140_spill] sm:$0xff] }
 0x1d2   : > { %2901 = vperm.xlu1 %6585, %v8050_v16   ;;  %v8152_v46 = vpop.permute.xlu0 %2873  ;;  %v6688_v16 = vpack.i.bf16 %v6136_v58, %v6142_v27  ;;  %v1431_v12 = vmul.f32 %v6770_v35, %v1066_v56 }
 0x1d3   : > { %10847 = vst [vmem:[#allocation31_spill] sm:$0xff] %v8152_v46 }
 0x1d4   : > { %2520 = vperm.xlu0 %6660, %v7486_v50   ;;  %v8190_v58 = vsub.f32 %v7998_v26, %v1431_v12 }
 0x1d5   : > { %v8160_v36 = vpop.permute.xlu1 %2480 }
 0x1d6   : > { %6586 = vset.pattern.permute.xlu1 %v10729_v2  ;;  %v8163_v49 = vpop.permute.xlu0 %2909  ;;  %10854 = vst [vmem:[#allocation144_spill] sm:$0xff] %v8190_v58 }
 0x1d7   : > { %10848 = vst [vmem:[#allocation34_spill] sm:$0xff] %v8163_v49  ;;  %6588 = vperm.xlu1 %6586, %v10849_v19   ;;  %v10914_v49 = vld [vmem:[#allocation67_spill] sm:$0xff] }
 0x1d8   : > { %2555 = vperm.xlu0 %6660, %v7810_v55  }
 0x1da   : > { %v8177_v42 = vpop.permute.xlu1 %2661  ;;  %v8179_v40 = vpop.permute.xlu0 %2917 }
 0x1db   : > { %10850 = vst [vmem:[#allocation28_spill] sm:$0xff] %v8177_v42  ;;  %10851 = vst [vmem:[#allocation37_spill] sm:$0xff] %v8179_v40  ;;  %6592 = vset.pattern.permute.xlu1 %v10700_v33 }
 0x1dc   : > { %2877 = vperm.xlu1 %6592, %v8084_v60   ;;  %2570 = vperm.xlu0 %6660, %v8182_v61  }
 0x1de   : > { %v8187_v10 = vpop.permute.xlu0 %2953 }
 0x1df   : > { %10853 = vst [vmem:[#allocation143_spill] sm:$0xff] %v8187_v10  ;;  %v8192_v27 = vpop.permute.xlu1 %2257  ;;  %v8268_v10 = vld [vmem:[%s7151_s25 + $0x98] sm:$0xff] }
 0x1e0   : > { %10855 = vst [vmem:[#allocation145_spill] sm:$0xff] %v8192_v27  ;;  %2905 = vperm.xlu1 %6592, %v7443_v59   ;;  %2540 = vperm.xlu0 %6660, %v8190_v58  }
 0x1e2   : > { %v8196_v62 = vpop.permute.xlu0 %2957 }
 0x1e3   : > { %10856 = vst [vmem:[#allocation146_spill] sm:$0xff] %v8196_v62 }
 0x1e4   : > { %6593 = vset.pattern.permute.xlu1 %v10729_v2  ;;  %v8199_v60 = vpop.permute.xlu1 %2450  ;;  %6677 = vperm.xlu0 %6660, %v6676_v41  }
 0x1e5   : > { %10857 = vst [vmem:[#allocation147_spill] sm:$0xff] %v8199_v60  ;;  %6595 = vperm.xlu1 %6593, %v10858_v1   ;;  %v8259_v1 = vrot.slane %v1578_v15, %v2166_v8 }
 0x1e6   : > { %v8204_v56 = vpop.permute.xlu0 %2937 }
 0x1e7   : > { %10859 = vst [vmem:[#allocation148_spill] sm:$0xff] %v8204_v56  ;;  %10871 = vst [vmem:[#allocation157_spill] sm:$0xff] %v8259_v1 }
 0x1e8   : > { %v8206_v35 = vpop.permute.xlu1 %2485  ;;  %6689 = vperm.xlu0 %6660, %v6688_v16  }
 0x1e9   : > { %10860 = vst [vmem:[#allocation149_spill] sm:$0xff] %v8206_v35  ;;  %6599 = vset.pattern.permute.xlu1 %v10700_v33 }
 0x1ea   : > { %2881 = vperm.xlu1 %6599, %v7457_v6   ;;  %v8210_v59 = vpop.permute.xlu0 %2973 }
 0x1eb   : > { %10861 = vst [vmem:[#allocation150_spill] sm:$0xff] %v8210_v59  ;;  %v2178_v59 = vmul.f32 %v8259_v1, %v8004_v44 }
 0x1ec   : > { %6705 = vperm.xlu0 %6660, %v6704_v57   ;;  %v10868_v57 = vpack.i.bf16 %v7925_v29, %v7928_v14  ;;  %v8254_v29 = vrot.slane %v1578_v15, %v7303_v39  ;;  %v2362_v14 = vsub.s32 3, %v10725_v30 }
 0x1ed   : > { %v8212_v19 = vpop.permute.xlu1 %2689 }
 0x1ee   : > { %10862 = vst [vmem:[#allocation151_spill] sm:$0xff] %v8212_v19  ;;  %6600 = vset.pattern.permute.xlu1 %v10729_v2  ;;  %v8272_v58 = vrot.slane %v1578_v15, %v2362_v14  ;;  %v10922_v19 = vld [vmem:[#allocation70_spill] sm:$0xff] }
 0x1ef   : > { %6602 = vperm.xlu1 %6600, %v10863_v23   ;;  %v8218_v20 = vpop.permute.xlu0 %1582 }
 0x1f0   : > { %v2374_v50 = vmul.f32 %v8272_v58, %v8065_v43 }
 0x1f1   : > { %v8220_v41 = vpop.permute.xlu1 %2693 }
 0x1f2   : > { %10864 = vst [vmem:[#allocation152_spill] sm:$0xff] %v8220_v41 }
 0x1f3   : > { %6606 = vset.pattern.permute.xlu1 %v10700_v33  ;;  %v8223_v16 = vpop.permute.xlu0 %1592 }
 0x1f4   : > { %2913 = vperm.xlu1 %6606, %v7468_v3   ;;  %v1938_v3 = vsub.s32 1, %v10725_v30  ;;  %v1039_v30 = vsel %vm905_vm0, %v8268_v10, 0.0 }
 0x1f5   : > { %v1040_v61 = vrot.slane %v1039_v30, 4 }
 0x1f6   : > { %v8226_v6 = vpop.permute.xlu1 %2289  ;;  %v8257_v51 = vrot.slane %v1578_v15, %v1938_v3 }
 0x1f7   : > { %10865 = vst [vmem:[#allocation153_spill] sm:$0xff] %v8226_v6  ;;  %v8228_v11 = vpop.permute.xlu0 %1602  ;;  %v1041_v60 = vadd.f32 %v1040_v61, %v1039_v30 }
 0x1f8   : > { %6607 = vset.pattern.permute.xlu1 %v10729_v2  ;;  %10870 = vst [vmem:[#allocation156_spill] sm:$0xff] %v8257_v51 }
 0x1f9   : > { %6609 = vperm.xlu1 %6607, %v10866_v25   ;;  %v1075_v25 = vrot.slane %v1074_v53, 4 }
 0x1fb   : > { %v8234_v38 = vpop.permute.xlu1 %2455  ;;  %v8236_v32 = vpop.permute.xlu0 %1612 }
 0x1fc   : > { %10867 = vst [vmem:[#allocation154_spill] sm:$0xff] %v8236_v32  ;;  %v10936_v32 = vld [vmem:[#allocation103_spill] sm:$0xff] }
 0x1fd   : > { %6614 = vperm.xlu1 %6607, %v10868_v57   ;;  %v1950_v57 = vmul.f32 %v8257_v51, %v7628_v7  ;;  %v1579_v7 = vld [vmem:[%s10427_s3] sm:$0x7] }
 0x1fe   : > { %v8285_v15 = vrot.slane %v1579_v7, %v7303_v39  ;;  %v8298_v27 = vrot.slane %v1579_v7, %v2166_v8  ;;  %v1042_v8 = vrot.slane %v1041_v60, 2 }
 0x1ff   : > { %v8246_v12 = vpop.permute.xlu0 %1622 }
 0x200   : > { %v8248_v34 = vpop.permute.xlu1 %2669  ;;  %v2602_v41 = vmul.f32 %v8285_v15, %v8160_v36  ;;  %v2994_v36 = vmul.f32 %v8298_v27, %v8132_v17  ;;  %v3860_v17 = vld [vmem:[%s10430_s6 + $0x8] sm:$0xff] }
 0x201   : > { %10869 = vst [vmem:[#allocation155_spill] sm:$0xff] %v8248_v34  ;;  %6618 = vset.pattern.permute.xlu1 %v10715_v5  ;;  %v8291_v34 = vrot.slane %v1579_v7, %v1938_v3 }
 0x202   : > { %2297 = vperm.xlu1 %6618, %v7967_v52   ;;  %v1046_v52 = vsel %vm905_vm0, %v7989_v31, 0.0 }
 0x203   : > { %v1633_v23 = vpop.permute.xlu0 %1632 }
 0x204   : > { %v1754_v62 = vmul.f32 %v8254_v29, %v1633_v23  ;;  %v2698_v56 = vpop.permute.xlu1 %2697  ;;  %v1076_v23 = vadd.f32 %v1075_v25, %v1074_v53 }
 0x206   : > { %v1982_v40 = vadd.f32 %v1950_v57, %v1754_v62  ;;  %2305 = vperm.xlu1 %6618, %v7979_v45   ;;  %v1047_v45 = vrot.slane %v1046_v52, 4  ;;  %v10874_v57 = vld [vmem:[#allocation52_spill] sm:$0xff]  ;;  %v1077_v43 = vrot.slane %v1076_v23, 2 }
 0x207   : > { %v8280_v44 = vpop.permute.xlu0 %1642  ;;  %v1329_v33 = vrot.slane %v10874_v57, %v7303_v39  ;;  %v10875_v57 = vld [vmem:[#allocation48_spill] sm:$0xff] }
 0x208   : > { %10872 = vst [vmem:[#allocation158_spill] sm:$0xff] %v8280_v44  ;;  %v2210_v62 = vadd.f32 %v2178_v59, %v1982_v40  ;;  %v2798_v59 = vmul.f32 %v8291_v34, %v2698_v56  ;;  %v1289_v3 = vrot.slane %v10875_v57, %v7303_v39  ;;  %v1078_v61 = vadd.f32 %v1077_v43, %v1076_v23 }
 0x209   : > { %v8287_v14 = vpop.permute.xlu1 %2857  ;;  %6771 = vrcp.f32 %v1329_v33  ;;  %v3859_v33 = vld [vmem:[%s10430_s6] sm:$0xff]  ;;  %v1043_v43 = vadd.f32 %v1042_v8, %v1041_v60  ;;  %v1960_v60 = vmul.f32 %v8257_v51, %v7743_v9 }
 0x20a   : > { %10873 = vst [vmem:[#allocation159_spill] sm:$0xff] %v8287_v14  ;;  %v2406_v53 = vadd.f32 %v2374_v50, %v2210_v62  ;;  %2329 = vperm.xlu1 %6618, %v8009_v54   ;;  %v1048_v14 = vadd.f32 %v1047_v45, %v1046_v52  ;;  %v6472_v7 = vpack.c.bf16 %v3860_v17, %v3859_v33  ;;  %6773 = vrcp.f32 %v1289_v3 }
 0x20b   : > { %v8296_v25 = vpop.permute.xlu0 %1652 }
 0x20c   : > { %v2634_v40 = vadd.f32 %v2602_v41, %v2406_v53  ;;  %v10878_v41 = vld [vmem:[#allocation49_spill] sm:$0xff]  ;;  %v1049_v52 = vrot.slane %v1048_v14, 2  ;;  %v1079_v53 = vrot.slane %v1078_v61, 1  ;;  %6473 = vmatprep.subr.bf16.mxu1 %v6472_v7 }
 0x20d   : > { %v1297_v56 = vrot.slane %v10878_v41, %v7303_v39  ;;  %6475 = vmatpush3.bf16.msra.mxu1 %v6472_v7  ;;  %v1044_v41 = vrot.slane %v1043_v43, 1 }
 0x20e   : > { %v2830_v50 = vadd.f32 %v2798_v59, %v2634_v40  ;;  %2309 = vperm.xlu1 %6618, %v8268_v10   ;;  %v8306_v62 = vpop.permute.xlu1 %2293  ;;  %v1958_v40 = vmul.f32 %v8257_v51, %v7714_v18  ;;  %v2186_v59 = vmul.f32 %v8259_v1, %v8042_v4  ;;  %v1050_v3 = vadd.f32 %v1049_v52, %v1048_v14 }
 0x20f   : > { %10876 = vst [vmem:[#allocation52_spill] sm:$0xff] %v8306_v62  ;;  %v8308_v44 = vpop.permute.xlu0 %1662  ;;  %6775 = vrcp.f32 %v1297_v56  ;;  %v2188_v18 = vmul.f32 %v8259_v1, %v8047_v48  ;;  %v1045_v7 = vadd.f32 %v1044_v41, %v1043_v43  ;;  %v10901_v62 = vld [vmem:[#allocation92_spill] sm:$0xff] }
 0x210   : > { %10877 = vst [vmem:[#allocation48_spill] sm:$0xff] %v8308_v44  ;;  %v8312_v30 = vadd.f32 %v2994_v36, %v2830_v50  ;;  %v1080_v50 = vadd.f32 %v1079_v53, %v1078_v61  ;;  %v1051_v56 = vrot.slane %v1050_v3, 1  ;;  %v10883_v53 = vld [vmem:[#allocation22_spill] sm:$0xff] }
 0x211   : > { %v1962_v9 = vmul.f32 %v8257_v51, %v10883_v53  ;;  %v10888_v53 = vld [vmem:[#allocation26_spill] sm:$0xff] }
 0x212   : > { %10879 = vst [vmem:[#allocation49_spill] sm:$0xff] %v8312_v30  ;;  %6619 = vset.pattern.permute.xlu1 %v10729_v2 }
 0x213   : > { %2510 = vperm.xlu1 %6619, %v7475_v24   ;;  %v8322_v23 = vpop.permute.xlu1 %2495  ;;  %v1673_v45 = vpop.permute.xlu0 %1672 }
 0x214   : > { %10880 = vst [vmem:[#allocation160_spill] sm:$0xff] %v8322_v23  ;;  %v1762_v57 = vmul.f32 %v8254_v29, %v1673_v45  ;;  %v6772_v33 = vpop.eup %6771  ;;  %v10902_v23 = vld [vmem:[#allocation54_spill] sm:$0xff] }
 0x215   : > { %v1435_v52 = vmul.f32 %v6772_v33, %v1080_v50  ;;  %v6774_v45 = vpop.eup %6773  ;;  %v10886_v50 = vld [vmem:[#allocation23_spill] sm:$0xff]  ;;  %v10887_v33 = vld [vmem:[#allocation24_spill] sm:$0xff]  ;;  %v1966_v44 = vmul.f32 %v8257_v51, %v10902_v23 }
 0x216   : > { %v1990_v36 = vadd.f32 %v1958_v40, %v1762_v57  ;;  %v10884_v40 = vld [vmem:[#allocation136_spill] sm:$0xff] }
 0x217   : > { %6620 = vset.pattern.permute.xlu1 %v10715_v5  ;;  %v1683_v24 = vpop.permute.xlu0 %1682  ;;  %v2190_v48 = vmul.f32 %v8259_v1, %v10884_v40  ;;  %v10906_v40 = vld [vmem:[#allocation62_spill] sm:$0xff] }
 0x218   : > { %v1764_v4 = vmul.f32 %v8254_v29, %v1683_v24  ;;  %2313 = vperm.xlu1 %6620, %v7989_v31   ;;  %v8336_v8 = vpop.permute.xlu1 %2673  ;;  %v8338_v14 = vadd.f32 %v2186_v59, %v1990_v36  ;;  %v6800_v24 = vld [vmem:[%s7151_s25 + $0xd8] sm:$0xff]  ;;  %v1052_v36 = vadd.f32 %v1051_v56, %v1050_v3  ;;  %v10891_v3 = vld [vmem:[#allocation137_spill] sm:$0xff] }
 0x219   : > { %10881 = vst [vmem:[#allocation161_spill] sm:$0xff] %v8336_v8  ;;  %v2192_v56 = vmul.f32 %v8259_v1, %v10891_v3  ;;  %v10904_v3 = vld [vmem:[#allocation138_spill] sm:$0xff] }
 0x21a   : > { %10882 = vst [vmem:[#allocation162_spill] sm:$0xff] %v8338_v14  ;;  %v1992_v17 = vadd.f32 %v1960_v60, %v1764_v4  ;;  %v6776_v60 = vpop.eup %6775  ;;  %v10930_v4 = vld [vmem:[#allocation141_spill] sm:$0xff] }
 0x21b   : > { %v1693_v61 = vpop.permute.xlu0 %1692 }
 0x21c   : > { %v1766_v57 = vmul.f32 %v8254_v29, %v1693_v61  ;;  %2341 = vperm.xlu1 %6620, %v6800_v24   ;;  %v8346_v30 = vadd.f32 %v2188_v18, %v1992_v17  ;;  %v8357_v61 = vsub.f32 %v8009_v54, %v1435_v52  ;;  %v1425_v18 = vmul.f32 %v6774_v45, %v1045_v7  ;;  %v10890_v17 = vld [vmem:[#allocation51_spill] sm:$0xff]  ;;  %v10895_v52 = vld [vmem:[#allocation33_spill] sm:$0xff] }
 0x21d   : > { %v8348_v59 = vpop.permute.xlu1 %2861  ;;  %v1964_v24 = vmul.f32 %v8257_v51, %v10890_v17  ;;  %v1427_v17 = vmul.f32 %v6776_v60, %v1052_v36  ;;  %v1940_v7 = vmul.f32 %v8257_v51, %v10901_v62  ;;  %v1745_v62 = vmul.f32 %v8254_v29, %v10906_v40  ;;  %v10907_v54 = vld [vmem:[#allocation61_spill] sm:$0xff] }
 0x21e   : > { %10885 = vst [vmem:[#allocation22_spill] sm:$0xff] %v8346_v30  ;;  %v1994_v41 = vadd.f32 %v1962_v9, %v1766_v57  ;;  %10889 = vst [vmem:[#allocation136_spill] sm:$0xff] %v8357_v61  ;;  %v8389_v60 = vsub.f32 %v8268_v10, %v1425_v18  ;;  %v2364_v23 = vmul.f32 %v8272_v58, %v10907_v54  ;;  %v10932_v57 = vld [vmem:[#allocation98_spill] sm:$0xff] }
 0x21f   : > { %v1703_v14 = vpop.permute.xlu0 %1702  ;;  %v8408_v18 = vsub.f32 %v7989_v31, %v1427_v17  ;;  %v10915_v31 = vld [vmem:[#allocation94_spill] sm:$0xff] }
 0x220   : > { %v1768_v43 = vmul.f32 %v8254_v29, %v1703_v14  ;;  %6621 = vset.pattern.permute.xlu1 %v10729_v2  ;;  %v8365_v9 = vadd.f32 %v2190_v48, %v1994_v41  ;;  %v10898_v48 = vld [vmem:[#allocation32_spill] sm:$0xff]  ;;  %10903 = vst [vmem:[#allocation26_spill] sm:$0xff] %v8389_v60  ;;  %v2194_v41 = vmul.f32 %v8259_v1, %v10904_v3 }
 0x221   : > { %2550 = vperm.xlu1 %6621, %v8357_v61   ;;  %v8374_v45 = vpop.permute.xlu1 %2885  ;;  %10909 = vst [vmem:[#allocation137_spill] sm:$0xff] %v8408_v18  ;;  %v8423_v14 = vmul.f32 %v8272_v58, %v10914_v49  ;;  %v1943_v17 = vmul.f32 %v8257_v51, %v10915_v31  ;;  %v10920_v49 = vld [vmem:[#allocation68_spill] sm:$0xff]  ;;  %v10929_v61 = vld [vmem:[#allocation58_spill] sm:$0xff] }
 0x222   : > { %10892 = vst [vmem:[#allocation23_spill] sm:$0xff] %v8365_v9  ;;  %10896 = vst [vmem:[#allocation24_spill] sm:$0xff] %v8374_v45  ;;  %v1996_v30 = vadd.f32 %v1964_v24, %v1768_v43  ;;  %v1744_v43 = vmul.f32 %v8254_v29, %v8218_v20  ;;  %v10908_v9 = vld [vmem:[#allocation63_spill] sm:$0xff]  ;;  %v10910_v20 = vld [vmem:[#allocation64_spill] sm:$0xff]  ;;  %v1751_v6 = vmul.f32 %v8254_v29, %v10920_v49 }
 0x223   : > { %v1713_v36 = vpop.permute.xlu0 %1712  ;;  %v8404_v10 = vmul.f32 %v8272_v58, %v10908_v9  ;;  %v1747_v3 = vmul.f32 %v8254_v29, %v10910_v20  ;;  %v10916_v20 = vld [vmem:[#allocation96_spill] sm:$0xff]  ;;  %v10921_v45 = vld [vmem:[#allocation71_spill] sm:$0xff] }
 0x224   : > { %v1770_v24 = vmul.f32 %v8254_v29, %v1713_v36  ;;  %v8396_v8 = vadd.f32 %v2192_v56, %v1996_v30  ;;  %v10911_v30 = vld [vmem:[#allocation66_spill] sm:$0xff]  ;;  %v10912_v36 = vld [vmem:[#allocation65_spill] sm:$0xff]  ;;  %v1945_v55 = vmul.f32 %v8257_v51, %v10916_v20  ;;  %v1753_v31 = vmul.f32 %v8254_v29, %v10921_v45 }
 0x225   : > { %6622 = vset.pattern.permute.xlu1 %v10715_v5  ;;  %v1749_v56 = vmul.f32 %v8254_v29, %v10911_v30  ;;  %v8416_v40 = vmul.f32 %v8272_v58, %v10912_v36  ;;  %v10917_v30 = vld [vmem:[#allocation7_spill] sm:$0xff]  ;;  %v8442_v20 = vmul.f32 %v8272_v58, %v10922_v19  ;;  %v10928_v19 = vld [vmem:[#allocation80_spill] sm:$0xff]  ;;  %v1975_v42 = vadd.f32 %v1943_v17, %v1747_v3  ;;  %v10935_v17 = vld [vmem:[#allocation101_spill] sm:$0xff] }
 0x226   : > { %10905 = vst [vmem:[#allocation51_spill] sm:$0xff] %v8396_v8  ;;  %v1998_v54 = vadd.f32 %v1966_v44, %v1770_v24  ;;  %v6801_v8 = vld [vmem:[%s7151_s25 + $0xa8] sm:$0xff]  ;;  %v8419_v9 = vpop.permute.xlu1 %2465  ;;  %v1968_v46 = vmul.f32 %v8257_v51, %v10917_v30  ;;  %v2196_v44 = vmul.f32 %v8259_v1, %v10918_v37  ;;  %v10923_v30 = vld [vmem:[#allocation72_spill] sm:$0xff]  ;;  %v10933_v3 = vld [vmem:[#allocation99_spill] sm:$0xff] }
 0x227   : > { %2317 = vperm.xlu1 %6622, %v6801_v8   ;;  %10913 = vst [vmem:[#allocation33_spill] sm:$0xff] %v8419_v9  ;;  %v1723_v36 = vpop.permute.xlu0 %1722  ;;  %v1972_v8 = vadd.f32 %v1940_v7, %v1744_v43  ;;  %v8446_v35 = vmul.f32 %v8272_v58, %v10923_v30  ;;  %v10924_v37 = vld [vmem:[#allocation74_spill] sm:$0xff]  ;;  %v8459_v30 = vadd.f32 %v1945_v55, %v1749_v56  ;;  %v10934_v56 = vld [vmem:[#allocation100_spill] sm:$0xff] }
 0x228   : > { %v8433_v24 = vadd.f32 %v2194_v41, %v1998_v54  ;;  %v1772_v9 = vmul.f32 %v8254_v29, %v1723_v36  ;;  %v1755_v7 = vmul.f32 %v8254_v29, %v10924_v37  ;;  %v10925_v41 = vld [vmem:[#allocation77_spill] sm:$0xff]  ;;  %v10926_v54 = vld [vmem:[#allocation108_spill] sm:$0xff]  ;;  %v1970_v37 = vmul.f32 %v8257_v51, %v10929_v61 }
 0x229   : > { %v1757_v43 = vmul.f32 %v8254_v29, %v10925_v41  ;;  %v2168_v36 = vmul.f32 %v8259_v1, %v10926_v54  ;;  %v2198_v54 = vmul.f32 %v8259_v1, %v10930_v4  ;;  %v1949_v55 = vmul.f32 %v8257_v51, %v10933_v3  ;;  %v10940_v3 = vld [vmem:[#allocation10_spill] sm:$0xff] }
 0x22a   : > { %10919 = vst [vmem:[#allocation32_spill] sm:$0xff] %v8433_v24  ;;  %v2000_v49 = vadd.f32 %v1968_v46, %v1772_v9  ;;  %v8455_v45 = vpop.permute.xlu1 %2500  ;;  %v1759_v24 = vmul.f32 %v8254_v29, %v10928_v19  ;;  %v1947_v19 = vmul.f32 %v8257_v51, %v10932_v57  ;;  %v1941_v61 = vmul.f32 %v8257_v51, %v10934_v56 }
 0x22b   : > { %6623 = vset.pattern.permute.xlu1 %v10729_v2  ;;  %10927 = vst [vmem:[#allocation92_spill] sm:$0xff] %v8455_v45  ;;  %v1733_v41 = vpop.permute.xlu0 %1732  ;;  %v2200_v46 = vadd.f32 %v2168_v36, %v1972_v8  ;;  %v1953_v4 = vmul.f32 %v8257_v51, %v10936_v32  ;;  %v10938_v57 = vrot.slane %v10887_v33, %v7303_v39  ;;  %v10939_v36 = vld [vmem:[#allocation105_spill] sm:$0xff] }
 0x22c   : > { %2525 = vperm.xlu1 %6623, %v8389_v60   ;;  %v8466_v9 = vadd.f32 %v2196_v44, %v2000_v49  ;;  %v1774_v45 = vmul.f32 %v8254_v29, %v1733_v41  ;;  %v1951_v60 = vmul.f32 %v8257_v51, %v10935_v17  ;;  %v10937_v44 = vrot.slane %v10886_v50, %v7303_v39 }
 0x22d   : > { %vm826_vm8 = vcmp.lt.f32.partialorder %v7631_v21, %v10938_v57  ;;  %v1955_v49 = vmul.f32 %v8257_v51, %v10939_v36  ;;  %v1746_v41 = vmul.f32 %v8254_v29, %v8223_v16  ;;  %v2396_v33 = vadd.f32 %v2364_v23, %v2200_v46  ;;  %v10989_v23 = vld [vmem:[#allocation135_spill] sm:$0xff] }
 0x22e   : > { %10931 = vst [vmem:[#allocation54_spill] sm:$0xff] %v8466_v9  ;;  %v2002_v8 = vadd.f32 %v1970_v37, %v1774_v45  ;;  %vm825_vm0 = vcmp.lt.f32.partialorder %v7631_v21, %v10937_v44  ;;  %v8498_v37 = vsel %vm826_vm8, 1.0, %v10741_v63  ;;  %v1979_v16 = vadd.f32 %v1947_v19, %v1751_v6  ;;  %v10945_v9 = vld [vmem:[#allocation102_spill] sm:$0xff]  ;;  %v10950_v6 = vld [vmem:[#allocation55_spill] sm:$0xff] }
 0x22f   : > { %v8492_v32 = vpop.permute.xlu1 %2705  ;;  %v2431_v45 = vpop.permute.xlu0 %2430  ;;  %v8495_v50 = vsel %vm825_vm0, 1.0, %v10741_v63  ;;  %10943 = vst [vmem:[#allocation61_spill] sm:$0xff] %v8498_v37  ;;  %v1981_v57 = vadd.f32 %v1949_v55, %v1753_v31  ;;  %v8505_v36 = vadd.f32 %v1941_v61, %v1745_v62  ;;  %v1983_v46 = vadd.f32 %v1951_v60, %v1755_v7  ;;  %v10951_v55 = vld [vmem:[#allocation106_spill] sm:$0xff] }
 0x230   : > { %2560 = vperm.xlu1 %6623, %v10940_v3   ;;  %10941 = vst [vmem:[#allocation138_spill] sm:$0xff] %v8492_v32  ;;  %10942 = vst [vmem:[#allocation62_spill] sm:$0xff] %v8495_v50  ;;  %v2592_v56 = vmul.f32 %v8285_v15, %v2431_v45  ;;  %v8503_v44 = vadd.f32 %v2198_v54, %v2002_v8  ;;  %v1942_v32 = vmul.f32 %v8257_v51, %v10945_v9  ;;  %v10949_v45 = vld [vmem:[#allocation104_spill] sm:$0xff]  ;;  %v10964_v50 = vld [vmem:[#allocation115_spill] sm:$0xff]  ;;  %vm3903_vm0 = vcmask 1046534  }
 0x231   : > { %v10946_v3 = vrot.slane %v10888_v53, %v7303_v39  ;;  %v8519_v54 = vmul.f32 %v8257_v51, %v10949_v45  ;;  %v2788_v62 = vmul.f32 %v8291_v34, %v10950_v6  ;;  %v1985_v19 = vadd.f32 %v1953_v4, %v1757_v43  ;;  %v10952_v53 = vld [vmem:[#allocation41_spill] sm:$0xff] }
 0x232   : > { %10944 = vst [vmem:[#allocation63_spill] sm:$0xff] %v8503_v44  ;;  %v2624_v31 = vadd.f32 %v2592_v56, %v2396_v33  ;;  %v8525_v9 = vmul.f32 %v8257_v51, %v10951_v55  ;;  %v2171_v61 = vmul.f32 %v8259_v1, %v10952_v53  ;;  %v1974_v8 = vadd.f32 %v1942_v32, %v1746_v41  ;;  %v10955_v56 = vld [vmem:[#allocation107_spill] sm:$0xff]  ;;  %v10956_v41 = vld [vmem:[#allocation8_spill] sm:$0xff]  ;;  %v10957_v55 = vld [vmem:[#allocation9_spill] sm:$0xff] }
 0x233   : > { %vm8513_vm9 = vcmp.lt.f32.partialorder %v7631_v21, %v10946_v3  ;;  %v8530_v60 = vpop.permute.xlu0 %2475  ;;  %v1987_v7 = vadd.f32 %v1955_v49, %v1759_v24  ;;  %v10953_v3 = vld [vmem:[#allocation16_spill] sm:$0xff]  ;;  %v2984_v33 = vmul.f32 %v8298_v27, %v8106_v47  ;;  %v1948_v6 = vmul.f32 %v8257_v51, %v10955_v56  ;;  %v10958_v49 = vld [vmem:[#allocation13_spill] sm:$0xff]  ;;  %v10959_v47 = vld [vmem:[#allocation18_spill] sm:$0xff] }
 0x234   : > { %6624 = vset.pattern.permute.xlu1 %v10768_v22  ;;  %v2175_v45 = vmul.f32 %v8259_v1, %v10953_v3  ;;  %v2820_v43 = vadd.f32 %v2788_v62, %v2624_v31  ;;  %v8537_v4 = vpop.permute.xlu1 %2865  ;;  %v8543_v32 = vmul.f32 %v8257_v51, %v10956_v41  ;;  %v8547_v24 = vmul.f32 %v8257_v51, %v10957_v55  ;;  %v10961_v31 = vld [vmem:[#allocation113_spill] sm:$0xff]  ;;  %v10963_v44 = vld [vmem:[#allocation15_spill] sm:$0xff] }
 0x235   : > { %2725 = vperm.xlu1 %6624, %v8135_v28   ;;  %10954 = vst [vmem:[#allocation64_spill] sm:$0xff] %v8537_v4  ;;  %v2170_v53 = vmul.f32 %v8259_v1, %v10958_v49  ;;  %v8553_v62 = vmul.f32 %v8257_v51, %v10959_v47  ;;  %v2179_v3 = vmul.f32 %v8259_v1, %v10961_v31  ;;  %v10966_v47 = vld [vmem:[#allocation53_spill] sm:$0xff]  ;;  %v10967_v4 = vld [vmem:[#allocation42_spill] sm:$0xff]  ;;  %vm3905_vm8 = vcmask 1047559  }
 0x236   : > { %v1752_v56 = vmul.f32 %v8254_v29, %v8246_v12  ;;  %v8559_v17 = vadd.f32 %v2984_v33, %v2820_v43  ;;  %v2203_v41 = vadd.f32 %v2171_v61, %v1975_v42  ;;  %v2173_v55 = vmul.f32 %v8259_v1, %v10963_v44  ;;  %v10968_v12 = vld [vmem:[#allocation11_spill] sm:$0xff]  ;;  %v10969_v44 = vld [vmem:[#allocation12_spill] sm:$0xff]  ;;  %v10971_v61 = vld [vmem:[#allocation17_spill] sm:$0xff] }
 0x237   : > { %10960 = vst [vmem:[#allocation66_spill] sm:$0xff] %v8553_v62  ;;  %v2181_v37 = vmul.f32 %v8259_v1, %v10964_v50  ;;  %v2202_v49 = vadd.f32 %v2170_v53, %v1974_v8  ;;  %v8565_v28 = vpop.permute.xlu0 %2445  ;;  %v2790_v51 = vmul.f32 %v8291_v34, %v10966_v47  ;;  %v8571_v31 = vmul.f32 %v8291_v34, %v10967_v4  ;;  %v10973_v43 = vld [vmem:[#allocation111_spill] sm:$0xff]  ;;  %v10974_v4 = vld [vmem:[#allocation134_spill] sm:$0xff] }
 0x238   : > { %10962 = vst [vmem:[#allocation65_spill] sm:$0xff] %v8559_v17  ;;  %10965 = vst [vmem:[#allocation67_spill] sm:$0xff] %v8565_v28  ;;  %v8575_v33 = vmul.f32 %v8291_v34, %v10968_v12  ;;  %v2207_v42 = vadd.f32 %v2175_v45, %v1979_v16  ;;  %v8580_v50 = vmul.f32 %v8291_v34, %v10969_v44  ;;  %v10975_v16 = vld [vmem:[#allocation57_spill] sm:$0xff] }
 0x239   : > { %6625 = vset.pattern.permute.xlu1 %v10715_v5  ;;  %v8584_v8 = vmul.f32 %v8291_v34, %v10971_v61  ;;  %v2177_v53 = vmul.f32 %v8259_v1, %v10973_v43  ;;  %v2366_v47 = vmul.f32 %v8272_v58, %v10974_v4  ;;  %v8591_v12 = vpop.permute.xlu1 %2505  ;;  %v8595_v45 = vmul.f32 %v8291_v34, %v10975_v16  ;;  %v11014_v16 = vld [vmem:[#allocation153_spill] sm:$0xff] }
 0x23a   : > { %10970 = vst [vmem:[#allocation94_spill] sm:$0xff] %v8580_v50  ;;  %2321 = vperm.xlu1 %6625, %v7998_v26   ;;  %v2211_v44 = vadd.f32 %v2179_v3, %v1983_v46  ;;  %v10977_v50 = vld [vmem:[#allocation126_spill] sm:$0xff]  ;;  %v1980_v61 = vadd.f32 %v1948_v6, %v1752_v56  ;;  %v2213_v28 = vadd.f32 %v2181_v37, %v1985_v19  ;;  %v10981_v46 = vld [vmem:[#allocation117_spill] sm:$0xff]  ;;  %v10982_v3 = vld [vmem:[#allocation120_spill] sm:$0xff] }
 0x23b   : > { %10972 = vst [vmem:[#allocation96_spill] sm:$0xff] %v8584_v8  ;;  %10976 = vst [vmem:[#allocation7_spill] sm:$0xff] %v8595_v45  ;;  %v2176_v17 = vmul.f32 %v8259_v1, %v10977_v50  ;;  %v2205_v8 = vadd.f32 %v2173_v55, %v8459_v30  ;;  %v2398_v43 = vadd.f32 %v2366_v47, %v2202_v49  ;;  %v8603_v4 = vpop.permute.xlu0 %2490  ;;  %v10984_v19 = vld [vmem:[#allocation142_spill] sm:$0xff] }
 0x23c   : > { %v8601_v62 = vadd.f32 %v8416_v40, %v2203_v41  ;;  %v10978_v26 = vrot.slane %v10895_v52, %v7303_v39  ;;  %v2183_v6 = vmul.f32 %v8259_v1, %v10981_v46  ;;  %v2169_v30 = vmul.f32 %v8259_v1, %v10982_v3 }
 0x23d   : > { %v8618_v37 = vadd.f32 %v8446_v35, %v2207_v42  ;;  %v10983_v40 = vrot.slane %v10898_v48, %v7303_v39  ;;  %v2209_v52 = vadd.f32 %v2177_v53, %v1981_v57  ;;  %v2594_v56 = vmul.f32 %v8285_v15, %v10984_v19  ;;  %v10987_v35 = vld [vmem:[#allocation43_spill] sm:$0xff] }
 0x23e   : > { %vm8609_vm10 = vcmp.lt.f32.partialorder %v7631_v21, %v10978_v26  ;;  %6626 = vset.pattern.permute.xlu1 %v10729_v2  ;;  %v8630_v41 = vsel %vm8513_vm9, 1.0, %v10741_v63  ;;  %v2365_v49 = vmul.f32 %v8272_v58, %v10987_v35  ;;  %v8638_v48 = vadd.f32 %v8423_v14, %v2211_v44  ;;  %v8641_v42 = vpop.permute.xlu1 %2681  ;;  %v10992_v35 = vld [vmem:[#allocation124_spill] sm:$0xff] }
 0x23f   : > { %vm834_vm11 = vcmp.lt.f32.partialorder %v7631_v21, %v10983_v40  ;;  %10985 = vst [vmem:[#allocation140_spill] sm:$0xff] %v8630_v41  ;;  %v2208_v57 = vadd.f32 %v2176_v17, %v1980_v61  ;;  %2530 = vperm.xlu1 %6626, %v8408_v18   ;;  %10988 = vst [vmem:[#allocation71_spill] sm:$0xff] %v8641_v42  ;;  %v2373_v53 = vmul.f32 %v8272_v58, %v10989_v23  ;;  %v8652_v14 = vpop.permute.xlu0 %2460  ;;  %v10990_v61 = vld [vmem:[#allocation122_spill] sm:$0xff]  ;;  %v10991_v40 = vld [vmem:[#allocation47_spill] sm:$0xff]  ;;  %vm4516_vm9 = vcmask 523264  }
 0x240   : > { %v8633_v55 = vsel %vm834_vm11, 1.0, %v10741_v63  ;;  %v1758_v47 = vmul.f32 %v8254_v29, %v8296_v25  ;;  %v8650_v26 = vadd.f32 %v8442_v20, %v2213_v28  ;;  %v2626_v46 = vadd.f32 %v2594_v56, %v2398_v43  ;;  %v10993_v25 = vld [vmem:[#allocation128_spill] sm:$0xff]  ;;  %v11018_v18 = vld [vmem:[#allocation31_spill] sm:$0xff] }
 0x241   : > { %10986 = vst [vmem:[#allocation68_spill] sm:$0xff] %v8633_v55  ;;  %v8654_v17 = vadd.f32 %v2183_v6, %v1987_v7  ;;  %v2201_v44 = vadd.f32 %v2169_v30, %v8505_v36  ;;  %v2172_v3 = vmul.f32 %v8259_v1, %v10990_v61  ;;  %v2593_v19 = vmul.f32 %v8285_v15, %v10991_v40  ;;  %v10994_v7 = vld [vmem:[#allocation130_spill] sm:$0xff]  ;;  %v10995_v61 = vld [vmem:[#allocation73_spill] sm:$0xff]  ;;  %v10996_v40 = vld [vmem:[#allocation132_spill] sm:$0xff] }
 0x242   : > { %v8663_v23 = vmul.f32 %v8259_v1, %v10992_v35  ;;  %v8667_v28 = vmul.f32 %v8259_v1, %v10993_v25  ;;  %v2369_v20 = vmul.f32 %v8272_v58, %v8123_v13  ;;  %v2986_v36 = vmul.f32 %v8298_v27, %v8348_v59  ;;  %v10998_v55 = vld [vmem:[#allocation56_spill] sm:$0xff] }
 0x243   : > { %v2182_v43 = vmul.f32 %v8259_v1, %v10994_v7  ;;  %v2397_v6 = vadd.f32 %v2365_v49, %v2201_v44  ;;  %v1748_v30 = vmul.f32 %v8254_v29, %v8228_v11  ;;  %v2404_v56 = vadd.f32 %v8404_v10, %v2208_v57  ;;  %2565 = vperm.xlu1 %6626, %v10995_v61   ;;  %v8686_v50 = vpop.permute.xlu1 %2869  ;;  %v6663_v7 = vpop.permute.xlu0 %6662  ;;  %v10997_v44 = vld [vmem:[#allocation139_spill] sm:$0xff] }
 0x244   : > { %v8681_v35 = vmul.f32 %v8259_v1, %v10996_v40  ;;  %v8683_v25 = vadd.f32 %v2373_v53, %v2209_v52  ;;  %v1986_v13 = vadd.f32 %v8547_v24, %v1758_v47  ;;  %v2822_v59 = vadd.f32 %v2790_v51, %v2626_v46  ;;  %v11000_v47 = vld [vmem:[#allocation154_spill] sm:$0xff] }
 0x245   : > { %v2625_v49 = vadd.f32 %v2593_v19, %v2397_v6  ;;  %v2368_v11 = vmul.f32 %v8272_v58, %v10997_v44  ;;  %v2600_v10 = vmul.f32 %v8285_v15, %v10998_v55  ;;  %v8692_v57 = vunpack.i.l.bf16 %v6663_v7  ;;  %v11001_v55 = vld [vmem:[#allocation27_spill] sm:$0xff]  ;;  %v11010_v44 = vld [vmem:[#allocation28_spill] sm:$0xff] }
 0x246   : > { %v8696_v40 = vmul.f32 %v8298_v27, %v8118_v0  ;;  %v2401_v52 = vadd.f32 %v2369_v20, %v2205_v8  ;;  %v2597_v51 = vmul.f32 %v8285_v15, %v8234_v38  ;;  %v3018_v24 = vadd.f32 %v2986_v36, %v2822_v59  ;;  %v11003_v0 = vld [vmem:[#allocation29_spill] sm:$0xff]  ;;  %v11007_v36 = vld [vmem:[#allocation136_spill] sm:$0xff] }
 0x247   : > { %10999 = vst [vmem:[#allocation70_spill] sm:$0xff] %v8692_v57  ;;  %v1976_v53 = vadd.f32 %v8519_v54, %v1748_v30  ;;  %v1750_v46 = vmul.f32 %v8254_v29, %v11000_v47  ;;  %v2632_v19 = vadd.f32 %v2600_v10, %v2404_v56  ;;  %6627 = vset.pattern.permute.xlu1 %v10768_v22  ;;  %v2898_v30 = vpop.permute.xlu1 %2897  ;;  %v8724_v59 = vsel %vm8609_vm10, 1.0, %v10741_v63  ;;  %v11011_v47 = vld [vmem:[#allocation149_spill] sm:$0xff]  ;;  %v11036_v38 = vld [vmem:[#allocation160_spill] sm:$0xff] }
 0x248   : > { %v11002_v6 = vrot.slane %v11001_v55, %v7303_v39  ;;  %v11004_v8 = vrot.slane %v11003_v0, %v7303_v39  ;;  %v2214_v54 = vadd.f32 %v2182_v43, %v1986_v13  ;;  %v3210_v20 = vmul.f32 %v8692_v57, %v3018_v24  ;;  %2753 = vperm.xlu1 %6627, %v11007_v36   ;;  %v11012_v43 = vld [vmem:[#allocation151_spill] sm:$0xff]  ;;  %v11013_v24 = vld [vmem:[#allocation24_spill] sm:$0xff]  ;;  %v8737_v0 = vld [vmem:[%s10428_s4] ss:$0 sm:$0xff] }
 0x249   : > { %11009 = vst [vmem:[#allocation74_spill] sm:$0xff] %v8724_v59  ;;  %v2789_v10 = vmul.f32 %v8291_v34, %v11010_v44  ;;  %v2603_v55 = vmul.f32 %v8285_v15, %v11011_v47  ;;  %v2796_v13 = vmul.f32 %v8291_v34, %v11012_v43  ;;  %v2629_v57 = vadd.f32 %v2597_v51, %v2401_v52  ;;  %v11015_v44 = vld [vmem:[#allocation92_spill] sm:$0xff]  ;;  %v11016_v43 = vld [vmem:[#allocation50_spill] sm:$0xff]  ;;  %v11019_v51 = vld [vmem:[#allocation59_spill] sm:$0xff] }
 0x24a   : > { %vm829_vm12 = vcmp.lt.f32.partialorder %v7631_v21, %v11002_v6  ;;  %vm8712_vm13 = vcmp.lt.f32.partialorder %v7631_v21, %v11004_v8  ;;  %v2992_v6 = vmul.f32 %v8298_v27, %v11013_v24  ;;  %v2378_v8 = vmul.f32 %v8272_v58, %v11014_v16  ;;  %v11020_v47 = vld [vmem:[#allocation30_spill] sm:$0xff] }
 0x24b   : > { %v8719_v56 = vsel %vm829_vm12, 1.0, %v10741_v63  ;;  %v2606_v41 = vmul.f32 %v8285_v15, %v11015_v44  ;;  %v8747_v1 = vmul.f32 %v8272_v58, %v11016_v43  ;;  %v2204_v24 = vadd.f32 %v2172_v3, %v1976_v53  ;;  %v11026_v43 = vld [vmem:[#allocation145_spill] sm:$0xff] }
 0x24c   : > { %11008 = vst [vmem:[#allocation72_spill] sm:$0xff] %v8719_v56  ;;  %v2828_v61 = vadd.f32 %v2796_v13, %v2632_v19  ;;  %v8749_v36 = vunpack.i.h.bf16 %v6663_v7  ;;  %v2989_v42 = vmul.f32 %v8298_v27, %v11018_v18  ;;  %v1978_v16 = vadd.f32 %v8525_v9, %v1750_v46  ;;  %2757 = vperm.xlu1 %6627, %v11019_v51   ;;  %v11024_v7 = vld [vmem:[#allocation34_spill] sm:$0xff]  ;;  %v11027_v56 = vld [vmem:[#allocation147_spill] sm:$0xff] }
 0x24d   : > { %v2410_v52 = vadd.f32 %v2378_v8, %v2214_v54  ;;  %v8756_v44 = vadd.f32 %v8737_v0, %v3210_v20  ;;  %v11021_v59 = vrot.slane %v11020_v47, %v7303_v39  ;;  %v2998_v53 = vmul.f32 %v8298_v27, %v11024_v7  ;;  %v11025_v9 = vld [vmem:[#allocation158_spill] sm:$0xff]  ;;  %v6668_v54 = vpop.permute.xlu0 %6667  ;;  %v2714_v20 = vpop.permute.xlu1 %2713 }
 0x24e   : > { %11017 = vst [vmem:[#allocation77_spill] sm:$0xff] %v8749_v36  ;;  %v2635_v18 = vadd.f32 %v2603_v55, %v8638_v48  ;;  %v1756_v46 = vmul.f32 %v8254_v29, %v11025_v9  ;;  %v3024_v19 = vadd.f32 %v2992_v6, %v2828_v61  ;;  %v2821_v13 = vadd.f32 %v2789_v10, %v2625_v49  ;;  %v11029_v49 = vld [vmem:[#allocation159_spill] sm:$0xff] }
 0x24f   : > { %vm8762_vm15 = vcmp.lt.f32.partialorder %v7631_v21, %v11021_v59  ;;  %v2825_v8 = vadd.f32 %v8575_v33, %v2629_v57  ;;  %v2638_v47 = vadd.f32 %v2606_v41, %v2410_v52  ;;  %v2802_v59 = vmul.f32 %v8291_v34, %v2714_v20 }
 0x250   : > { %v2370_v51 = vmul.f32 %v8272_v58, %v11026_v43  ;;  %v2596_v7 = vmul.f32 %v8285_v15, %v11027_v56  ;;  %v2400_v45 = vadd.f32 %v2368_v11, %v2204_v24  ;;  %v3216_v48 = vmul.f32 %v8749_v36, %v3024_v19  ;;  %6629 = vset.pattern.permute.xlu1 %v10715_v5  ;;  %v11030_v56 = vld [vmem:[#allocation133_spill] sm:$0xff]  ;;  %v11031_v11 = vld [vmem:[#allocation35_spill] sm:$0xff]  ;;  %v11035_v43 = vld [vmem:[#allocation48_spill] sm:$0xff] }
 0x251   : > { %v2206_v55 = vadd.f32 %v8663_v23, %v1978_v16  ;;  %v8779_v61 = vunpack.i.h.bf16 %v6668_v54  ;;  %v2834_v6 = vadd.f32 %v2802_v59, %v2638_v47  ;;  %v10543_v33 = vmax.f32 %v8756_v44, 0.0  ;;  %2353 = vperm.xlu1 %6629, %v11030_v56   ;;  %v11033_v23 = vld [vmem:[#allocation152_spill] sm:$0xff] }
 0x252   : > { %v1984_v41 = vadd.f32 %v8543_v32, %v1756_v46  ;;  %v2985_v57 = vmul.f32 %v8298_v27, %v11029_v49  ;;  %v2831_v10 = vadd.f32 %v8571_v31, %v2635_v18  ;;  %v11032_v24 = vrot.slane %v11031_v11, %v7303_v39  ;;  %v8797_v32 = vpop.permute.xlu1 %2901  ;;  %v11034_v46 = vld [vmem:[#allocation155_spill] sm:$0xff]  ;;  %v11039_v56 = vld [vmem:[#allocation76_spill] sm:$0xff] }
 0x253   : > { %11028 = vst [vmem:[#allocation108_spill] sm:$0xff] %v8779_v61  ;;  %v2797_v16 = vmul.f32 %v8291_v34, %v11033_v23  ;;  %v3021_v52 = vadd.f32 %v2989_v42, %v2825_v8  ;;  %v2995_v9 = vmul.f32 %v8298_v27, %v2898_v30  ;;  %v8795_v19 = vadd.f32 %v2998_v53, %v2834_v6 }
 0x254   : > { %vm837_vm1 = vcmp.lt.f32.partialorder %v7631_v21, %v11032_v24  ;;  %v8801_v31 = vmul.f32 %v8291_v34, %v11034_v46  ;;  %v2628_v18 = vadd.f32 %v2596_v7, %v2400_v45  ;;  %v8804_v20 = vadd.f32 %v8737_v0, %v3216_v48  ;;  %v11040_v24 = vld [vmem:[#allocation36_spill] sm:$0xff] }
 0x255   : > { %v8809_v47 = vsel %vm8712_vm13, 1.0, %v10741_v63  ;;  %v8811_v42 = vadd.f32 %v2370_v51, %v2206_v55  ;;  %v3213_v30 = vmul.f32 %v8779_v61, %v3021_v52  ;;  %v3326_v53 = vsel %vm3311_vm14, %v10543_v33, -inf  ;;  %6630 = vset.pattern.permute.xlu1 %v10729_v2  ;;  %v11037_v51 = vld [vmem:[#allocation52_spill] sm:$0xff] }
 0x256   : > { %v8818_v8 = vsel %vm837_vm1, 1.0, %v10741_v63  ;;  %v2212_v45 = vadd.f32 %v8667_v28, %v1984_v41  ;;  %v3017_v59 = vadd.f32 %v2985_v57, %v2821_v13  ;;  %v1760_v7 = vmul.f32 %v8254_v29, %v11035_v43  ;;  %2535 = vperm.xlu1 %6630, %v11039_v56   ;;  %v6589_v41 = vpop.permute.xlu1 %6588 }
 0x257   : > { %v2605_v48 = vmul.f32 %v8285_v15, %v11036_v38  ;;  %v2379_v55 = vmul.f32 %v8272_v58, %v11037_v51  ;;  %v3027_v6 = vadd.f32 %v2995_v9, %v2831_v10  ;;  %v8828_v49 = vunpack.i.l.bf16 %v6668_v54  ;;  %v11043_v9 = vld [vmem:[#allocation66_spill] sm:$0xff]  ;;  %v11044_v38 = vld [vmem:[#allocation33_spill] sm:$0xff] }
 0x258   : > { %v2601_v13 = vmul.f32 %v8285_v15, %v8530_v60  ;;  %v3327_v57 = vrot.slane %v3326_v53, 4  ;;  %v10542_v11 = vmax.f32 %v8804_v20, 0.0  ;;  %v11041_v23 = vrot.slane %v11040_v24, %v7303_v39 }
 0x259   : > { %11038 = vst [vmem:[#allocation80_spill] sm:$0xff] %v8828_v49  ;;  %v8840_v10 = vunpack.i.h.bf16 %v6589_v41  ;;  %v8842_v54 = vunpack.i.l.bf16 %v6589_v41  ;;  %v8845_v52 = vadd.f32 %v8737_v0, %v3213_v30  ;;  %v8850_v60 = vsel %vm8762_vm15, 1.0, %v10741_v63  ;;  %v11046_v30 = vld [vmem:[#allocation65_spill] sm:$0xff] }
 0x25a   : > { %vm838_vm2 = vcmp.lt.f32.partialorder %v7631_v21, %v11041_v23  ;;  %v1988_v46 = vadd.f32 %v11043_v9, %v1760_v7  ;;  %v2637_v43 = vadd.f32 %v2605_v48, %v8650_v26  ;;  %v2599_v51 = vmul.f32 %v8285_v15, %v11044_v38  ;;  %v11045_v21 = vld [vmem:[#allocation67_spill] sm:$0xff]  ;;  %6631 = vset.pattern.permute.xlu1 %v10768_v22  ;;  %v11047_v7 = vld [vmem:[#allocation161_spill] sm:$0xff]  ;;  %v11048_v9 = vld [vmem:[#allocation26_spill] sm:$0xff] }
 0x25b   : > { %11042 = vst [vmem:[#allocation58_spill] sm:$0xff] %v8840_v10  ;;  %v2595_v56 = vmul.f32 %v8285_v15, %v11045_v21  ;;  %v3219_v41 = vmul.f32 %v8828_v49, %v3027_v6  ;;  %v3208_v24 = vmul.f32 %v8842_v54, %v11046_v30  ;;  %v3209_v3 = vmul.f32 %v8840_v10, %v3017_v59  ;;  %v8875_v21 = vpop.permute.xlu1 %2877 }
 0x25c   : > { %v8864_v23 = vsel %vm838_vm2, 1.0, %v10741_v63  ;;  %v2792_v26 = vmul.f32 %v8291_v34, %v11047_v7  ;;  %v2633_v48 = vadd.f32 %v2601_v13, %v8683_v25  ;;  %2733 = vperm.xlu1 %6631, %v11048_v9   ;;  %v3368_v6 = vsel %vm3311_vm14, %v10542_v11, -inf }
 0x25d   : > { %v3247_v59 = vadd.f32 %v8737_v0, %v3208_v24  ;;  %v3248_v63 = vadd.f32 %v8737_v0, %v3209_v3  ;;  %v3328_v30 = vmax.f32 %v3326_v53, %v3327_v57  ;;  %v10546_v7 = vmax.f32 %v8845_v52, 0.0  ;;  %v11049_v57 = vld [vmem:[#allocation10_spill] sm:$0xff] }
 0x25e   : > { %v2411_v25 = vadd.f32 %v2379_v55, %v8654_v17  ;;  %v2627_v13 = vadd.f32 %v2595_v56, %v8601_v62  ;;  %v2408_v28 = vadd.f32 %v8747_v1, %v2212_v45  ;;  %v8884_v11 = vadd.f32 %v8681_v35, %v1988_v46  ;;  %v11050_v17 = vld [vmem:[#allocation94_spill] sm:$0xff]  ;;  %v11051_v56 = vld [vmem:[#allocation64_spill] sm:$0xff] }
 0x25f   : > { %v2631_v38 = vadd.f32 %v2599_v51, %v8618_v37  ;;  %v3279_v33 = vmax.f32 %v3247_v59, 0.0  ;;  %v3280_v49 = vmax.f32 %v3248_v63, 0.0  ;;  %v8888_v24 = vadd.f32 %v8737_v0, %v3219_v41  ;;  %v8896_v1 = vpop.permute.xlu1 %2905 }
 0x260   : > { %v8890_v3 = vadd.f32 %v2792_v26, %v2628_v18  ;;  %v2829_v53 = vadd.f32 %v2797_v16, %v2633_v48  ;;  %2761 = vperm.xlu1 %6631, %v11049_v57   ;;  %v8894_v55 = vadd.f32 %v11050_v17, %v2637_v43  ;;  %v3369_v62 = vrot.slane %v3368_v6, 4  ;;  %v8912_v26 = vpop.permute.xlu0 %6672  ;;  %v11056_v17 = vld [vmem:[#allocation138_spill] sm:$0xff] }
 0x261   : > { %v3312_v35 = vsel %vm3311_vm14, %v3279_v33, -inf  ;;  %6324 = vmatprep.mubr.msk.f32.mxu0 %vm3311_vm14, %v3279_v33  ;;  %v3319_v37 = vsel %vm3311_vm14, %v3280_v49, -inf  ;;  %v3329_v45 = vrot.slane %v3328_v30, 2  ;;  %v3347_v18 = vsel %vm3311_vm14, %v10546_v7, -inf }
 0x262   : > { %v2823_v16 = vadd.f32 %v8801_v31, %v2627_v13  ;;  %v2607_v46 = vmul.f32 %v8285_v15, %v8591_v12  ;;  %v3313_v43 = vrot.slane %v3312_v35, 4  ;;  %v3320_v51 = vrot.slane %v3319_v37, 4  ;;  %6325 = vmatmul.mubr.msk.f32.vlgmr.msra.gmra.mrb[0].mxu0 %vm3311_vm14, %v3280_v49  ;;  %v11053_v31 = vld [vmem:[#allocation96_spill] sm:$0xff] }
 0x263   : > { %v2987_v41 = vmul.f32 %v8298_v27, %v11051_v56  ;;  %v2604_v33 = vmul.f32 %v8285_v15, %v8603_v4  ;;  %v11052_v48 = vmax.f32 %v8756_v44, 0.0  ;;  %v8918_v59 = vadd.f32 %v11053_v31, %v2631_v38  ;;  %v11057_v38 = vld [vmem:[#allocation25_spill] sm:$0xff] }
 0x264   : > { %v8922_v49 = vunpack.i.l.bf16 %v8912_v26  ;;  %v3314_v63 = vmax.f32 %v3312_v35, %v3313_v43  ;;  %v3321_v13 = vmax.f32 %v3319_v37, %v3320_v51  ;;  %v11055_v57 = vmov 2   ;;  %v6596_v10 = vpop.permute.xlu1 %6595 }
 0x265   : > { %6327 = vmatprep.mubr.msk.f32.mxu0 %vm3311_vm14, %v11052_v48  ;;  %6632 = vset.pattern.permute.xlu1 %v11055_v57  ;;  %v3348_v4 = vrot.slane %v3347_v18, 4  ;;  %v2800_v44 = vmul.f32 %v8291_v34, %v11056_v17  ;;  %v3025_v56 = vadd.f32 %v8696_v40, %v2829_v53  ;;  %v3330_v48 = vmax.f32 %v3328_v30, %v3329_v45 }
 0x266   : > { %11054 = vst [vmem:[#allocation141_spill] sm:$0xff] %v8922_v49  ;;  %2921 = vperm.xlu1 %6632, %v11057_v38   ;;  %v3370_v31 = vmax.f32 %v3368_v6, %v3369_v62  ;;  %v3019_v7 = vadd.f32 %v2987_v41, %v2823_v16  ;;  %v2639_v12 = vadd.f32 %v2607_v46, %v2411_v25  ;;  %v3315_v61 = vrot.slane %v3314_v63, 2  ;;  %v6802_v41 = vld [vmem:[%s7151_s25 + $0xf8] sm:$0xff]  ;;  %s10208_s25 = scalar_lea.vmem [#allocation2], %s6110_s14  ;;  %s6808_s14 = sshll.u32 %s6874_s12, 4  ;;  %s6809_s14 = int_to_ptr.vmem [resolvable:$false] %s6808_s14 }
 0x267   : > { %v3322_v36 = vrot.slane %v3321_v13, 2  ;;  %v2636_v35 = vadd.f32 %v2604_v33, %v2408_v28  ;;  %v8929_v37 = vunpack.i.h.bf16 %v6596_v10  ;;  %v8931_v43 = vunpack.i.l.bf16 %v6596_v10  ;;  %s6032_s16 = sshll.u32 %s10208_s25, 4  ;;  %s6810_s15 = scalar_lea.vmem %s6809_s14, 1024  ;;  %s10376_s16 = int_to_ptr.vmem [resolvable:$true] %s6032_s16 }
 0x268   : > { %v11060_v51 = vmax.f32 %v8888_v24, 0.0  ;;  %v3222_v40 = vmul.f32 %v8922_v49, %v8795_v19  ;;  %v3316_v30 = vmax.f32 %v3314_v63, %v3315_v61  ;;  %v3349_v53 = vmax.f32 %v3347_v18, %v3348_v4  ;;  %v11061_v19 = vld [vmem:[#allocation7_spill] sm:$0xff]  ;;  %s6804_s30 = scalar_lea.vmem %s10376_s16, 512  ;;  %p6811_p1 = scmp.lt.s32.totalorder %s10376_s16, %s6809_s14 }
 0x269   : > { %11058 = vst [vmem:[#allocation98_spill] sm:$0xff] %v8929_v37  ;;  %11059 = vst [vmem:[#allocation99_spill] sm:$0xff] %v8931_v43  ;;  %v3323_v6 = vmax.f32 %v3321_v13, %v3322_v36  ;;  %v3331_v25 = vrot.slane %v3330_v48, 1  ;;  %v3211_v28 = vmul.f32 %v8929_v37, %v3019_v7  ;;  %v3371_v62 = vrot.slane %v3370_v31, 2  ;;  %v8946_v61 = vpop.permute.xlu1 %2881  ;;  %p6805_p12 = scmp.ne.s32.totalorder %s10376_s16, %s6804_s30  ;;  %p6812_p2 = scmp.lt.s32.totalorder %s6810_s15, %s6804_s30 }
 0x26a   : > { %v3389_v17 = vsel %vm3311_vm14, %v11060_v51, -inf  ;;  %6633 = vset.pattern.permute.xlu1 %v10715_v5  ;;  %v3217_v45 = vmul.f32 %v8931_v43, %v3025_v56  ;;  %v2598_v10 = vmul.f32 %v8285_v15, %v8652_v14  ;;  %v3317_v16 = vrot.slane %v3316_v30, 1 }
 0x26b   : > { %v3324_v46 = vrot.slane %v3323_v6, 1  ;;  %2357 = vperm.xlu1 %6633, %v6802_v41   ;;  %v3390_v33 = vrot.slane %v3389_v17, 4  ;;  %v2988_v36 = vmul.f32 %v8298_v27, %v8686_v50  ;;  %v3250_v5 = vadd.f32 %v8737_v0, %v3211_v28  ;;  %v11062_v41 = vld [vmem:[#allocation71_spill] sm:$0xff]  ;;  %p6806_p13 = pnand %p6805_p12, %p6975_p5  ;;  %p6813_p3 = por %p6812_p2, %p6811_p1 }
 0x26c   : > { %v2835_v7 = vadd.f32 %v11061_v19, %v2639_v12  ;;  %v8951_v18 = vadd.f32 %v8737_v0, %v3217_v45  ;;  %v3318_v63 = vmax.f32 %v3316_v30, %v3317_v16  ;;  %v3350_v14 = vrot.slane %v3349_v53, 2  ;;  %v11063_v45 = vld [vmem:[#allocation79_spill] sm:$0xff] }
 0x26d   : > { %v3325_v13 = vmax.f32 %v3323_v6, %v3324_v46  ;;  %v8954_v4 = vadd.f32 %v8737_v0, %v3222_v40  ;;  %v3332_v56 = vmax.f32 %v3330_v48, %v3331_v25  ;;  %v3282_v38 = vmax.f32 %v3250_v5, 0.0  ;;  %p6807_p0 = pneg %p6806_p13 }
 0x26e   : > { %v3372_v51 = vmax.f32 %v3370_v31, %v3371_v62  ;;  %v10555_v50 = vmax.f32 %v8951_v18, 0.0  ;;  %v2794_v43 = vmul.f32 %v8291_v34, %v11062_v41  ;;  %v2630_v28 = vadd.f32 %v2598_v10, %v8811_v42  ;;  %v6603_v25 = vpop.permute.xlu1 %6602  ;;  %v11068_v41 = vld [vmem:[#allocation137_spill] sm:$0xff] }
 0x26f   : > { %6634 = vset.pattern.permute.xlu1 %v10729_v2  ;;  %v3391_v12 = vmax.f32 %v3389_v17, %v3390_v33  ;;  %v3894_v30 = vsel %vm3893_vm3, %v3325_v13, %v3318_v63  ;;  %v3020_v6 = vadd.f32 %v2988_v36, %v8890_v3  ;;  %v3333_v48 = vsel %vm3311_vm14, %v3282_v38, -inf  ;;  %6328 = vmatmul.mubr.msk.f32.gmra.mrb[2].mxu0 %vm3311_vm14, %v3282_v38  ;;  %p6814_p4 = pnand %p6813_p3, %p6807_p0 }
 0x270   : > { %2575 = vperm.xlu1 %6634, %v11063_v45   ;;  %v3375_v31 = vsel %vm3311_vm14, %v10555_v50, -inf  ;;  %v8970_v40 = vsel %vm3895_vm4, %v3332_v56, %v3894_v30  ;;  %v3334_v42 = vrot.slane %v3333_v48, 4  ;;  %v10556_v62 = vmax.f32 %v8954_v4, 0.0 }
 0x271   : > { %v3376_v17 = vrot.slane %v3375_v31, 4  ;;  %v3351_v10 = vmax.f32 %v3349_v53, %v3350_v14  ;;  %v2996_v3 = vmul.f32 %v8298_v27, %v8797_v32  ;;  %v8975_v16 = vunpack.i.h.bf16 %v6603_v25  ;;  %v11067_v14 = vld [vmem:[#allocation49_spill] sm:$0xff] }
 0x272   : > { %v8977_v46 = vunpack.i.l.bf16 %v6603_v25  ;;  %v3373_v33 = vrot.slane %v3372_v51, 1  ;;  %v2832_v36 = vadd.f32 %v2800_v44, %v2636_v35  ;;  %v3335_v5 = vmax.f32 %v3333_v48, %v3334_v42 }
 0x273   : > { %11064 = vst [vmem:[#allocation100_spill] sm:$0xff] %v8975_v16  ;;  %v3377_v19 = vmax.f32 %v3375_v31, %v3376_v17  ;;  %v3392_v63 = vrot.slane %v3391_v12, 2  ;;  %v2826_v13 = vadd.f32 %v2794_v43, %v2630_v28  ;;  %v8980_v56 = vunpack.i.h.bf16 %v8912_v26  ;;  %v2914_v28 = vpop.permute.xlu1 %2913 }
 0x274   : > { %11065 = vst [vmem:[#allocation101_spill] sm:$0xff] %v8977_v46  ;;  %6635 = vset.pattern.permute.xlu1 %v10768_v22  ;;  %v3212_v53 = vmul.f32 %v8975_v16, %v3020_v6  ;;  %v3218_v32 = vmul.f32 %v8977_v46, %v11067_v14  ;;  %v3336_v38 = vrot.slane %v3335_v5, 2  ;;  %v3410_v44 = vsel %vm3311_vm14, %v10556_v62, -inf }
 0x275   : > { %11066 = vst [vmem:[#allocation103_spill] sm:$0xff] %v8980_v56  ;;  %2737 = vperm.xlu1 %6635, %v11068_v41   ;;  %v3378_v30 = vrot.slane %v3377_v19, 2  ;;  %v3352_v35 = vrot.slane %v3351_v10, 1  ;;  %v3028_v43 = vadd.f32 %v2996_v3, %v2832_v36  ;;  %v3374_v48 = vmax.f32 %v3372_v51, %v3373_v33 }
 0x276   : > { %v3251_v26 = vadd.f32 %v8737_v0, %v3212_v53  ;;  %v8992_v31 = vadd.f32 %v8737_v0, %v3218_v32  ;;  %v3337_v6 = vmax.f32 %v3335_v5, %v3336_v38  ;;  %v2999_v42 = vmul.f32 %v8298_v27, %v2914_v28 }
 0x277   : > { %v3379_v25 = vmax.f32 %v3377_v19, %v3378_v30  ;;  %v8995_v17 = vmax.f32 %v3391_v12, %v3392_v63  ;;  %v2990_v14 = vmul.f32 %v8298_v27, %v8875_v21  ;;  %v3411_v3 = vrot.slane %v3410_v44, 4  ;;  %v11069_v63 = vld [vmem:[#allocation69_spill] sm:$0xff] }
 0x278   : > { %v3283_v50 = vmax.f32 %v3251_v26, 0.0  ;;  %v10558_v62 = vmax.f32 %v8992_v31, 0.0  ;;  %v2997_v51 = vmul.f32 %v8298_v27, %v8896_v1  ;;  %v3031_v33 = vadd.f32 %v2999_v42, %v2835_v7  ;;  %v6610_v32 = vpop.permute.xlu1 %6609 }
 0x279   : > { %6636 = vset.pattern.permute.xlu1 %v11055_v57  ;;  %v3380_v36 = vrot.slane %v3379_v25, 1  ;;  %v9003_v5 = vmax.f32 %v3351_v10, %v3352_v35  ;;  %v2991_v12 = vmul.f32 %v8298_v27, %v8946_v61  ;;  %v3338_v19 = vrot.slane %v3337_v6, 1 }
 0x27a   : > { %2925 = vperm.xlu1 %6636, %v11069_v63   ;;  %v3340_v21 = vsel %vm3311_vm14, %v3283_v50, -inf  ;;  %6330 = vmatprep.mubr.msk.f32.mxu0 %vm3311_vm14, %v3283_v50  ;;  %v3382_v1 = vsel %vm3311_vm14, %v10558_v62, -inf  ;;  %v3223_v7 = vmul.f32 %v8980_v56, %v3031_v33  ;;  %v11070_v10 = vmax.f32 %v8845_v52, 0.0  ;;  %v11077_v62 = vld [vmem:[#allocation109_spill] sm:$0xff] }
 0x27b   : > { %v3341_v53 = vrot.slane %v3340_v21, 4  ;;  %v3381_v61 = vmax.f32 %v3379_v25, %v3380_v36  ;;  %v3383_v38 = vrot.slane %v3382_v1, 4  ;;  %v3022_v30 = vadd.f32 %v2990_v14, %v2826_v13  ;;  %v11073_v36 = vld [vmem:[#allocation136_spill] sm:$0xff] }
 0x27c   : > { %6331 = vmatmul.mubr.msk.f32.gmra.mrb[4].mxu0 %vm3311_vm14, %v11070_v10  ;;  %v9017_v35 = vunpack.i.h.bf16 %v6610_v32  ;;  %v9019_v28 = vunpack.i.l.bf16 %v6610_v32  ;;  %v9021_v50 = vmax.f32 %v3410_v44, %v3411_v3  ;;  %v9024_v26 = vadd.f32 %v8737_v0, %v3223_v7  ;;  %v6615_v7 = vpop.permute.xlu1 %6614 }
 0x27d   : > { %v3342_v42 = vmax.f32 %v3340_v21, %v3341_v53  ;;  %v3384_v33 = vmax.f32 %v3382_v1, %v3383_v38  ;;  %v3907_v63 = vsel %vm3893_vm3, %v3381_v61, %v3374_v48  ;;  %v3029_v52 = vadd.f32 %v2997_v51, %v8894_v55  ;;  %v11076_v38 = vld [vmem:[#allocation82_spill] sm:$0xff] }
 0x27e   : > { %11071 = vst [vmem:[#allocation105_spill] sm:$0xff] %v9017_v35  ;;  %11072 = vst [vmem:[#allocation102_spill] sm:$0xff] %v9019_v28  ;;  %v3023_v25 = vadd.f32 %v2991_v12, %v8918_v59  ;;  %v3214_v13 = vmul.f32 %v9017_v35, %v3022_v30  ;;  %v3220_v14 = vmul.f32 %v9019_v28, %v3028_v43  ;;  %2949 = vperm.xlu1 %6636, %v11073_v36  }
 0x27f   : > { %v10557_v44 = vmax.f32 %v9024_v26, 0.0  ;;  %v3343_v3 = vrot.slane %v3342_v42, 2  ;;  %v3385_v32 = vrot.slane %v3384_v33, 2  ;;  %v3339_v21 = vmax.f32 %v3337_v6, %v3338_v19 }
 0x280   : > { %v9033_v1 = vunpack.i.h.bf16 %v6615_v7  ;;  %v9035_v48 = vunpack.i.l.bf16 %v6615_v7  ;;  %v3253_v55 = vadd.f32 %v8737_v0, %v3214_v13  ;;  %v9039_v59 = vadd.f32 %v8737_v0, %v3220_v14 }
 0x281   : > { %v3417_v43 = vsel %vm3311_vm14, %v10557_v44, -inf  ;;  %v3344_v51 = vmax.f32 %v3342_v42, %v3343_v3  ;;  %v3386_v12 = vmax.f32 %v3384_v33, %v3385_v32  ;;  %v3413_v53 = vrot.slane %v9021_v50, 2  ;;  %v2298_v36 = vpop.permute.xlu1 %2297 }
 0x282   : > { %11074 = vst [vmem:[#allocation104_spill] sm:$0xff] %v9033_v1  ;;  %11075 = vst [vmem:[#allocation55_spill] sm:$0xff] %v9035_v48  ;;  %v3418_v10 = vrot.slane %v3417_v43, 4  ;;  %v3215_v6 = vmul.f32 %v9033_v1, %v3023_v25  ;;  %v3221_v19 = vmul.f32 %v9035_v48, %v3029_v52  ;;  %6637 = vset.pattern.permute.xlu1 %v10729_v2  ;;  %v3285_v61 = vmax.f32 %v3253_v55, 0.0 }
 0x283   : > { %2545 = vperm.xlu1 %6637, %v11076_v38   ;;  %v3387_v30 = vrot.slane %v3386_v12, 1  ;;  %v10559_v13 = vmax.f32 %v9039_v59, 0.0  ;;  %v3345_v14 = vrot.slane %v3344_v51, 1  ;;  %v3898_v42 = vsel %vm3897_vm5, %v3339_v21, %v8970_v40 }
 0x284   : > { %v3419_v33 = vmax.f32 %v3417_v43, %v3418_v10  ;;  %v3354_v3 = vsel %vm3311_vm14, %v3285_v61, -inf  ;;  %6333 = vmatprep.mubr.msk.f32.mxu0 %vm3311_vm14, %v3285_v61  ;;  %v3254_v52 = vadd.f32 %v8737_v0, %v3215_v6  ;;  %v9056_v25 = vadd.f32 %v8737_v0, %v3221_v19 }
 0x285   : > { %v2380_v7 = vmul.f32 %v8272_v58, %v2298_v36  ;;  %v3355_v32 = vrot.slane %v3354_v3, 4  ;;  %v3388_v55 = vmax.f32 %v3386_v12, %v3387_v30  ;;  %v3396_v44 = vsel %vm3311_vm14, %v10559_v13, -inf  ;;  %v2306_v36 = vpop.permute.xlu1 %2305 }
 0x286   : > { %v3286_v40 = vmax.f32 %v3254_v52, 0.0  ;;  %v3397_v21 = vrot.slane %v3396_v44, 4  ;;  %v3292_v43 = vmax.f32 %v9056_v25, 0.0  ;;  %v3346_v10 = vmax.f32 %v3344_v51, %v3345_v14 }
 0x287   : > { %v9064_v61 = vadd.f32 %v2380_v7, %v8884_v11  ;;  %v3356_v6 = vmax.f32 %v3354_v3, %v3355_v32  ;;  %2580 = vperm.xlu1 %6637, %v11077_v62   ;;  %v3420_v0 = vrot.slane %v3419_v33, 2  ;;  %v3908_v19 = vsel %vm3895_vm4, %v3388_v55, %v3907_v63 }
 0x288   : > { %v3361_v12 = vsel %vm3311_vm14, %v3286_v40, -inf  ;;  %6334 = vmatmul.mubr.msk.f32.gmra.mrb[6].mxu0 %vm3311_vm14, %v3286_v40  ;;  %v3398_v30 = vmax.f32 %v3396_v44, %v3397_v21  ;;  %v3403_v52 = vsel %vm3311_vm14, %v3292_v43, -inf  ;;  %v3900_v25 = vsel %vm3899_vm6, %v3346_v10, %v3898_v42  ;;  %v11079_v44 = vld [vmem:[#allocation162_spill] sm:$0xff] }
 0x289   : > { %v2382_v51 = vmul.f32 %v8272_v58, %v2306_v36  ;;  %v3362_v11 = vrot.slane %v3361_v12, 4  ;;  %v11078_v14 = vmax.f32 %v8804_v20, 0.0  ;;  %v3404_v3 = vrot.slane %v3403_v52, 4  ;;  %v11080_v36 = vld [vmem:[#allocation38_spill] sm:$0xff]  ;;  %v2330_v20 = vpop.permute.xlu1 %2329 }
 0x28a   : > { %v3357_v7 = vrot.slane %v3356_v6, 2  ;;  %v3394_v63 = vrot.slane %v8995_v17, 1  ;;  %v3399_v32 = vrot.slane %v3398_v30, 2  ;;  %v3902_v55 = vsel %vm3901_vm7, %v9003_v5, %v3900_v25 }
 0x28b   : > { %6336 = vmatprep.mubr.msk.f32.mxu0 %vm3311_vm14, %v11078_v14  ;;  %v9080_v40 = vadd.f32 %v2382_v51, %v11079_v44  ;;  %6638 = vset.pattern.permute.xlu1 %v10768_v22  ;;  %v3405_v42 = vmax.f32 %v3403_v52, %v3404_v3  ;;  %v3363_v10 = vmax.f32 %v3361_v12, %v3362_v11  ;;  %v11081_v14 = vmax.f32 %v8951_v18, 0.0  ;;  %v11083_v3 = vld [vmem:[#allocation51_spill] sm:$0xff] }
 0x28c   : > { %v3358_v21 = vmax.f32 %v3356_v6, %v3357_v7  ;;  %2769 = vperm.xlu1 %6638, %v11080_v36   ;;  %v3400_v13 = vmax.f32 %v3398_v30, %v3399_v32  ;;  %v3414_v28 = vmax.f32 %v9021_v50, %v3413_v53  ;;  %v2388_v5 = vmul.f32 %v8272_v58, %v2330_v20 }
 0x28d   : > { %6337 = vmatmul.mubr.msk.f32.gmra.mrb[8].mxu0 %vm3311_vm14, %v11081_v14  ;;  %v11082_v25 = vmax.f32 %v8992_v31, 0.0  ;;  %v3406_v51 = vrot.slane %v3405_v42, 2  ;;  %v3421_v6 = vmax.f32 %v3419_v33, %v3420_v0  ;;  %v3364_v11 = vrot.slane %v3363_v10, 2  ;;  %v2310_v50 = vpop.permute.xlu1 %2309 }
 0x28e   : > { %v3359_v52 = vrot.slane %v3358_v21, 1  ;;  %v3401_v12 = vrot.slane %v3400_v13, 1  ;;  %v2420_v7 = vadd.f32 %v2388_v5, %v11083_v3  ;;  %v3395_v18 = vmax.f32 %v8995_v17, %v3394_v63 }
 0x28f   : > { %6339 = vmatprep.mubr.msk.f32.mxu0 %vm3311_vm14, %v11082_v25  ;;  %v3407_v44 = vmax.f32 %v3405_v42, %v3406_v51  ;;  %v11084_v53 = vmax.f32 %v8888_v24, 0.0  ;;  %v3365_v32 = vmax.f32 %v3363_v10, %v3364_v11  ;;  %v3415_v20 = vrot.slane %v3414_v28, 1  ;;  %v11087_v25 = vld [vmem:[#allocation85_spill] sm:$0xff] }
 0x290   : > { %v3360_v30 = vmax.f32 %v3358_v21, %v3359_v52  ;;  %6639 = vset.pattern.permute.xlu1 %v11055_v57  ;;  %v3402_v31 = vmax.f32 %v3400_v13, %v3401_v12  ;;  %v11085_v33 = vmax.f32 %v9039_v59, 0.0  ;;  %v3422_v63 = vrot.slane %v3421_v6, 1  ;;  %v11088_v52 = vld [vmem:[#allocation110_spill] sm:$0xff]  ;;  %v11090_v11 = vld [vmem:[#allocation37_spill] sm:$0xff] }
 0x291   : > { %6340 = vmatmul.mubr.msk.f32.gmra.mrb[10].mxu0 %vm3311_vm14, %v11084_v53  ;;  %2929 = vperm.xlu1 %6639, %v11048_v9   ;;  %v3408_v0 = vrot.slane %v3407_v44, 1  ;;  %v3909_v42 = vsel %vm3897_vm5, %v3395_v18, %v3908_v19  ;;  %v3366_v21 = vrot.slane %v3365_v32, 1  ;;  %v3416_v10 = vmax.f32 %v3414_v28, %v3415_v20  ;;  %v11091_v53 = vld [vmem:[#allocation144_spill] sm:$0xff] }
 0x292   : > { %6342 = vmatprep.mubr.msk.f32.mxu0 %vm3311_vm14, %v11085_v33  ;;  %v3904_v17 = vsel %vm3903_vm0, %v3360_v30, %v3902_v55  ;;  %v3910_v24 = vsel %vm3899_vm6, %v3402_v31, %v3909_v42  ;;  %v2511_v9 = vpop.permute.xlu1 %2510  ;;  %v11086_v59 = vmax.f32 %v8954_v4, 0.0  ;;  %v3423_v55 = vmax.f32 %v3421_v6, %v3422_v63  ;;  %v11095_v63 = vld [vmem:[#allocation156_spill] sm:$0xff] }
 0x293   : > { %v3409_v14 = vmax.f32 %v3407_v44, %v3408_v0  ;;  %v3367_v13 = vmax.f32 %v3365_v32, %v3366_v21  ;;  %v2608_v19 = vmul.f32 %v8285_v15, %v2511_v9  ;;  %v2804_v4 = vmul.f32 %v8291_v34, %v11088_v52  ;;  %v11094_v0 = vld [vmem:[#allocation40_spill] sm:$0xff] }
 0x294   : > { %v11089_v6 = vmax.f32 %v9024_v26, 0.0  ;;  %v3000_v3 = vmul.f32 %v8298_v27, %v11090_v11  ;;  %v1959_v42 = vmul.f32 %v11095_v63, %v11094_v0  ;;  %v11106_v0 = vld [vmem:[#allocation93_spill] sm:$0xff] }
 0x295   : > { %6343 = vmatmul.mubr.msk.f32.gmra.mrb[12].mxu0 %vm3311_vm14, %v3292_v43  ;;  %6640 = vset.pattern.permute.xlu1 %v10729_v2  ;;  %v3911_v5 = vsel %vm3901_vm7, %v3409_v14, %v3910_v24  ;;  %v3906_v51 = vsel %vm3905_vm8, %v3367_v13, %v3904_v17  ;;  %v2640_v12 = vadd.f32 %v2608_v19, %v9064_v61  ;;  %v11092_v61 = vld [vmem:[#allocation22_spill] sm:$0xff]  ;;  %v11093_v17 = vld [vmem:[#allocation73_spill] sm:$0xff] }
 0x296   : > { %6345 = vmatprep.mubr.msk.f32.mxu0 %vm3311_vm14, %v11086_v59  ;;  %2585 = vperm.xlu1 %6640, %v11087_v25   ;;  %v3912_v43 = vsel %vm3903_vm0, %v3416_v10, %v3911_v5  ;;  %v11096_v24 = vld [vmem:[#allocation86_spill] sm:$0xff]  ;;  %v11097_v13 = vld [vmem:[#allocation121_spill] sm:$0xff] }
 0x297   : > { %6376 = vmatprep.mubr.msk.f32.mxu1 %vm3311_vm14, %v3906_v51  ;;  %v3913_v28 = vsel %vm3905_vm8, %v3423_v55, %v3912_v43  ;;  %v2836_v18 = vadd.f32 %v2804_v4, %v2640_v12  ;;  %v2314_v44 = vpop.permute.xlu1 %2313  ;;  %v1763_v14 = vmul.f32 %v8254_v29, %v11096_v24  ;;  %v11098_v10 = vld [vmem:[#allocation157_spill] sm:$0xff]  ;;  %v2383_v55 = vmul.f32 %v8272_v58, %v2310_v50  ;;  %v11100_v4 = vld [vmem:[#allocation32_spill] sm:$0xff] }
 0x298   : > { %6377 = vmatmul.mubr.msk.f32.vlgmr.msra.gmra.mrb[0].mxu1 %vm3311_vm14, %v3913_v28  ;;  %v2384_v30 = vmul.f32 %v8272_v58, %v2314_v44  ;;  %v2187_v9 = vmul.f32 %v11098_v10, %v11097_v13  ;;  %v11099_v43 = vld [vmem:[#allocation81_spill] sm:$0xff] }
 0x299   : > { %6346 = vmatmul.mubr.msk.f32.gmra.mrb[14].mxu0 %vm3311_vm14, %v11089_v6  ;;  %v9129_v31 = vadd.f32 %v3000_v3, %v2836_v18  ;;  %v2390_v28 = vmul.f32 %v8272_v58, %v11099_v43  ;;  %v11101_v50 = vld [vmem:[#allocation61_spill] sm:$0xff]  ;;  %v11102_v6 = vld [vmem:[#allocation62_spill] sm:$0xff] }
 0x29a   : > { %6641 = vset.pattern.permute.xlu1 %v10768_v22  ;;  %v2416_v32 = vadd.f32 %v2384_v30, %v11092_v61  ;;  %v11103_v11 = vpack.i.bf16 %v11101_v50, %v11102_v6  ;;  %v11104_v61 = vld [vmem:[#allocation14_spill] sm:$0xff]  ;;  %v11107_v24 = vld [vmem:[#allocation45_spill] sm:$0xff] }
 0x29b   : > { %2745 = vperm.xlu1 %6641, %v11091_v53   ;;  %v2342_v26 = vpop.permute.xlu1 %2341 }
 0x29f   : > { %6642 = vset.pattern.permute.xlu1 %v11055_v57 }
 0x2a0   : > { %2933 = vperm.xlu1 %6642, %v11068_v41   ;;  %v2551_v20 = vpop.permute.xlu1 %2550  ;;  %v1991_v41 = vadd.f32 %v1959_v42, %v1763_v14  ;;  %v1771_v42 = vmul.f32 %v8254_v29, %v11106_v0  ;;  %v2195_v14 = vmul.f32 %v11098_v10, %v11107_v24  ;;  %v11115_v24 = vld [vmem:[#allocation72_spill] sm:$0xff] }
 0x2a1   : > { %v2616_v33 = vmul.f32 %v8285_v15, %v2551_v20  ;;  %v1967_v20 = vmul.f32 %v11095_v63, %v11104_v61 }
 0x2a2   : > { %v2219_v5 = vadd.f32 %v2187_v9, %v1991_v41 }
 0x2a3   : > { %v2648_v21 = vadd.f32 %v2616_v33, %v2420_v7  ;;  %v11105_v33 = vld [vmem:[#allocation23_spill] sm:$0xff]  ;;  %v1999_v13 = vadd.f32 %v1967_v20, %v1771_v42 }
 0x2a4   : > { %2961 = vperm.xlu1 %6642, %v11093_v17   ;;  %v2415_v7 = vadd.f32 %v2383_v55, %v2219_v5  ;;  %v11108_v55 = vld [vmem:[#allocation140_spill] sm:$0xff] }
 0x2a5   : > { %v11109_v5 = vld [vmem:[#allocation68_spill] sm:$0xff]  ;;  %v2227_v43 = vadd.f32 %v2195_v14, %v1999_v13  ;;  %v11116_v14 = vld [vmem:[#allocation74_spill] sm:$0xff] }
 0x2a6   : > { %v9143_v59 = vpop.permute.xlu1 %2317 }
 0x2a8   : > { %6643 = vset.pattern.permute.xlu1 %v10768_v22 }
 0x2a9   : > { %2777 = vperm.xlu1 %6643, %v11077_v62   ;;  %v2422_v62 = vadd.f32 %v2390_v28, %v11100_v4 }
 0x2ab   : > { %v2526_v19 = vpop.permute.xlu1 %2525 }
 0x2ac   : > { %v2611_v51 = vmul.f32 %v8285_v15, %v2526_v19  ;;  %v11110_v19 = vpack.i.bf16 %v11108_v55, %v11109_v5  ;;  %v11118_v5 = vld [vmem:[#allocation5_spill] sm:$0xff] }
 0x2ad   : > { %6644 = vset.pattern.permute.xlu1 %v11055_v57 }
 0x2ae   : > { %2965 = vperm.xlu1 %6644, %v11080_v36   ;;  %v9152_v22 = vadd.f32 %v2611_v51, %v2415_v7  ;;  %v9166_v36 = vpop.permute.xlu0 %2515  ;;  %v11111_v7 = vld [vmem:[#allocation60_spill] sm:$0xff] }
 0x2af   : > { %v2561_v52 = vpop.permute.xlu1 %2560  ;;  %v1965_v51 = vmul.f32 %v11095_v63, %v11111_v7  ;;  %v11119_v7 = vld [vmem:[#allocation143_spill] sm:$0xff] }
 0x2b0   : > { %v2618_v12 = vmul.f32 %v8285_v15, %v2561_v52  ;;  %v11112_v52 = vld [vmem:[#allocation91_spill] sm:$0xff] }
 0x2b1   : > { %v1769_v4 = vmul.f32 %v8254_v29, %v11112_v52  ;;  %v11120_v52 = vld [vmem:[#allocation88_spill] sm:$0xff] }
 0x2b2   : > { %6645 = vset.pattern.permute.xlu1 %v10729_v2  ;;  %v9160_v3 = vadd.f32 %v2618_v12, %v2422_v62  ;;  %v9180_v9 = vpop.permute.xlu0 %2520  ;;  %v11113_v62 = vld [vmem:[#allocation127_spill] sm:$0xff] }
 0x2b3   : > { %6647 = vperm.xlu1 %6645, %v11103_v11   ;;  %v2193_v12 = vmul.f32 %v11098_v10, %v11113_v62  ;;  %v1997_v11 = vadd.f32 %v1965_v51, %v1769_v4  ;;  %v3009_v51 = vmul.f32 %v8298_v27, %v11119_v7  ;;  %v1765_v4 = vmul.f32 %v8254_v29, %v11120_v52  ;;  %v11121_v62 = vld [vmem:[#allocation123_spill] sm:$0xff]  ;;  %v4742_v52 = vld [vmem:[%s10432_s8 + $0x8] sm:$0xff] }
 0x2b4   : > { %v9162_v18 = vpop.permute.xlu1 %2725 }
 0x2b5   : > { %v2225_v20 = vadd.f32 %v2193_v12, %v1997_v11  ;;  %v11122_v11 = vld [vmem:[#allocation63_spill] sm:$0xff] }
 0x2b7   : > { %6652 = vset.pattern.permute.xlu1 %v11055_v57 }
 0x2b8   : > { %2941 = vperm.xlu1 %6652, %v11091_v53  }
 0x2b9   : > { %v2322_v44 = vpop.permute.xlu1 %2321 }
 0x2ba   : > { %v2386_v30 = vmul.f32 %v8272_v58, %v2322_v44  ;;  %v2556_v44 = vpop.permute.xlu0 %2555 }
 0x2bb   : > { %v2617_v0 = vmul.f32 %v8285_v15, %v2556_v44 }
 0x2bc   : > { %2969 = vperm.xlu1 %6652, %v11063_v45   ;;  %v9173_v17 = vadd.f32 %v2386_v30, %v11105_v33  ;;  %v2391_v45 = vmul.f32 %v8272_v58, %v2342_v26 }
 0x2be   : > { %v2531_v53 = vpop.permute.xlu1 %2530  ;;  %v2423_v26 = vadd.f32 %v2391_v45, %v2227_v43 }
 0x2bf   : > { %v2612_v41 = vmul.f32 %v8285_v15, %v2531_v53  ;;  %v11117_v53 = vpack.i.bf16 %v11115_v24, %v11116_v14 }
 0x2c0   : > { %6653 = vset.pattern.permute.xlu1 %v10729_v2 }
 0x2c1   : > { %6655 = vperm.xlu1 %6653, %v11110_v19   ;;  %v9189_v28 = vadd.f32 %v2612_v41, %v2416_v32  ;;  %v11114_v32 = vld [vmem:[#allocation78_spill] sm:$0xff]  ;;  %v1961_v19 = vmul.f32 %v11095_v63, %v11118_v5 }
 0x2c2   : > { %v2566_v50 = vpop.permute.xlu1 %2565  ;;  %v2389_v61 = vmul.f32 %v8272_v58, %v11114_v32 }
 0x2c3   : > { %v2619_v6 = vmul.f32 %v8285_v15, %v2566_v50 }
 0x2c4   : > { %v2421_v13 = vadd.f32 %v2389_v61, %v2225_v20 }
 0x2c5   : > { %6659 = vset.pattern.permute.xlu1 %v11055_v57  ;;  %v9198_v30 = vadd.f32 %v2619_v6, %v2423_v26  ;;  %v1993_v26 = vadd.f32 %v1961_v19, %v1765_v4  ;;  %v2385_v6 = vmul.f32 %v8272_v58, %v9143_v59 }
 0x2c6   : > { %2945 = vperm.xlu1 %6659, %v11076_v38   ;;  %v2649_v41 = vadd.f32 %v2617_v0, %v2421_v13  ;;  %v11124_v0 = vpack.i.bf16 %v8850_v60, %v8864_v23  ;;  %v11127_v23 = vld [vmem:[#allocation146_spill] sm:$0xff] }
 0x2c7   : > { %v2754_v33 = vpop.permute.xlu1 %2753 }
 0x2c8   : > { %v2812_v42 = vmul.f32 %v8291_v34, %v2754_v33 }
 0x2ca   : > { %6681 = vset.pattern.permute.xlu1 %v10729_v2  ;;  %v2844_v38 = vadd.f32 %v2812_v42, %v2648_v21  ;;  %v2189_v21 = vmul.f32 %v11098_v10, %v11121_v62  ;;  %v11125_v42 = vld [vmem:[#allocation112_spill] sm:$0xff] }
 0x2cb   : > { %6683 = vperm.xlu1 %6681, %v11117_v53   ;;  %v2758_v45 = vpop.permute.xlu1 %2757  ;;  %v2809_v59 = vmul.f32 %v8291_v34, %v11125_v42 }
 0x2cc   : > { %v2813_v55 = vmul.f32 %v8291_v34, %v2758_v45  ;;  %v2221_v32 = vadd.f32 %v2189_v21, %v1993_v26 }
 0x2ce   : > { %v2845_v43 = vadd.f32 %v2813_v55, %v2649_v41  ;;  %v2417_v20 = vadd.f32 %v2385_v6, %v2221_v32  ;;  %v3010_v55 = vmul.f32 %v8298_v27, %v11127_v23  ;;  %v4743_v6 = vld [vmem:[%s10432_s8 + $0x10] sm:$0xff] }
 0x2cf   : > { %6687 = vset.pattern.permute.xlu1 %v11055_v57 }
 0x2d0   : > { %2977 = vperm.xlu1 %6687, %v11087_v25   ;;  %v9219_v12 = vadd.f32 %v3009_v51, %v2845_v43  ;;  %v2354_v50 = vpop.permute.xlu1 %2353  ;;  %v11123_v25 = vpack.i.bf16 %v8809_v47, %v8818_v8 }
 0x2d1   : > { %v2394_v57 = vmul.f32 %v8272_v58, %v2354_v50 }
 0x2d3   : > { %v2426_v44 = vadd.f32 %v2394_v57, %v11122_v11  ;;  %v4744_v11 = vld [vmem:[%s10432_s8 + $0x18] sm:$0xff] }
 0x2d4   : > { %6693 = vset.pattern.permute.xlu1 %v10729_v2  ;;  %v11126_v2 = vld [vmem:[#allocation148_spill] sm:$0xff] }
 0x2d5   : > { %6695 = vperm.xlu1 %6693, %v11123_v25   ;;  %v2536_v61 = vpop.permute.xlu1 %2535  ;;  %v3005_v14 = vmul.f32 %v8298_v27, %v11126_v2  ;;  %v6480_v25 = vpack.c.bf16 %v4744_v11, %v4743_v6 }
 0x2d6   : > { %v2613_v33 = vmul.f32 %v8285_v15, %v2536_v61 }
 0x2d8   : > { %v2645_v24 = vadd.f32 %v2613_v33, %v2417_v20  ;;  %v4746_v20 = vld [vmem:[%s10432_s8 + $0x28] sm:$0xff] }
 0x2d9   : > { %6700 = vperm.xlu1 %6693, %v11124_v0   ;;  %v2571_v0 = vpop.permute.xlu0 %2570 }
 0x2da   : > { %v2841_v53 = vadd.f32 %v2809_v59, %v2645_v24  ;;  %v4748_v59 = vld [vmem:[%s10432_s8 + $0x38] sm:$0xff] }
 0x2db   : > { %v2734_v13 = vpop.permute.xlu1 %2733 }
 0x2dc   : > { %v2807_v47 = vmul.f32 %v8291_v34, %v2734_v13  ;;  %v9238_v8 = vadd.f32 %v3005_v14, %v2841_v53  ;;  %v11128_v14 = vld [vmem:[#allocation84_spill] sm:$0xff]  ;;  %v2620_v13 = vmul.f32 %v8285_v15, %v2571_v0 }
 0x2dd   : > { %v2392_v53 = vmul.f32 %v8272_v58, %v11128_v14  ;;  %v5073_v0 = vld [vmem:[%s10433_s9 + $0x18] sm:$0xff] }
 0x2de   : > { %v9241_v45 = vadd.f32 %v2807_v47, %v9152_v22  ;;  %v4741_v22 = vld [vmem:[%s10432_s8] sm:$0xff] }
 0x2df   : > { %v2762_v41 = vpop.permute.xlu1 %2761  ;;  %v6476_v62 = vpack.c.bf16 %v4742_v52, %v4741_v22  ;;  %v11130_v22 = vld [vmem:[#allocation21_spill] sm:$0xff] }
 0x2e0   : > { %v2814_v60 = vmul.f32 %v8291_v34, %v2762_v41  ;;  %v11129_v41 = vld [vmem:[#allocation54_spill] sm:$0xff]  ;;  %v1971_v52 = vmul.f32 %v11095_v63, %v11130_v22 }
 0x2e1   : > { %6477 = vmatprep.subr.bf16.mxu1 %v6476_v62 }
 0x2e2   : > { %v2846_v5 = vadd.f32 %v2814_v60, %v9160_v3  ;;  %6479 = vmatpush3.bf16.msra.mxu1 %v6476_v62  ;;  %v2424_v60 = vadd.f32 %v2392_v53, %v11129_v41  ;;  %v5070_v62 = vld [vmem:[%s10433_s9] sm:$0xff]  ;;  %v9322_v53 = vpop.permute.xlu0 %2540 }
 0x2e3   : > { %6481 = vmatprep.subr.bf16.mxu1 %v6480_v25 }
 0x2e4   : > { %v9247_v19 = vadd.f32 %v3010_v55, %v2846_v5  ;;  %v2652_v55 = vadd.f32 %v2620_v13, %v2424_v60  ;;  %v11133_v60 = vld [vmem:[#allocation19_spill] sm:$0xff] }
 0x2e5   : > { %v9249_v7 = vpop.permute.xlu1 %2921 }
 0x2e6   : > { %6483 = vmatpush3.bf16.msra.mxu1 %v6480_v25 }
 0x2ea   : > { %v2358_v51 = vpop.permute.xlu1 %2357 }
 0x2ef   : > { %v9251_v43 = vpop.permute.xlu1 %2575 }
 0x2f4   : > { %v2738_v4 = vpop.permute.xlu1 %2737 }
 0x2f5   : > { %v2808_v21 = vmul.f32 %v8291_v34, %v2738_v4 }
 0x2f7   : > { %v9261_v3 = vadd.f32 %v2808_v21, %v9189_v28  ;;  %v4745_v28 = vld [vmem:[%s10432_s8 + $0x20] sm:$0xff] }
 0x2f8   : > { %v6484_v33 = vpack.c.bf16 %v4746_v20, %v4745_v28  ;;  %v11131_v21 = vld [vmem:[#allocation97_spill] sm:$0xff]  ;;  %v2395_v20 = vmul.f32 %v8272_v58, %v2358_v51  ;;  %v2610_v51 = vmul.f32 %v8285_v15, %v9180_v9 }
 0x2f9   : > { %v2926_v50 = vpop.permute.xlu1 %2925  ;;  %v5074_v9 = vld [vmem:[%s10433_s9 + $0x20] sm:$0xff] }
 0x2fa   : > { %6485 = vmatprep.subr.bf16.mxu1 %v6484_v33  ;;  %v2642_v13 = vadd.f32 %v2610_v51, %v9080_v40  ;;  %v5075_v40 = vld [vmem:[%s10433_s9 + $0x28] sm:$0xff]  ;;  %v11139_v51 = vld [vmem:[#allocation75_spill] sm:$0xff] }
 0x2fb   : > { %6487 = vmatpush3.bf16.msra.mxu1 %v6484_v33  ;;  %v5072_v33 = vld [vmem:[%s10433_s9 + $0x10] sm:$0xff] }
 0x2fd   : > { %v2950_v57 = vpop.permute.xlu1 %2949 }
 0x2fe   : > { %v3008_v26 = vmul.f32 %v8298_v27, %v2950_v57  ;;  %v1775_v57 = vmul.f32 %v8254_v29, %v11131_v21  ;;  %v11134_v21 = vld [vmem:[#allocation39_spill] sm:$0xff] }
 0x300   : > { %v9270_v32 = vadd.f32 %v3008_v26, %v2844_v38  ;;  %v4747_v38 = vld [vmem:[%s10432_s8 + $0x30] sm:$0xff]  ;;  %v2003_v28 = vadd.f32 %v1971_v52, %v1775_v57  ;;  %v1957_v57 = vmul.f32 %v11095_v63, %v11134_v21  ;;  %v11141_v21 = vld [vmem:[#allocation150_spill] sm:$0xff] }
 0x301   : > { %v6488_v2 = vpack.c.bf16 %v4748_v59, %v4747_v38  ;;  %v11132_v26 = vld [vmem:[#allocation131_spill] sm:$0xff]  ;;  %v6496_v38 = vpack.c.bf16 %v5073_v0, %v5072_v33 }
 0x302   : > { %v9272_v61 = vpop.permute.xlu1 %2545  ;;  %v2199_v6 = vmul.f32 %v11098_v10, %v11132_v26 }
 0x303   : > { %6489 = vmatprep.subr.bf16.mxu1 %v6488_v2 }
 0x304   : > { %6491 = vmatpush3.bf16.msra.mxu1 %v6488_v2 }
 0x306   : > { %v2581_v42 = vpop.permute.xlu1 %2580 }
 0x307   : > { %v2622_v24 = vmul.f32 %v8285_v15, %v2581_v42  ;;  %v2231_v42 = vadd.f32 %v2199_v6, %v2003_v28  ;;  %v11136_v6 = vld [vmem:[#allocation83_spill] sm:$0xff] }
 0x308   : > { %v11137_v28 = vld [vmem:[#allocation119_spill] sm:$0xff] }
 0x309   : > { %v9290_v47 = vadd.f32 %v2622_v24, %v2426_v44  ;;  %v5071_v44 = vld [vmem:[%s10433_s9 + $0x8] sm:$0xff]  ;;  %v2427_v24 = vadd.f32 %v2395_v20, %v2231_v42  ;;  %v2185_v20 = vmul.f32 %v11098_v10, %v11137_v28 }
 0x30a   : > { %v6492_v25 = vpack.c.bf16 %v5071_v44, %v5070_v62  ;;  %v6500_v44 = vpack.c.bf16 %v5075_v40, %v5074_v9 }
 0x30b   : > { %v2770_v23 = vpop.permute.xlu1 %2769 }
 0x30c   : > { %v2816_v5 = vmul.f32 %v8291_v34, %v2770_v23  ;;  %6493 = vmatprep.subr.bf16.mxu0 %v6492_v25  ;;  %v2806_v23 = vmul.f32 %v8291_v34, %v11133_v60 }
 0x30d   : > { %6495 = vmatpush3.bf16.msra.mxu0 %v6492_v25  ;;  %v1761_v25 = vmul.f32 %v8254_v29, %v11136_v6 }
 0x30e   : > { %v9296_v4 = vadd.f32 %v2816_v5, %v2652_v55  ;;  %6497 = vmatprep.subr.bf16.mxu0 %v6496_v38  ;;  %v3002_v55 = vmul.f32 %v8298_v27, %v2926_v50  ;;  %v6678_v5 = vpop.permute.xlu0 %6677  ;;  %v2838_v22 = vadd.f32 %v2806_v23, %v2642_v13  ;;  %v2381_v13 = vmul.f32 %v8272_v58, %v11139_v51  ;;  %v9363_v23 = vld [vmem:[%s10428_s4] ss:$0 sm:$0xff] }
 0x30f   : > { %v9340_v26 = vunpack.i.l.bf16 %v6678_v5 }
 0x310   : > { %v9308_v11 = vpop.permute.xlu1 %2929  ;;  %v3034_v62 = vadd.f32 %v3002_v55, %v2838_v22 }
 0x311   : > { %6499 = vmatpush3.bf16.msra.mxu0 %v6496_v38  ;;  %11135 = vst [vmem:[#allocation106_spill] sm:$0xff] %v9340_v26  ;;  %v5076_v38 = vld [vmem:[%s10433_s9 + $0x30] sm:$0xff] }
 0x312   : > { %6501 = vmatprep.subr.bf16.mxu0 %v6500_v44  ;;  %v9346_v33 = vpop.permute.xlu0 %6689  ;;  %v3226_v0 = vmul.f32 %v9340_v26, %v3034_v62  ;;  %v9368_v62 = vunpack.i.h.bf16 %v6678_v5  ;;  %v2805_v5 = vmul.f32 %v8291_v34, %v9162_v18 }
 0x313   : > { %v9350_v42 = vunpack.i.h.bf16 %v9346_v33 }
 0x314   : > { %v9366_v55 = vadd.f32 %v9363_v23, %v3226_v0  ;;  %11140 = vst [vmem:[#allocation16_spill] sm:$0xff] %v9368_v62  ;;  %v3232_v6 = vmul.f32 %v9368_v62, %v9270_v32 }
 0x315   : > { %v2586_v59 = vpop.permute.xlu1 %2585  ;;  %6503 = vmatpush3.bf16.msra.mxu0 %v6500_v44  ;;  %11138 = vst [vmem:[#allocation41_spill] sm:$0xff] %v9350_v42  ;;  %v3229_v9 = vmul.f32 %v9350_v42, %v9238_v8  ;;  %v2609_v44 = vmul.f32 %v8285_v15, %v9166_v36 }
 0x316   : > { %v2623_v2 = vmul.f32 %v8285_v15, %v2586_v59  ;;  %v5077_v59 = vld [vmem:[%s10433_s9 + $0x38] sm:$0xff]  ;;  %v3297_v8 = vmax.f32 %v9366_v55, 0.0  ;;  %v9393_v32 = vadd.f32 %v9363_v23, %v3232_v6  ;;  %v11147_v6 = vld [vmem:[#allocation46_spill] sm:$0xff] }
 0x317   : > { %v9388_v36 = vadd.f32 %v9363_v23, %v3229_v9  ;;  %v11144_v9 = vld [vmem:[#allocation90_spill] sm:$0xff] }
 0x318   : > { %v9320_v14 = vadd.f32 %v2623_v2, %v2427_v24  ;;  %v1989_v24 = vadd.f32 %v1957_v57, %v1761_v25  ;;  %v6504_v2 = vpack.c.bf16 %v5077_v59, %v5076_v38  ;;  %v3014_v57 = vmul.f32 %v8298_v27, %v11141_v21  ;;  %v11146_v21 = vld [vmem:[#allocation44_spill] sm:$0xff] }
 0x319   : > { %v3001_v59 = vmul.f32 %v8298_v27, %v9249_v7  ;;  %v10562_v18 = vmax.f32 %v9388_v36, 0.0  ;;  %v1767_v7 = vmul.f32 %v8254_v29, %v11144_v9  ;;  %v11150_v9 = vld [vmem:[#allocation129_spill] sm:$0xff] }
 0x31a   : > { %v9325_v41 = vpop.permute.xlu1 %2745  ;;  %v2217_v60 = vadd.f32 %v2185_v20, %v1989_v24  ;;  %6505 = vmatprep.subr.bf16.mxu0 %v6504_v2  ;;  %v3438_v24 = vsel %vm3311_vm14, %v3297_v8, -inf }
 0x31b   : > { %6507 = vmatpush3.bf16.msra.mxu0 %v6504_v2 }
 0x31c   : > { %v2413_v28 = vadd.f32 %v2381_v13, %v2217_v60  ;;  %v3439_v13 = vrot.slane %v3438_v24, 4  ;;  %v10571_v60 = vmax.f32 %v9393_v32, 0.0 }
 0x31e   : > { %v2641_v38 = vadd.f32 %v2609_v44, %v2413_v28 }
 0x31f   : > { %v9330_v52 = vpop.permute.xlu1 %2933 }
 0x323   : > { %v2962_v50 = vpop.permute.xlu1 %2961 }
 0x328   : > { %v2778_v22 = vpop.permute.xlu1 %2777 }
 0x329   : > { %v2818_v40 = vmul.f32 %v8291_v34, %v2778_v22 }
 0x32b   : > { %v2850_v25 = vadd.f32 %v2818_v40, %v9290_v47  ;;  %v2837_v47 = vadd.f32 %v2805_v5, %v2641_v38  ;;  %v11145_v40 = vld [vmem:[#allocation95_spill] sm:$0xff]  ;;  %v3459_v38 = vsel %vm3311_vm14, %v10562_v18, -inf }
 0x32c   : > { %v1773_v44 = vmul.f32 %v8254_v29, %v11145_v40  ;;  %v2197_v40 = vmul.f32 %v11098_v10, %v11150_v9  ;;  %v3460_v9 = vrot.slane %v3459_v38, 4 }
 0x32d   : > { %v9383_v20 = vadd.f32 %v3014_v57, %v2850_v25  ;;  %v9385_v0 = vpop.permute.xlu1 %2965  ;;  %v3033_v2 = vadd.f32 %v3001_v59, %v2837_v47  ;;  %v1963_v57 = vmul.f32 %v11095_v63, %v11146_v21  ;;  %v1969_v25 = vmul.f32 %v11095_v63, %v11147_v6  ;;  %v11148_v59 = vld [vmem:[#allocation20_spill] sm:$0xff] }
 0x32e   : > { %v2815_v47 = vmul.f32 %v8291_v34, %v11148_v59  ;;  %v3011_v63 = vmul.f32 %v8298_v27, %v2962_v50  ;;  %v11151_v50 = vld [vmem:[#allocation87_spill] sm:$0xff] }
 0x32f   : > { %v1995_v42 = vadd.f32 %v1963_v57, %v1767_v7  ;;  %v2393_v26 = vmul.f32 %v8272_v58, %v11151_v50 }
 0x332   : > { %v6648_v51 = vpop.permute.xlu1 %6647 }
 0x333   : > { %v9398_v55 = vunpack.i.h.bf16 %v6648_v51  ;;  %v9400_v22 = vunpack.i.l.bf16 %v6648_v51  ;;  %v11149_v51 = vld [vmem:[#allocation125_spill] sm:$0xff] }
 0x334   : > { %v2191_v29 = vmul.f32 %v11098_v10, %v11149_v51  ;;  %v2847_v10 = vadd.f32 %v2815_v47, %v9198_v30 }
 0x335   : > { %11142 = vst [vmem:[#allocation107_spill] sm:$0xff] %v9398_v55  ;;  %11143 = vst [vmem:[#allocation8_spill] sm:$0xff] %v9400_v22  ;;  %v3224_v28 = vmul.f32 %v9400_v22, %v9129_v31  ;;  %v3225_v5 = vmul.f32 %v9398_v55, %v3033_v2  ;;  %v9423_v21 = vpop.f32.mrb[0].mxu0  ;;  %v3440_v31 = vmax.f32 %v3438_v24, %v3439_v13  ;;  %v3480_v2 = vsel %vm3311_vm14, %v10571_v60, -inf  ;;  %v11152_v22 = vld [vmem:[#allocation89_spill] sm:$0xff] }
 0x336   : > { %v9430_v18 = vpop.f32.mrb[1].mxu0  ;;  %v2001_v24 = vadd.f32 %v1969_v25, %v1773_v44  ;;  %v2387_v60 = vmul.f32 %v8272_v58, %v11152_v22  ;;  %v2223_v62 = vadd.f32 %v2191_v29, %v1995_v42  ;;  %v3481_v46 = vrot.slane %v3480_v2, 4  ;;  %v11154_v42 = vld [vmem:[#allocation114_spill] sm:$0xff] }
 0x337   : > { %v9428_v6 = vpop.permute.xlu1 %2941  ;;  %v3263_v59 = vadd.f32 %v9363_v23, %v3224_v28  ;;  %v3264_v51 = vadd.f32 %v9363_v23, %v3225_v5  ;;  %v3043_v1 = vadd.f32 %v3011_v63, %v2847_v10  ;;  %v3441_v28 = vrot.slane %v3440_v31, 2  ;;  %v11155_v63 = vld [vmem:[#allocation116_spill] sm:$0xff] }
 0x338   : > { %v2229_v35 = vadd.f32 %v2197_v40, %v2001_v24  ;;  %v9445_v44 = vunpack.i.l.bf16 %v9346_v33  ;;  %v3461_v58 = vmax.f32 %v3459_v38, %v3460_v9  ;;  %v9450_v22 = vmul.f32 %v8291_v34, %v11154_v42  ;;  %v6706_v9 = vpop.permute.xlu0 %6705 }
 0x339   : > { %v3295_v13 = vmax.f32 %v3263_v59, 0.0  ;;  %v3296_v55 = vmax.f32 %v3264_v51, 0.0  ;;  %v3003_v5 = vmul.f32 %v8298_v27, %v9308_v11  ;;  %v3482_v47 = vmax.f32 %v3480_v2, %v3481_v46 }
 0x33a   : > { %11153 = vst [vmem:[#allocation9_spill] sm:$0xff] %v9445_v44  ;;  %v3235_v29 = vmul.f32 %v9445_v44, %v3043_v1  ;;  %v9458_v59 = vmul.f32 %v8291_v34, %v11155_v63  ;;  %v3442_v51 = vmax.f32 %v3440_v31, %v3441_v28  ;;  %v2419_v10 = vadd.f32 %v2387_v60, %v2223_v62 }
 0x33b   : > { %v9439_v16 = vpop.permute.xlu1 %2969  ;;  %v3424_v7 = vsel %vm3311_vm14, %v3295_v13, -inf  ;;  %6348 = vmatprep.mubr.msk.f32.mxu0 %vm3311_vm14, %v3295_v13  ;;  %v3431_v30 = vsel %vm3311_vm14, %v3296_v55, -inf  ;;  %v2425_v50 = vadd.f32 %v2393_v26, %v2229_v35  ;;  %v3462_v46 = vrot.slane %v3461_v58, 2 }
 0x33c   : > { %v3425_v57 = vrot.slane %v3424_v7, 4  ;;  %v3432_v25 = vrot.slane %v3431_v30, 4  ;;  %6349 = vmatmul.mubr.msk.f32.gmra.mrb[16].mxu0 %vm3311_vm14, %v3296_v55  ;;  %v11156_v55 = vld [vmem:[#allocation118_spill] sm:$0xff]  ;;  %v2614_v1 = vmul.f32 %v8285_v15, %v9322_v53  ;;  %v3035_v2 = vadd.f32 %v3003_v5, %v9241_v45 }
 0x33d   : > { %6351 = vmatprep.mubr.msk.f32.mxu0 %vm3311_vm14, %v3297_v8  ;;  %v9462_v38 = vmul.f32 %v8291_v34, %v11156_v55  ;;  %v9474_v35 = vunpack.i.h.bf16 %v6706_v9  ;;  %v3443_v26 = vrot.slane %v3442_v51, 1  ;;  %v2621_v45 = vmul.f32 %v8285_v15, %v9251_v43 }
 0x33e   : > { %v3426_v40 = vmax.f32 %v3424_v7, %v3425_v57  ;;  %v3433_v33 = vmax.f32 %v3431_v30, %v3432_v25  ;;  %v3483_v30 = vrot.slane %v3482_v47, 2  ;;  %v9472_v57 = vadd.f32 %v9363_v23, %v3235_v29 }
 0x33f   : > { %11158 = vst [vmem:[#allocation18_spill] sm:$0xff] %v9474_v35  ;;  %v9485_v29 = vmax.f32 %v3461_v58, %v3462_v46  ;;  %v3004_v58 = vmul.f32 %v8298_v27, %v9330_v52  ;;  %v2653_v44 = vadd.f32 %v2621_v45, %v2425_v50 }
 0x340   : > { %v3427_v11 = vrot.slane %v3426_v40, 2  ;;  %v3434_v24 = vrot.slane %v3433_v33, 2  ;;  %v6656_v8 = vpop.permute.xlu1 %6655  ;;  %v3306_v43 = vmax.f32 %v9472_v57, 0.0 }
 0x341   : > { %v9467_v13 = vunpack.i.h.bf16 %v6656_v8  ;;  %v9469_v7 = vunpack.i.l.bf16 %v6656_v8 }
 0x342   : > { %v3428_v62 = vmax.f32 %v3426_v40, %v3427_v11  ;;  %v3435_v60 = vmax.f32 %v3433_v33, %v3434_v24  ;;  %v9479_v28 = vpop.f32.mrb[2].mxu0  ;;  %v9487_v40 = vunpack.i.l.bf16 %v6706_v9  ;;  %v2615_v33 = vmul.f32 %v8285_v15, %v9272_v61 }
 0x343   : > { %11157 = vst [vmem:[#allocation13_spill] sm:$0xff] %v9467_v13  ;;  %v3227_v31 = vmul.f32 %v9467_v13, %v3035_v2  ;;  %v3233_v53 = vmul.f32 %v9469_v7, %v9219_v12  ;;  %v9483_v5 = vpop.f32.mrb[3].mxu0  ;;  %v3484_v11 = vmax.f32 %v3482_v47, %v3483_v30  ;;  %v3444_v2 = vmax.f32 %v3442_v51, %v3443_v26 }
 0x344   : > { %v3429_v25 = vrot.slane %v3428_v62, 1  ;;  %v3436_v42 = vrot.slane %v3435_v60, 1  ;;  %11159 = vst [vmem:[#allocation113_spill] sm:$0xff] %v9487_v40  ;;  %v2646_v15 = vadd.f32 %v2614_v1, %v9173_v17  ;;  %v3464_v61 = vrot.slane %v9485_v29, 1 }
 0x345   : > { %v2946_v63 = vpop.permute.xlu1 %2945  ;;  %v3266_v55 = vadd.f32 %v9363_v23, %v3227_v31  ;;  %v9493_v12 = vadd.f32 %v9363_v23, %v3233_v53  ;;  %v2647_v53 = vadd.f32 %v2615_v33, %v2419_v10  ;;  %v3485_v30 = vrot.slane %v3484_v11, 1 }
 0x346   : > { %v3430_v24 = vmax.f32 %v3428_v62, %v3429_v25  ;;  %v3437_v8 = vmax.f32 %v3435_v60, %v3436_v42  ;;  %v3501_v17 = vsel %vm3311_vm14, %v3306_v43, -inf  ;;  %v2810_v10 = vmul.f32 %v8291_v34, %v9325_v41 }
 0x347   : > { %v3298_v9 = vmax.f32 %v3266_v55, 0.0  ;;  %v3304_v46 = vmax.f32 %v9493_v12, 0.0  ;;  %v3036_v60 = vadd.f32 %v3004_v58, %v9261_v3  ;;  %v3012_v25 = vmul.f32 %v8298_v27, %v9385_v0 }
 0x348   : > { %v3914_v31 = vsel %vm3893_vm3, %v3437_v8, %v3430_v24  ;;  %v2849_v42 = vadd.f32 %v9450_v22, %v2653_v44  ;;  %v3502_v24 = vrot.slane %v3501_v17, 4  ;;  %v2843_v8 = vadd.f32 %v9458_v59, %v2647_v53 }
 0x349   : > { %v3445_v47 = vsel %vm3311_vm14, %v3298_v9, -inf  ;;  %6352 = vmatmul.mubr.msk.f32.gmra.mrb[18].mxu0 %vm3311_vm14, %v3298_v9  ;;  %v3487_v51 = vsel %vm3311_vm14, %v3304_v46, -inf  ;;  %v3915_v52 = vsel %vm3895_vm4, %v3444_v2, %v3914_v31  ;;  %v3486_v3 = vmax.f32 %v3484_v11, %v3485_v30 }
 0x34a   : > { %v3446_v50 = vrot.slane %v3445_v47, 4  ;;  %v6684_v1 = vpop.permute.xlu1 %6683  ;;  %v3488_v62 = vrot.slane %v3487_v51, 4  ;;  %v3238_v41 = vmul.f32 %v9487_v40, %v9383_v20  ;;  %v2842_v31 = vadd.f32 %v2810_v10, %v2646_v15 }
 0x34b   : > { %v9514_v26 = vunpack.i.h.bf16 %v6684_v1  ;;  %v9516_v45 = vunpack.i.l.bf16 %v6684_v1  ;;  %v2851_v22 = vadd.f32 %v9462_v38, %v9320_v14  ;;  %v3503_v30 = vmax.f32 %v3501_v17, %v3502_v24 }
 0x34c   : > { %v3447_v33 = vmax.f32 %v3445_v47, %v3446_v50  ;;  %v3489_v55 = vmax.f32 %v3487_v51, %v3488_v62  ;;  %v3006_v15 = vmul.f32 %v8298_v27, %v9428_v6  ;;  %v9543_v10 = vadd.f32 %v9363_v23, %v3238_v41 }
 0x34d   : > { %11160 = vst [vmem:[#allocation15_spill] sm:$0xff] %v9514_v26  ;;  %v3228_v2 = vmul.f32 %v9514_v26, %v3036_v60  ;;  %v3234_v34 = vmul.f32 %v9516_v45, %v9247_v19  ;;  %v3044_v19 = vadd.f32 %v3012_v25, %v9296_v4  ;;  %v3013_v4 = vmul.f32 %v8298_v27, %v9439_v16 }
 0x34e   : > { %v3448_v58 = vrot.slane %v3447_v33, 2  ;;  %v3490_v0 = vrot.slane %v3489_v55, 2  ;;  %v3007_v60 = vmul.f32 %v8298_v27, %v2946_v63 }
 0x34f   : > { %v9527_v9 = vpop.f32.mrb[4].mxu0  ;;  %v2978_v44 = vpop.permute.xlu1 %2977  ;;  %v3267_v59 = vadd.f32 %v9363_v23, %v3228_v2  ;;  %v9535_v53 = vadd.f32 %v9363_v23, %v3234_v34  ;;  %v11161_v2 = vmax.f32 %v9388_v36, 0.0  ;;  %v3038_v34 = vadd.f32 %v3006_v15, %v2842_v31 }
 0x350   : > { %v9531_v47 = vpop.f32.mrb[5].mxu0  ;;  %v3449_v11 = vmax.f32 %v3447_v33, %v3448_v58  ;;  %v3015_v20 = vmul.f32 %v8298_v27, %v2978_v44  ;;  %v3491_v51 = vmax.f32 %v3489_v55, %v3490_v0  ;;  %v10584_v0 = vmax.f32 %v9543_v10, 0.0 }
 0x351   : > { %v3299_v50 = vmax.f32 %v3267_v59, 0.0  ;;  %v3305_v14 = vmax.f32 %v9535_v53, 0.0  ;;  %v3504_v59 = vrot.slane %v3503_v30, 2  ;;  %v3039_v31 = vadd.f32 %v3007_v60, %v2843_v8 }
 0x352   : > { %v3450_v38 = vrot.slane %v3449_v11, 1  ;;  %v3047_v1 = vadd.f32 %v3015_v20, %v2851_v22  ;;  %v3492_v62 = vrot.slane %v3491_v51, 1  ;;  %v3465_v8 = vmax.f32 %v9485_v29, %v3464_v61 }
 0x353   : > { %v3452_v25 = vsel %vm3311_vm14, %v3299_v50, -inf  ;;  %6354 = vmatprep.mubr.msk.f32.mxu0 %vm3311_vm14, %v3299_v50  ;;  %v3494_v6 = vsel %vm3311_vm14, %v3305_v14, -inf }
 0x354   : > { %v3451_v17 = vmax.f32 %v3449_v11, %v3450_v38  ;;  %v3239_v33 = vmul.f32 %v9474_v35, %v3047_v1  ;;  %v3453_v55 = vrot.slane %v3452_v25, 4  ;;  %v6696_v24 = vpop.permute.xlu1 %6695  ;;  %6355 = vmatmul.mubr.msk.f32.gmra.mrb[20].mxu0 %vm3311_vm14, %v11161_v2  ;;  %v3493_v16 = vmax.f32 %v3491_v51, %v3492_v62 }
 0x355   : > { %v9557_v27 = vunpack.i.h.bf16 %v6696_v24  ;;  %v9559_v63 = vunpack.i.l.bf16 %v6696_v24  ;;  %v3495_v41 = vrot.slane %v3494_v6, 4  ;;  %v3045_v51 = vadd.f32 %v3013_v4, %v2849_v42 }
 0x356   : > { %v3454_v58 = vmax.f32 %v3452_v25, %v3453_v55  ;;  %v3916_v44 = vsel %vm3897_vm5, %v3451_v17, %v3915_v52  ;;  %v3921_v22 = vsel %vm3893_vm3, %v3493_v16, %v3486_v3  ;;  %v9567_v15 = vadd.f32 %v9363_v23, %v3239_v33 }
 0x357   : > { %11162 = vst [vmem:[#allocation115_spill] sm:$0xff] %v9557_v27  ;;  %11163 = vst [vmem:[#allocation53_spill] sm:$0xff] %v9559_v63  ;;  %v3230_v11 = vmul.f32 %v9557_v27, %v3038_v34  ;;  %v3236_v36 = vmul.f32 %v9559_v63, %v3044_v19  ;;  %v3496_v20 = vmax.f32 %v3494_v6, %v3495_v41  ;;  %v3522_v42 = vsel %vm3311_vm14, %v10584_v0, -inf }
 0x358   : > { %v3455_v50 = vrot.slane %v3454_v58, 2  ;;  %v6701_v38 = vpop.permute.xlu1 %6700  ;;  %v3505_v19 = vmax.f32 %v3503_v30, %v3504_v59  ;;  %v10585_v55 = vmax.f32 %v9567_v15, 0.0  ;;  %v3523_v30 = vrot.slane %v3522_v42, 4 }
 0x359   : > { %v9569_v1 = vunpack.i.h.bf16 %v6701_v38  ;;  %v9571_v62 = vunpack.i.l.bf16 %v6701_v38  ;;  %v3269_v52 = vadd.f32 %v9363_v23, %v3230_v11  ;;  %v3497_v3 = vrot.slane %v3496_v20, 2 }
 0x35a   : > { %v3456_v25 = vmax.f32 %v3454_v58, %v3455_v50  ;;  %v9575_v17 = vadd.f32 %v9363_v23, %v3236_v36  ;;  %v11166_v0 = vmax.f32 %v9393_v32, 0.0 }
 0x35b   : > { %11164 = vst [vmem:[#allocation42_spill] sm:$0xff] %v9569_v1  ;;  %11165 = vst [vmem:[#allocation11_spill] sm:$0xff] %v9571_v62  ;;  %v3231_v4 = vmul.f32 %v9569_v1, %v3039_v31  ;;  %v3237_v60 = vmul.f32 %v9571_v62, %v3045_v51  ;;  %v9585_v6 = vpop.f32.mrb[6].mxu0  ;;  %v3301_v33 = vmax.f32 %v3269_v52, 0.0  ;;  %v3498_v16 = vmax.f32 %v3496_v20, %v3497_v3 }
 0x35c   : > { %v3457_v24 = vrot.slane %v3456_v25, 1  ;;  %v9588_v2 = vpop.f32.mrb[7].mxu0  ;;  %v3307_v34 = vmax.f32 %v9575_v17, 0.0  ;;  %v3506_v51 = vrot.slane %v3505_v19, 1  ;;  %v3529_v52 = vsel %vm3311_vm14, %v10585_v55, -inf }
 0x35d   : > { %v3466_v41 = vsel %vm3311_vm14, %v3301_v33, -inf  ;;  %6357 = vmatprep.mubr.msk.f32.mxu0 %vm3311_vm14, %v3301_v33  ;;  %v3270_v29 = vadd.f32 %v9363_v23, %v3231_v4  ;;  %v9595_v61 = vadd.f32 %v9363_v23, %v3237_v60  ;;  %v3499_v11 = vrot.slane %v3498_v16, 1 }
 0x35e   : > { %v3458_v58 = vmax.f32 %v3456_v25, %v3457_v24  ;;  %v3467_v59 = vrot.slane %v3466_v41, 4  ;;  %v3508_v36 = vsel %vm3311_vm14, %v3307_v34, -inf }
 0x35f   : > { %v3302_v20 = vmax.f32 %v3270_v29, 0.0  ;;  %v3509_v50 = vrot.slane %v3508_v36, 4  ;;  %v3308_v38 = vmax.f32 %v9595_v61, 0.0  ;;  %v3500_v17 = vmax.f32 %v3498_v16, %v3499_v11 }
 0x360   : > { %v9598_v31 = vpop.f32.mrb[8].mxu0  ;;  %v3468_v3 = vmax.f32 %v3466_v41, %v3467_v59  ;;  %v3917_v25 = vsel %vm3899_vm6, %v3458_v58, %v3916_v44  ;;  %v3507_v59 = vmax.f32 %v3505_v19, %v3506_v51  ;;  %v3530_v16 = vrot.slane %v3529_v52, 4 }
 0x361   : > { %v9604_v23 = vpop.f32.mrb[9].mxu0  ;;  %v3473_v4 = vsel %vm3311_vm14, %v3302_v20, -inf  ;;  %6358 = vmatmul.mubr.msk.f32.gmra.mrb[22].mxu0 %vm3311_vm14, %v3302_v20  ;;  %v3510_v60 = vmax.f32 %v3508_v36, %v3509_v50  ;;  %v3515_v33 = vsel %vm3311_vm14, %v3308_v38, -inf  ;;  %v3918_v24 = vsel %vm3901_vm7, %v3465_v8, %v3917_v25 }
 0x362   : > { %v3469_v29 = vrot.slane %v3468_v3, 2  ;;  %v3474_v61 = vrot.slane %v3473_v4, 4  ;;  %6360 = vmatprep.mubr.msk.f32.mxu0 %vm3311_vm14, %v11166_v0  ;;  %v3516_v41 = vrot.slane %v3515_v33, 4  ;;  %v3922_v58 = vsel %vm3895_vm4, %v3500_v17, %v3921_v22 }
 0x363   : > { %v3511_v44 = vrot.slane %v3510_v60, 2  ;;  %v3524_v8 = vmax.f32 %v3522_v42, %v3523_v30  ;;  %v3923_v0 = vsel %vm3897_vm5, %v3507_v59, %v3922_v58  ;;  %v3531_v17 = vmax.f32 %v3529_v52, %v3530_v16 }
 0x364   : > { %v9614_v11 = vpop.f32.mrb[10].mxu0  ;;  %v3475_v20 = vmax.f32 %v3473_v4, %v3474_v61  ;;  %v3517_v50 = vmax.f32 %v3515_v33, %v3516_v41  ;;  %v3470_v55 = vmax.f32 %v3468_v3, %v3469_v29 }
 0x365   : > { %v9617_v36 = vpop.f32.mrb[11].mxu0  ;;  %6361 = vmatmul.mubr.msk.f32.gmra.mrb[24].mxu0 %vm3311_vm14, %v3304_v46  ;;  %v3512_v32 = vmax.f32 %v3510_v60, %v3511_v44  ;;  %v3525_v42 = vrot.slane %v3524_v8, 2  ;;  %v3532_v61 = vrot.slane %v3531_v17, 2 }
 0x366   : > { %6363 = vmatprep.mubr.msk.f32.mxu0 %vm3311_vm14, %v3305_v14  ;;  %v3518_v19 = vrot.slane %v3517_v50, 2  ;;  %v3471_v51 = vrot.slane %v3470_v55, 1  ;;  %v3476_v22 = vrot.slane %v3475_v20, 2 }
 0x367   : > { %v3513_v4 = vrot.slane %v3512_v32, 1 }
 0x368   : > { %v9626_v25 = vpop.f32.mrb[12].mxu0  ;;  %v3519_v33 = vmax.f32 %v3517_v50, %v3518_v19  ;;  %v3472_v12 = vmax.f32 %v3470_v55, %v3471_v51  ;;  %v3477_v29 = vmax.f32 %v3475_v20, %v3476_v22  ;;  %v11167_v55 = vld [vmem:[#allocation6_spill] sm:$0xff] }
 0x369   : > { %v3760_v3 = vpop.f32.mrb[13].mxu0  ;;  %6364 = vmatmul.mubr.msk.f32.gmra.mrb[26].mxu0 %vm3311_vm14, %v3306_v43  ;;  %v3514_v46 = vmax.f32 %v3512_v32, %v3513_v4 }
 0x36a   : > { %6366 = vmatprep.mubr.msk.f32.mxu0 %vm3311_vm14, %v3307_v34  ;;  %v3478_v53 = vrot.slane %v3477_v29, 1  ;;  %v3919_v14 = vsel %vm3903_vm0, %v3472_v12, %v3918_v24  ;;  %v3520_v30 = vrot.slane %v3519_v33, 1  ;;  %v9637_v34 = vmax.f32 %v3524_v8, %v3525_v42 }
 0x36b   : > { %v6378_v60 = vpop.f32.mrb[0].mxu1  ;;  %v3924_v41 = vsel %vm3899_vm6, %v3514_v46, %v3923_v0  ;;  %v11168_v0 = vmax.f32 %v9543_v10, 0.0 }
 0x36c   : > { %v6347_v52 = vpop.f32.mrb[14].mxu0  ;;  %v4074_v59 = vcombine.high %v6378_v60, %v6378_v60  ;;  %v4081_v16 = vrot.slane %v6378_v60, %v11167_v55  ;;  %v4002_v57 = vpop.f32.mrb[1].mxu1  ;;  %v3479_v58 = vmax.f32 %v3477_v29, %v3478_v53  ;;  %v3521_v43 = vmax.f32 %v3519_v33, %v3520_v30 }
 0x36d   : > { %v3770_v44 = vpop.f32.mrb[15].mxu0  ;;  %v4025_v20 = vcombine.high %v4002_v57, %v4002_v57  ;;  %v4032_v50 = vrot.slane %v4002_v57, %v11167_v55  ;;  %6367 = vmatmul.mubr.msk.f32.gmra.mrb[28].mxu0 %vm3311_vm14, %v3308_v38  ;;  %v9647_v33 = vmax.f32 %v3531_v17, %v3532_v61  ;;  %v11169_v30 = vmax.f32 %v9567_v15, 0.0 }
 0x36e   : > { %v4088_v24 = vrot.slane %v4074_v59, %v11167_v55  ;;  %v4089_v32 = vcombine.high %v4081_v16, %v4081_v16  ;;  %v4097_v19 = vrot.slane %v4081_v16, %v11167_v55  ;;  %6369 = vmatprep.mubr.msk.f32.mxu0 %vm3311_vm14, %v11168_v0  ;;  %v3920_v51 = vsel %vm3905_vm8, %v3479_v58, %v3919_v14 }
 0x36f   : > { %v4039_v22 = vrot.slane %v4025_v20, %v11167_v55  ;;  %v4040_v4 = vcombine.high %v4032_v50, %v4032_v50  ;;  %6379 = vmatprep.mubr.msk.f32.mxu1 %vm3311_vm14, %v3920_v51  ;;  %v9650_v38 = vsel %vm3901_vm7, %v3521_v43, %v3924_v41  ;;  %v4048_v53 = vrot.slane %v4032_v50, %v11167_v55 }
 0x370   : > { %v4090_v8 = vcombine.high %v4088_v24, %v4088_v24  ;;  %v4104_v12 = vrot.slane %v4088_v24, %v11167_v55  ;;  %v4111_v29 = vrot.slane %v4089_v32, %v11167_v55  ;;  %v4119_v10 = vcombine.high %v4097_v19, %v4097_v19 }
 0x371   : > { %v4256_v46 = vrot.slane %v4097_v19, %v7303_v39  ;;  %v4041_v42 = vcombine.high %v4039_v22, %v4039_v22  ;;  %v4055_v14 = vrot.slane %v4039_v22, %v11167_v55  ;;  %6370 = vmatmul.mubr.msk.f32.gmra.mrb[30].mxu0 %vm3311_vm14, %v11169_v30  ;;  %v4062_v58 = vrot.slane %v4040_v4, %v11167_v55 }
 0x372   : > { %v4118_v17 = vrot.slane %v4090_v8, %v11167_v55  ;;  %v4121_v60 = vcombine.high %v4111_v29, %v4111_v29  ;;  %v4260_v61 = vrot.slane %v4111_v29, %v7303_v39  ;;  %v4264_v41 = vrot.slane %v4119_v10, %v7303_v39 }
 0x373   : > { %v4272_v59 = vrot.slane %v4104_v12, %v7303_v39  ;;  %v4389_v16 = vadd.f32 %v4256_v46, %v9604_v23  ;;  %v4120_v57 = vcombine.high %v4104_v12, %v4104_v12  ;;  %v4069_v23 = vrot.slane %v4041_v42, %v11167_v55 }
 0x374   : > { %v4122_v43 = vcombine.high %v4118_v17, %v4118_v17  ;;  %v4268_v20 = vrot.slane %v4121_v60, %v7303_v39  ;;  %v4276_v15 = vrot.slane %v4118_v17, %v7303_v39  ;;  %v9669_v50 = vadd.f32 %v9598_v31, %v4260_v61 }
 0x375   : > { %v9672_v24 = vadd.f32 %v4264_v41, %v9617_v36  ;;  %v9674_v32 = vadd.f32 %v4272_v59, %v3760_v3  ;;  %v4280_v19 = vrot.slane %v4120_v57, %v7303_v39  ;;  %v4070_v4 = vcombine.high %v4048_v53, %v4048_v53 }
 0x376   : > { %v4284_v0 = vrot.slane %v4122_v43, %v7303_v39  ;;  %v9680_v51 = vadd.f32 %v9614_v11, %v4268_v20  ;;  %v4394_v22 = vadd.f32 %v9626_v25, %v4276_v15  ;;  %v4071_v31 = vcombine.high %v4055_v14, %v4055_v14 }
 0x377   : > { %v4395_v8 = vadd.f32 %v4280_v19, %v3770_v44  ;;  %v4072_v12 = vcombine.high %v4062_v58, %v4062_v58  ;;  %v3527_v36 = vrot.slane %v9637_v34, 1  ;;  %v4224_v10 = vrot.slane %v4048_v53, %v7303_v39 }
 0x378   : > { %v4396_v29 = vadd.f32 %v6347_v52, %v4284_v0  ;;  %v4426_v3 = vmul.f32 %v9035_v48, %v4394_v22  ;;  %v4228_v46 = vrot.slane %v4062_v58, %v7303_v39  ;;  %v4232_v11 = vrot.slane %v4070_v4, %v7303_v39  ;;  %v9695_v52 = vld [vmem:[%s10431_s7] ss:$0 sm:$0xff]  ;;  %v11170_v22 = vld [vmem:[#allocation58_spill] sm:$0xff] }
 0x379   : > { %v4427_v42 = vmul.f32 %v8922_v49, %v4395_v8  ;;  %v4236_v30 = vrot.slane %v4072_v12, %v7303_v39  ;;  %v4240_v25 = vrot.slane %v4055_v14, %v7303_v39  ;;  %v4244_v17 = vrot.slane %v4069_v23, %v7303_v39  ;;  %v11171_v8 = vld [vmem:[#allocation77_spill] sm:$0xff] }
 0x37a   : > { %v4428_v44 = vmul.f32 %v8980_v56, %v4396_v29  ;;  %v4248_v53 = vrot.slane %v4071_v31, %v7303_v39  ;;  %v3534_v60 = vrot.slane %v9647_v33, 1  ;;  %v9701_v61 = vadd.f32 %v9695_v52, %v4426_v3  ;;  %v11173_v3 = vld [vmem:[#allocation100_spill] sm:$0xff] }
 0x37b   : > { %v4381_v41 = vadd.f32 %v4224_v10, %v9430_v18  ;;  %v4382_v14 = vadd.f32 %v9423_v21, %v4228_v46  ;;  %v9706_v59 = vadd.f32 %v9695_v52, %v4427_v42  ;;  %v4383_v57 = vadd.f32 %v4232_v11, %v9483_v5  ;;  %v11174_v11 = vld [vmem:[#allocation108_spill] sm:$0xff] }
 0x37c   : > { %v4384_v58 = vadd.f32 %v9479_v28, %v4236_v30  ;;  %v3528_v43 = vmax.f32 %v9637_v34, %v3527_v36  ;;  %v4073_v20 = vcombine.high %v4069_v23, %v4069_v23  ;;  %v4385_v15 = vadd.f32 %v4240_v25, %v9531_v47 }
 0x37d   : > { %v4386_v19 = vadd.f32 %v9527_v9, %v4244_v17  ;;  %v4387_v0 = vadd.f32 %v4248_v53, %v9588_v2  ;;  %v9715_v18 = vadd.f32 %v9695_v52, %v4428_v44  ;;  %v4413_v21 = vmul.f32 %v8842_v54, %v4381_v41  ;;  %v11172_v9 = vld [vmem:[#allocation70_spill] sm:$0xff] }
 0x37e   : > { %v4414_v4 = vmul.f32 %v11170_v22, %v4382_v14  ;;  %v3535_v5 = vmax.f32 %v9647_v33, %v3534_v60  ;;  %v9721_v28 = vmul.f32 %v11171_v8, %v4389_v16  ;;  %v10587_v34 = vmax.f32 %v9701_v61, 0.0 }
 0x37f   : > { %v3926_v47 = vsel %vm3903_vm0, %v3528_v43, %v9650_v38  ;;  %v4415_v23 = vmul.f32 %v11172_v9, %v4383_v57  ;;  %v10586_v2 = vmax.f32 %v9706_v59, 0.0  ;;  %v4452_v36 = vadd.f32 %v9695_v52, %v4413_v21 }
 0x380   : > { %v4453_v31 = vadd.f32 %v9695_v52, %v4414_v4  ;;  %v3927_v12 = vsel %vm3905_vm8, %v3535_v5, %v3926_v47  ;;  %v4252_v33 = vrot.slane %v4073_v20, %v7303_v39  ;;  %v4416_v29 = vmul.f32 %v8929_v37, %v4384_v58 }
 0x381   : > { %6380 = vmatmul.mubr.msk.f32.gmra.mrb[2].mxu1 %vm3311_vm14, %v3927_v12  ;;  %v4454_v16 = vadd.f32 %v9695_v52, %v4415_v23  ;;  %v4417_v38 = vmul.f32 %v11173_v3, %v4385_v15  ;;  %v4484_v42 = vmax.f32 %v4452_v36, 0.0  ;;  %v4418_v30 = vmul.f32 %v11174_v11, %v4386_v19  ;;  %v11175_v12 = vld [vmem:[#allocation105_spill] sm:$0xff] }
 0x382   : > { %v4485_v46 = vmax.f32 %v4453_v31, 0.0  ;;  %v4608_v25 = vsel %vm4516_vm9, %v10587_v34, -inf  ;;  %v4455_v17 = vadd.f32 %v9695_v52, %v4416_v29  ;;  %v4615_v60 = vsel %vm4516_vm9, %v10586_v2, -inf }
 0x383   : > { %v4486_v44 = vmax.f32 %v4454_v16, 0.0  ;;  %v4456_v53 = vadd.f32 %v9695_v52, %v4417_v38  ;;  %v4517_v14 = vsel %vm4516_vm9, %v4484_v42, -inf  ;;  %6398 = vmatprep.mubr.msk.f32.mxu1 %vm4516_vm9, %v4484_v42  ;;  %v4457_v57 = vadd.f32 %v9695_v52, %v4418_v30 }
 0x384   : > { %v4524_v41 = vsel %vm4516_vm9, %v4485_v46, -inf  ;;  %v4518_v43 = vrot.slane %v4517_v14, 4  ;;  %v4487_v15 = vmax.f32 %v4455_v17, 0.0  ;;  %v4609_v19 = vrot.slane %v4608_v25, 4 }
 0x385   : > { %v4525_v58 = vrot.slane %v4524_v41, 4  ;;  %6399 = vmatmul.mubr.msk.f32.vlgmr.msra.gmra.mrb[4].mxu1 %vm4516_vm9, %v4485_v46  ;;  %v4531_v20 = vsel %vm4516_vm9, %v4486_v44, -inf  ;;  %v4488_v4 = vmax.f32 %v4456_v53, 0.0  ;;  %v4489_v5 = vmax.f32 %v4457_v57, 0.0 }
 0x386   : > { %v4532_v21 = vrot.slane %v4531_v20, 4  ;;  %6401 = vmatprep.mubr.msk.f32.mxu1 %vm4516_vm9, %v4486_v44  ;;  %v4519_v23 = vmax.f32 %v4517_v14, %v4518_v43  ;;  %v4538_v31 = vsel %vm4516_vm9, %v4487_v15, -inf  ;;  %v4419_v36 = vmul.f32 %v11175_v12, %v4387_v0 }
 0x387   : > { %v4526_v47 = vmax.f32 %v4524_v41, %v4525_v58  ;;  %v4616_v16 = vrot.slane %v4615_v60, 4  ;;  %v4539_v38 = vrot.slane %v4538_v31, 4  ;;  %v4545_v46 = vsel %vm4516_vm9, %v4488_v4, -inf }
 0x388   : > { %v4533_v29 = vmax.f32 %v4531_v20, %v4532_v21  ;;  %v4520_v30 = vrot.slane %v4519_v23, 2  ;;  %v4546_v17 = vrot.slane %v4545_v46, 4  ;;  %v4552_v44 = vsel %vm4516_vm9, %v4489_v5, -inf }
 0x389   : > { %v4527_v42 = vrot.slane %v4526_v47, 2  ;;  %6402 = vmatmul.mubr.msk.f32.gmra.mrb[6].mxu1 %vm4516_vm9, %v4487_v15  ;;  %v9758_v53 = vmax.f32 %v4608_v25, %v4609_v19  ;;  %v4540_v14 = vmax.f32 %v4538_v31, %v4539_v38  ;;  %v4553_v57 = vrot.slane %v4552_v44, 4  ;;  %v11176_v38 = vld [vmem:[#allocation104_spill] sm:$0xff] }
 0x38a   : > { %v4534_v41 = vrot.slane %v4533_v29, 2  ;;  %6404 = vmatprep.mubr.msk.f32.mxu1 %vm4516_vm9, %v4488_v4  ;;  %v4521_v58 = vmax.f32 %v4519_v23, %v4520_v30  ;;  %v4547_v43 = vmax.f32 %v4545_v46, %v4546_v17  ;;  %v4458_v20 = vadd.f32 %v9695_v52, %v4419_v36 }
 0x38b   : > { %v4528_v0 = vmax.f32 %v4526_v47, %v4527_v42  ;;  %v4541_v2 = vrot.slane %v4540_v14, 2  ;;  %v4554_v34 = vmax.f32 %v4552_v44, %v4553_v57  ;;  %v4388_v15 = vadd.f32 %v9585_v6, %v4252_v33  ;;  %v11177_v44 = vld [vmem:[#allocation99_spill] sm:$0xff] }
 0x38c   : > { %v4535_v21 = vmax.f32 %v4533_v29, %v4534_v41  ;;  %v4522_v49 = vrot.slane %v4521_v58, 1  ;;  %v4548_v56 = vrot.slane %v4547_v43, 2  ;;  %v4490_v25 = vmax.f32 %v4458_v20, 0.0 }
 0x38d   : > { %v4529_v10 = vrot.slane %v4528_v0, 1  ;;  %6405 = vmatmul.mubr.msk.f32.gmra.mrb[8].mxu1 %vm4516_vm9, %v4489_v5  ;;  %v4542_v31 = vmax.f32 %v4540_v14, %v4541_v2  ;;  %v4555_v4 = vrot.slane %v4554_v34, 2  ;;  %v4420_v47 = vmul.f32 %v11176_v38, %v4388_v15  ;;  %v11179_v14 = vld [vmem:[#allocation80_spill] sm:$0xff] }
 0x38e   : > { %v4536_v19 = vrot.slane %v4535_v21, 1  ;;  %v9765_v23 = vmax.f32 %v4615_v60, %v4616_v16  ;;  %v4549_v36 = vmax.f32 %v4547_v43, %v4548_v56  ;;  %v4559_v29 = vsel %vm4516_vm9, %v4490_v25, -inf  ;;  %6407 = vmatprep.mubr.msk.f32.mxu1 %vm4516_vm9, %v4490_v25  ;;  %v11178_v56 = vld [vmem:[#allocation101_spill] sm:$0xff] }
 0x38f   : > { %v4530_v46 = vmax.f32 %v4528_v0, %v4529_v10  ;;  %v4523_v6 = vmax.f32 %v4521_v58, %v4522_v49  ;;  %v4543_v42 = vrot.slane %v4542_v31, 1  ;;  %v4560_v30 = vrot.slane %v4559_v29, 4 }
 0x390   : > { %v4537_v33 = vmax.f32 %v4535_v21, %v4536_v19  ;;  %v4550_v17 = vrot.slane %v4549_v36, 1  ;;  %v4459_v5 = vadd.f32 %v9695_v52, %v4420_v47  ;;  %v4460_v2 = vadd.f32 %v9695_v52, %v9721_v28 }
 0x391   : > { %v4422_v60 = vmul.f32 %v11177_v44, %v9669_v50  ;;  %v4556_v16 = vmax.f32 %v4554_v34, %v4555_v4  ;;  %v4561_v10 = vmax.f32 %v4559_v29, %v4560_v30  ;;  %v4423_v41 = vmul.f32 %v11178_v56, %v9672_v24 }
 0x392   : > { %v4424_v49 = vmul.f32 %v11179_v14, %v9680_v51  ;;  %v4544_v57 = vmax.f32 %v4542_v31, %v4543_v42  ;;  %v4491_v0 = vmax.f32 %v4459_v5, 0.0  ;;  %v4492_v58 = vmax.f32 %v4460_v2, 0.0 }
 0x393   : > { %v4461_v43 = vadd.f32 %v9695_v52, %v4422_v60  ;;  %v4551_v20 = vmax.f32 %v4549_v36, %v4550_v17  ;;  %v4562_v21 = vrot.slane %v4561_v10, 2  ;;  %v4462_v28 = vadd.f32 %v9695_v52, %v4423_v41 }
 0x394   : > { %v4463_v15 = vadd.f32 %v9695_v52, %v4424_v49  ;;  %v4566_v50 = vsel %vm4516_vm9, %v4491_v0, -inf  ;;  %6408 = vmatmul.mubr.msk.f32.gmra.mrb[10].mxu1 %vm4516_vm9, %v4491_v0  ;;  %v4573_v24 = vsel %vm4516_vm9, %v4492_v58, -inf  ;;  %v5110_v51 = vsel %vm3893_vm3, %v4530_v46, %v4523_v6 }
 0x395   : > { %v4493_v34 = vmax.f32 %v4461_v43, 0.0  ;;  %v4567_v25 = vrot.slane %v4566_v50, 4  ;;  %v4574_v19 = vrot.slane %v4573_v24, 4  ;;  %6410 = vmatprep.mubr.msk.f32.mxu1 %vm4516_vm9, %v4492_v58  ;;  %v4494_v31 = vmax.f32 %v4462_v28, 0.0  ;;  %v11180_v28 = vld [vmem:[#allocation102_spill] sm:$0xff] }
 0x396   : > { %v4495_v4 = vmax.f32 %v4463_v15, 0.0  ;;  %v4557_v36 = vrot.slane %v4556_v16, 1  ;;  %v4563_v29 = vmax.f32 %v4561_v10, %v4562_v21  ;;  %v5111_v42 = vsel %vm3895_vm4, %v4537_v33, %v5110_v51 }
 0x397   : > { %v4580_v47 = vsel %vm4516_vm9, %v4493_v34, -inf  ;;  %v4568_v30 = vmax.f32 %v4566_v50, %v4567_v25  ;;  %v4575_v17 = vmax.f32 %v4573_v24, %v4574_v19  ;;  %v4587_v2 = vsel %vm4516_vm9, %v4494_v31, -inf }
 0x398   : > { %v4581_v5 = vrot.slane %v4580_v47, 4  ;;  %6411 = vmatmul.mubr.msk.f32.gmra.mrb[12].mxu1 %vm4516_vm9, %v4493_v34  ;;  %v4588_v46 = vrot.slane %v4587_v2, 4  ;;  %v4594_v6 = vsel %vm4516_vm9, %v4495_v4, -inf  ;;  %v4564_v60 = vrot.slane %v4563_v29, 1 }
 0x399   : > { %v5112_v41 = vsel %vm3897_vm5, %v4544_v57, %v5111_v42  ;;  %v4576_v49 = vrot.slane %v4575_v17, 2  ;;  %6413 = vmatprep.mubr.msk.f32.mxu1 %vm4516_vm9, %v4494_v31  ;;  %v4595_v10 = vrot.slane %v4594_v6, 4  ;;  %v4569_v58 = vrot.slane %v4568_v30, 2 }
 0x39a   : > { %v4582_v0 = vmax.f32 %v4580_v47, %v4581_v5  ;;  %v4589_v33 = vmax.f32 %v4587_v2, %v4588_v46  ;;  %v4558_v43 = vmax.f32 %v4556_v16, %v4557_v36  ;;  %v5113_v21 = vsel %vm3899_vm6, %v4551_v20, %v5112_v41 }
 0x39b   : > { %v4425_v15 = vmul.f32 %v11180_v28, %v9674_v32  ;;  %v4577_v50 = vmax.f32 %v4575_v17, %v4576_v49  ;;  %v4596_v34 = vmax.f32 %v4594_v6, %v4595_v10  ;;  %v4570_v51 = vmax.f32 %v4568_v30, %v4569_v58 }
 0x39c   : > { %v4583_v24 = vrot.slane %v4582_v0, 2  ;;  %v4590_v25 = vrot.slane %v4589_v33, 2  ;;  %6414 = vmatmul.mubr.msk.f32.gmra.mrb[14].mxu1 %vm4516_vm9, %v4495_v4  ;;  %v4565_v57 = vmax.f32 %v4563_v29, %v4564_v60  ;;  %v5114_v19 = vsel %vm3901_vm7, %v4558_v43, %v5113_v21 }
 0x39d   : > { %v4464_v31 = vadd.f32 %v9695_v52, %v4425_v15  ;;  %v4578_v47 = vrot.slane %v4577_v50, 1  ;;  %v4597_v16 = vrot.slane %v4596_v34, 2  ;;  %v4571_v36 = vrot.slane %v4570_v51, 1 }
 0x39e   : > { %v4584_v42 = vmax.f32 %v4582_v0, %v4583_v24  ;;  %v4611_v20 = vrot.slane %v9758_v53, 2  ;;  %v4591_v5 = vmax.f32 %v4589_v33, %v4590_v25  ;;  %v5115_v32 = vsel %vm3903_vm0, %v4565_v57, %v5114_v19 }
 0x39f   : > { %v4496_v17 = vmax.f32 %v4464_v31, 0.0  ;;  %v4618_v30 = vrot.slane %v9765_v23, 2  ;;  %v4598_v46 = vmax.f32 %v4596_v34, %v4597_v16  ;;  %v4572_v4 = vmax.f32 %v4570_v51, %v4571_v36 }
 0x3a0   : > { %v4585_v2 = vrot.slane %v4584_v42, 1  ;;  %v4579_v29 = vmax.f32 %v4577_v50, %v4578_v47  ;;  %v4592_v6 = vrot.slane %v4591_v5, 1  ;;  %v11181_v41 = vmax.f32 %v9715_v18, 0.0 }
 0x3a1   : > { %v4601_v60 = vsel %vm4516_vm9, %v4496_v17, -inf  ;;  %6416 = vmatprep.mubr.msk.f32.mxu1 %vm4516_vm9, %v4496_v17  ;;  %v4599_v10 = vrot.slane %v4598_v46, 1  ;;  %v5116_v58 = vsel %vm3905_vm8, %v4572_v4, %v5115_v32  ;;  %v11182_v43 = vmax.f32 %v9701_v61, 0.0 }
 0x3a2   : > { %v4622_v49 = vsel %vm4516_vm9, %v11181_v41, -inf  ;;  %v4586_v0 = vmax.f32 %v4584_v42, %v4585_v2  ;;  %v4602_v33 = vrot.slane %v4601_v60, 4  ;;  %v4593_v21 = vmax.f32 %v4591_v5, %v4592_v6  ;;  %6462 = vmatprep.mubr.msk.f32.mxu0 %vm4516_vm9, %v5116_v58 }
 0x3a3   : > { %6417 = vmatmul.mubr.msk.f32.gmra.mrb[16].mxu1 %vm4516_vm9, %v11182_v43  ;;  %v4623_v15 = vrot.slane %v4622_v49, 4  ;;  %v11183_v50 = vmax.f32 %v9706_v59, 0.0  ;;  %v4600_v34 = vmax.f32 %v4598_v46, %v4599_v10  ;;  %v4612_v57 = vmax.f32 %v9758_v53, %v4611_v20 }
 0x3a4   : > { %v5117_v24 = vsel %vm3893_vm3, %v4586_v0, %v4579_v29  ;;  %v4603_v51 = vmax.f32 %v4601_v60, %v4602_v33  ;;  %v4619_v61 = vmax.f32 %v9765_v23, %v4618_v30  ;;  %v11184_v42 = vmov %v11181_v41 }
 0x3a5   : > { %6419 = vmatprep.mubr.msk.f32.mxu1 %vm4516_vm9, %v11183_v50  ;;  %v5118_v25 = vsel %vm3895_vm4, %v4593_v21, %v5117_v24  ;;  %v4624_v19 = vmax.f32 %v4622_v49, %v4623_v15  ;;  %v4613_v36 = vrot.slane %v4612_v57, 1 }
 0x3a6   : > { %v4604_v31 = vrot.slane %v4603_v51, 2  ;;  %v5119_v47 = vsel %vm3897_vm5, %v4600_v34, %v5118_v25  ;;  %v4620_v32 = vrot.slane %v4619_v61, 1 }
 0x3a7   : > { %6420 = vmatmul.mubr.msk.f32.gmra.mrb[18].mxu1 %vm4516_vm9, %v11184_v42  ;;  %v4625_v59 = vrot.slane %v4624_v19, 2  ;;  %v4614_v4 = vmax.f32 %v4612_v57, %v4613_v36 }
 0x3a8   : > { %v4605_v16 = vmax.f32 %v4603_v51, %v4604_v31  ;;  %v4621_v53 = vmax.f32 %v4619_v61, %v4620_v32 }
 0x3a9   : > { %v4626_v5 = vmax.f32 %v4624_v19, %v4625_v59 }
 0x3aa   : > { %v4606_v17 = vrot.slane %v4605_v16, 1 }
 0x3ab   : > { %v4627_v2 = vrot.slane %v4626_v5, 1 }
 0x3ac   : > { %v4607_v46 = vmax.f32 %v4605_v16, %v4606_v17 }
 0x3ad   : > { %v4628_v23 = vmax.f32 %v4626_v5, %v4627_v2 }
 0x3ae   : > { %v5120_v20 = vsel %vm3899_vm6, %v4607_v46, %v5119_v47 }
 0x3af   : > { %v5121_v30 = vsel %vm3901_vm7, %v4614_v4, %v5120_v20 }
 0x3b0   : > { %v5122_v29 = vsel %vm3903_vm0, %v4621_v53, %v5121_v30 }
 0x3b1   : > { %v5123_v18 = vsel %vm3905_vm8, %v4628_v23, %v5122_v29 }
 0x3b2   : > { %6463 = vmatmul.mubr.msk.f32.vlgmr.msra.gmra.mrb[32].mxu0 %vm4516_vm9, %v5123_v18 }
 0x40f   : > { %v9828_v6 = vpop.f32.mrb[16].mxu0 }
 0x410   : > { %v9830_v60 = vpop.f32.mrb[17].mxu0 }
 0x41c   : > { %v9832_v41 = vpop.f32.mrb[18].mxu0 }
 0x41d   : > { %v9834_v49 = vpop.f32.mrb[19].mxu0 }
 0x427   : > { %v9836_v0 = vpop.f32.mrb[20].mxu0 }
 0x428   : > { %v9838_v10 = vpop.f32.mrb[21].mxu0 }
 0x434   : > { %v9840_v58 = vpop.f32.mrb[22].mxu0 }
 0x435   : > { %v9842_v33 = vpop.f32.mrb[23].mxu0 }
 0x438   : > { %v6362_v43 = vpop.f32.mrb[24].mxu0 }
 0x439   : > { %v3820_v21 = vpop.f32.mrb[25].mxu0 }
 0x43c   : > { %v6365_v15 = vpop.f32.mrb[26].mxu0 }
 0x43d   : > { %v3830_v50 = vpop.f32.mrb[27].mxu0 }
 0x440   : > { %v6368_v24 = vpop.f32.mrb[28].mxu0 }
 0x441   : > { %v3840_v34 = vpop.f32.mrb[29].mxu0 }
 0x444   : > { %v6371_v51 = vpop.f32.mrb[30].mxu0 }
 0x445   : > { %v3850_v25 = vpop.f32.mrb[31].mxu0 }
 0x454   : > { %v6381_v57 = vpop.f32.mrb[2].mxu1 }
 0x455   : > { %v4172_v19 = vcombine.high %v6381_v57, %v6381_v57  ;;  %v4179_v61 = vrot.slane %v6381_v57, %v11167_v55  ;;  %v4012_v31 = vpop.f32.mrb[3].mxu1 }
 0x456   : > { %v4123_v47 = vcombine.high %v4012_v31, %v4012_v31  ;;  %v4130_v42 = vrot.slane %v4012_v31, %v11167_v55 }
 0x457   : > { %v4186_v59 = vrot.slane %v4172_v19, %v11167_v55  ;;  %v4187_v16 = vcombine.high %v4179_v61, %v4179_v61  ;;  %v4195_v36 = vrot.slane %v4179_v61, %v11167_v55 }
 0x458   : > { %v4137_v5 = vrot.slane %v4123_v47, %v11167_v55  ;;  %v4138_v32 = vcombine.high %v4130_v42, %v4130_v42  ;;  %v4146_v17 = vrot.slane %v4130_v42, %v11167_v55  ;;  %v9850_v2 = vpop.f32.mrb[4].mxu1 }
 0x459   : > { %v4188_v46 = vcombine.high %v4186_v59, %v4186_v59  ;;  %v4202_v4 = vrot.slane %v4186_v59, %v11167_v55  ;;  %v4209_v53 = vrot.slane %v4187_v16, %v11167_v55  ;;  %v4217_v20 = vcombine.high %v4195_v36, %v4195_v36  ;;  %v9854_v23 = vpop.f32.mrb[5].mxu1 }
 0x45a   : > { %v4320_v30 = vrot.slane %v4195_v36, %v7303_v39  ;;  %v4139_v29 = vcombine.high %v4137_v5, %v4137_v5  ;;  %v4153_v18 = vrot.slane %v4137_v5, %v11167_v55  ;;  %v4160_v57 = vrot.slane %v4138_v32, %v11167_v55 }
 0x45b   : > { %v4216_v19 = vrot.slane %v4188_v46, %v11167_v55  ;;  %v4219_v61 = vcombine.high %v4209_v53, %v4209_v53  ;;  %v4324_v31 = vrot.slane %v4209_v53, %v7303_v39  ;;  %v4328_v47 = vrot.slane %v4217_v20, %v7303_v39 }
 0x45c   : > { %v4336_v42 = vrot.slane %v4202_v4, %v7303_v39  ;;  %v4405_v59 = vadd.f32 %v4320_v30, %v3820_v21  ;;  %v4218_v16 = vcombine.high %v4202_v4, %v4202_v4  ;;  %v4167_v28 = vrot.slane %v4139_v29, %v11167_v55  ;;  %v9864_v48 = vpop.f32.mrb[6].mxu1 }
 0x45d   : > { %v4220_v36 = vcombine.high %v4216_v19, %v4216_v19  ;;  %v4332_v5 = vrot.slane %v4219_v61, %v7303_v39  ;;  %v4340_v32 = vrot.slane %v4216_v19, %v7303_v39  ;;  %v9868_v38 = vadd.f32 %v6362_v43, %v4324_v31  ;;  %v9870_v46 = vpop.f32.mrb[7].mxu1 }
 0x45e   : > { %v9872_v53 = vadd.f32 %v4328_v47, %v3830_v50  ;;  %v9874_v20 = vadd.f32 %v4336_v42, %v3840_v34  ;;  %v4344_v21 = vrot.slane %v4218_v16, %v7303_v39  ;;  %v4168_v12 = vcombine.high %v4146_v17, %v4146_v17 }
 0x45f   : > { %v4348_v4 = vrot.slane %v4220_v36, %v7303_v39  ;;  %v9878_v30 = vadd.f32 %v6365_v15, %v4332_v5  ;;  %v4410_v29 = vadd.f32 %v6368_v24, %v4340_v32  ;;  %v4169_v61 = vcombine.high %v4153_v18, %v4153_v18  ;;  %v11185_v36 = vld [vmem:[#allocation16_spill] sm:$0xff] }
 0x460   : > { %v4411_v11 = vadd.f32 %v4344_v21, %v3850_v25  ;;  %v4170_v3 = vcombine.high %v4160_v57, %v4160_v57  ;;  %v4171_v19 = vcombine.high %v4167_v28, %v4167_v28  ;;  %v9880_v43 = vpop.f32.mrb[8].mxu1  ;;  %v4288_v34 = vrot.slane %v4146_v17, %v7303_v39 }
 0x461   : > { %v4412_v31 = vadd.f32 %v6371_v51, %v4348_v4  ;;  %v4442_v50 = vmul.f32 %v9571_v62, %v4410_v29  ;;  %v4292_v47 = vrot.slane %v4160_v57, %v7303_v39  ;;  %v9885_v42 = vpop.f32.mrb[9].mxu1  ;;  %v4296_v24 = vrot.slane %v4168_v12, %v7303_v39 }
 0x462   : > { %v4443_v15 = vmul.f32 %v9487_v40, %v4411_v11  ;;  %v4300_v25 = vrot.slane %v4170_v3, %v7303_v39  ;;  %v4304_v16 = vrot.slane %v4153_v18, %v7303_v39  ;;  %v9892_v5 = vmul.f32 %v11185_v36, %v4405_v59 }
 0x463   : > { %v9895_v51 = vmul.f32 %v9474_v35, %v4412_v31  ;;  %v4308_v17 = vrot.slane %v4167_v28, %v7303_v39  ;;  %v4312_v57 = vrot.slane %v4169_v61, %v7303_v39  ;;  %v9900_v32 = vadd.f32 %v9695_v52, %v4442_v50  ;;  %v11187_v31 = vld [vmem:[#allocation8_spill] sm:$0xff] }
 0x464   : > { %v9903_v11 = vadd.f32 %v9695_v52, %v4443_v15  ;;  %v4397_v3 = vadd.f32 %v4288_v34, %v9830_v60  ;;  %v4398_v12 = vadd.f32 %v9828_v6, %v4292_v47  ;;  %v9908_v18 = vrot.slane %v4171_v19, %v7303_v39  ;;  %v11188_v60 = vld [vmem:[#allocation107_spill] sm:$0xff]  ;;  %v11189_v6 = vld [vmem:[#allocation106_spill] sm:$0xff] }
 0x465   : > { %v4399_v59 = vadd.f32 %v4296_v24, %v9834_v49  ;;  %v4400_v21 = vadd.f32 %v9832_v41, %v4300_v25  ;;  %v4401_v28 = vadd.f32 %v4304_v16, %v9838_v10  ;;  %v4402_v29 = vadd.f32 %v9836_v0, %v4308_v17  ;;  %v11190_v0 = vld [vmem:[#allocation41_spill] sm:$0xff] }
 0x466   : > { %11186 = vst [vmem:[#allocation12_spill] sm:$0xff] %v9903_v11  ;;  %v10594_v4 = vmax.f32 %v9903_v11, 0.0  ;;  %v4403_v61 = vadd.f32 %v4312_v57, %v9842_v33  ;;  %v4429_v50 = vmul.f32 %v11187_v31, %v4397_v3  ;;  %v4430_v34 = vmul.f32 %v11188_v60, %v4398_v12 }
 0x467   : > { %v4431_v47 = vmul.f32 %v11189_v6, %v4399_v59  ;;  %v4432_v19 = vmul.f32 %v9467_v13, %v4400_v21  ;;  %v4433_v49 = vmul.f32 %v9514_v26, %v4401_v28  ;;  %v9925_v15 = vpop.f32.mrb[10].mxu1  ;;  %v4434_v33 = vmul.f32 %v11190_v0, %v4402_v29 }
 0x468   : > { %v4727_v41 = vsel %vm4516_vm9, %v10594_v4, -inf  ;;  %v4468_v10 = vadd.f32 %v9695_v52, %v4429_v50  ;;  %v4435_v24 = vmul.f32 %v9557_v27, %v4403_v61  ;;  %v4469_v16 = vadd.f32 %v9695_v52, %v4430_v34  ;;  %v9932_v3 = vpop.f32.mrb[11].mxu1 }
 0x469   : > { %v4728_v25 = vrot.slane %v4727_v41, 4  ;;  %v4470_v17 = vadd.f32 %v9695_v52, %v4431_v47  ;;  %v4471_v57 = vadd.f32 %v9695_v52, %v4432_v19  ;;  %v4472_v59 = vadd.f32 %v9695_v52, %v4433_v49 }
 0x46a   : > { %v4500_v12 = vmax.f32 %v4468_v10, 0.0  ;;  %v4473_v21 = vadd.f32 %v9695_v52, %v4434_v33  ;;  %v4474_v28 = vadd.f32 %v9695_v52, %v4435_v24  ;;  %v4501_v29 = vmax.f32 %v4469_v16, 0.0 }
 0x46b   : > { %v4729_v50 = vmax.f32 %v4727_v41, %v4728_v25  ;;  %v4502_v4 = vmax.f32 %v4470_v17, 0.0  ;;  %v4503_v61 = vmax.f32 %v4471_v57, 0.0  ;;  %v4504_v34 = vmax.f32 %v4472_v59, 0.0  ;;  %v9939_v35 = vpop.f32.mrb[12].mxu1 }
 0x46c   : > { %v4629_v40 = vsel %vm4516_vm9, %v4500_v12, -inf  ;;  %6422 = vmatprep.mubr.msk.f32.mxu1 %vm4516_vm9, %v4500_v12  ;;  %v4505_v47 = vmax.f32 %v4473_v21, 0.0  ;;  %v4506_v19 = vmax.f32 %v4474_v28, 0.0  ;;  %v4636_v49 = vsel %vm4516_vm9, %v4501_v29, -inf  ;;  %v9944_v33 = vpop.f32.mrb[13].mxu1 }
 0x46d   : > { %v4730_v10 = vrot.slane %v4729_v50, 2  ;;  %v4630_v62 = vrot.slane %v4629_v40, 4  ;;  %6423 = vmatmul.mubr.msk.f32.gmra.mrb[20].mxu1 %vm4516_vm9, %v4501_v29  ;;  %v4643_v41 = vsel %vm4516_vm9, %v4502_v4, -inf  ;;  %v4637_v24 = vrot.slane %v4636_v49, 4 }
 0x46e   : > { %v4644_v25 = vrot.slane %v4643_v41, 4  ;;  %6425 = vmatprep.mubr.msk.f32.mxu1 %vm4516_vm9, %v4502_v4  ;;  %v4650_v16 = vsel %vm4516_vm9, %v4503_v61, -inf  ;;  %v4657_v17 = vsel %vm4516_vm9, %v4504_v34, -inf  ;;  %v4664_v29 = vsel %vm4516_vm9, %v4505_v47, -inf }
 0x46f   : > { %v4631_v12 = vmax.f32 %v4629_v40, %v4630_v62  ;;  %v4651_v59 = vrot.slane %v4650_v16, 4  ;;  %v4658_v21 = vrot.slane %v4657_v17, 4  ;;  %v4638_v28 = vmax.f32 %v4636_v49, %v4637_v24  ;;  %v9952_v26 = vpop.f32.mrb[14].mxu1 }
 0x470   : > { %v4645_v27 = vmax.f32 %v4643_v41, %v4644_v25  ;;  %v4671_v0 = vsel %vm4516_vm9, %v4506_v19, -inf  ;;  %v9954_v13 = vmax.f32 %v4729_v50, %v4730_v10  ;;  %v9957_v31 = vpop.f32.mrb[15].mxu1  ;;  %v4665_v49 = vrot.slane %v4664_v29, 4 }
 0x471   : > { %v4632_v4 = vrot.slane %v4631_v12, 2  ;;  %v4652_v6 = vmax.f32 %v4650_v16, %v4651_v59  ;;  %6426 = vmatmul.mubr.msk.f32.gmra.mrb[22].mxu1 %vm4516_vm9, %v4503_v61  ;;  %v4659_v60 = vmax.f32 %v4657_v17, %v4658_v21  ;;  %v4639_v40 = vrot.slane %v4638_v28, 2 }
 0x472   : > { %v4646_v62 = vrot.slane %v4645_v27, 2  ;;  %6428 = vmatprep.mubr.msk.f32.mxu1 %vm4516_vm9, %v4504_v34  ;;  %v4672_v41 = vrot.slane %v4671_v0, 4  ;;  %v4404_v50 = vadd.f32 %v9840_v58, %v9908_v18  ;;  %v4666_v16 = vmax.f32 %v4664_v29, %v4665_v49 }
 0x473   : > { %v4633_v24 = vmax.f32 %v4631_v12, %v4632_v4  ;;  %v4653_v25 = vrot.slane %v4652_v6, 2  ;;  %v4660_v57 = vrot.slane %v4659_v60, 2  ;;  %v4640_v10 = vmax.f32 %v4638_v28, %v4639_v40 }
 0x474   : > { %v4647_v36 = vmax.f32 %v4645_v27, %v4646_v62  ;;  %v4673_v59 = vmax.f32 %v4671_v0, %v4672_v41  ;;  %v4436_v11 = vmul.f32 %v9569_v1, %v4404_v50  ;;  %v4667_v4 = vrot.slane %v4666_v16, 2 }
 0x475   : > { %v4634_v61 = vrot.slane %v4633_v24, 1  ;;  %v4654_v17 = vmax.f32 %v4652_v6, %v4653_v25  ;;  %v4661_v21 = vmax.f32 %v4659_v60, %v4660_v57  ;;  %6429 = vmatmul.mubr.msk.f32.gmra.mrb[24].mxu1 %vm4516_vm9, %v4505_v47  ;;  %v4641_v37 = vrot.slane %v4640_v10, 1 }
 0x476   : > { %v9964_v34 = vpop.f32.mrb[16].mxu1  ;;  %v4648_v12 = vrot.slane %v4647_v36, 1  ;;  %v4674_v9 = vrot.slane %v4673_v59, 2  ;;  %6431 = vmatprep.mubr.msk.f32.mxu1 %vm4516_vm9, %v4506_v19  ;;  %v4475_v6 = vadd.f32 %v9695_v52, %v4436_v11  ;;  %v4668_v47 = vmax.f32 %v4666_v16, %v4667_v4  ;;  %v11191_v11 = vld [vmem:[#allocation9_spill] sm:$0xff] }
 0x477   : > { %v9967_v58 = vpop.f32.mrb[17].mxu1  ;;  %v4635_v27 = vmax.f32 %v4633_v24, %v4634_v61  ;;  %v4655_v18 = vrot.slane %v4654_v17, 1  ;;  %v4662_v0 = vrot.slane %v4661_v21, 1  ;;  %v4642_v60 = vmax.f32 %v4640_v10, %v4641_v37 }
 0x478   : > { %v4649_v57 = vmax.f32 %v4647_v36, %v4648_v12  ;;  %v4476_v28 = vadd.f32 %v9695_v52, %v9892_v5  ;;  %v4507_v62 = vmax.f32 %v4475_v6, 0.0  ;;  %v4438_v49 = vmul.f32 %v9469_v7, %v9868_v38 }
 0x479   : > { %v4656_v29 = vmax.f32 %v4654_v17, %v4655_v18  ;;  %v4663_v40 = vmax.f32 %v4661_v21, %v4662_v0  ;;  %v4439_v24 = vmul.f32 %v9516_v45, %v9872_v53  ;;  %v4440_v37 = vmul.f32 %v11191_v11, %v9878_v30 }
 0x47a   : > { %v9974_v19 = vpop.f32.mrb[18].mxu1  ;;  %v4508_v41 = vmax.f32 %v4476_v28, 0.0  ;;  %v4669_v36 = vrot.slane %v4668_v47, 1  ;;  %v4678_v5 = vsel %vm4516_vm9, %v4507_v62, -inf  ;;  %6432 = vmatmul.mubr.msk.f32.gmra.mrb[26].mxu1 %vm4516_vm9, %v4507_v62  ;;  %v4477_v50 = vadd.f32 %v9695_v52, %v4438_v49 }
 0x47b   : > { %v9980_v25 = vpop.f32.mrb[19].mxu1  ;;  %v4675_v10 = vmax.f32 %v4673_v59, %v4674_v9  ;;  %v5124_v38 = vsel %vm3893_vm3, %v4642_v60, %v4635_v27  ;;  %v4679_v16 = vrot.slane %v4678_v5, 4  ;;  %v4478_v53 = vadd.f32 %v9695_v52, %v4439_v24 }
 0x47c   : > { %v4685_v61 = vsel %vm4516_vm9, %v4508_v41, -inf  ;;  %6434 = vmatprep.mubr.msk.f32.mxu1 %vm4516_vm9, %v4508_v41  ;;  %v4479_v30 = vadd.f32 %v9695_v52, %v4440_v37  ;;  %v4509_v21 = vmax.f32 %v4477_v50, 0.0  ;;  %v4670_v12 = vmax.f32 %v4668_v47, %v4669_v36 }
 0x47d   : > { %v4686_v17 = vrot.slane %v4685_v61, 4  ;;  %v4676_v4 = vrot.slane %v4675_v10, 1  ;;  %v4680_v18 = vmax.f32 %v4678_v5, %v4679_v16  ;;  %v4510_v0 = vmax.f32 %v4478_v53, 0.0 }
 0x47e   : > { %v4511_v6 = vmax.f32 %v4479_v30, 0.0  ;;  %v5125_v9 = vsel %vm3895_vm4, %v4649_v57, %v5124_v38  ;;  %v4692_v27 = vsel %vm4516_vm9, %v4509_v21, -inf  ;;  %6435 = vmatmul.mubr.msk.f32.gmra.mrb[28].mxu1 %vm4516_vm9, %v4509_v21 }
 0x47f   : > { %v4687_v59 = vmax.f32 %v4685_v61, %v4686_v17  ;;  %v4677_v60 = vmax.f32 %v4675_v10, %v4676_v4  ;;  %v5126_v28 = vsel %vm3897_vm5, %v4656_v29, %v5125_v9  ;;  %v4693_v62 = vrot.slane %v4692_v27, 4  ;;  %6437 = vmatprep.mubr.msk.f32.mxu1 %vm4516_vm9, %v4510_v0 }
 0x480   : > { %v4699_v49 = vsel %vm4516_vm9, %v4510_v0, -inf  ;;  %v4706_v47 = vsel %vm4516_vm9, %v4511_v6, -inf  ;;  %v4681_v41 = vrot.slane %v4680_v18, 2  ;;  %v5127_v57 = vsel %vm3899_vm6, %v4663_v40, %v5126_v28 }
 0x481   : > { %v4688_v24 = vrot.slane %v4687_v59, 2  ;;  %v4700_v37 = vrot.slane %v4699_v49, 4  ;;  %v4707_v36 = vrot.slane %v4706_v47, 4  ;;  %v4694_v5 = vmax.f32 %v4692_v27, %v4693_v62 }
 0x482   : > { %v4682_v50 = vmax.f32 %v4680_v18, %v4681_v41  ;;  %v5128_v38 = vsel %vm3901_vm7, %v4670_v12, %v5127_v57  ;;  %v4441_v29 = vmul.f32 %v9559_v63, %v9874_v20  ;;  %6438 = vmatmul.mubr.msk.f32.gmra.mrb[30].mxu1 %vm4516_vm9, %v4511_v6  ;;  %v10013_v20 = vadd.f32 %v9695_v52, %v9895_v51 }
 0x483   : > { %v4689_v10 = vmax.f32 %v4687_v59, %v4688_v24  ;;  %v4701_v16 = vmax.f32 %v4699_v49, %v4700_v37  ;;  %v10001_v61 = vmax.f32 %v4706_v47, %v4707_v36  ;;  %v10005_v53 = vsel %vm3903_vm0, %v4677_v60, %v5128_v38 }
 0x484   : > { %v4695_v17 = vrot.slane %v4694_v5, 2  ;;  %v4683_v40 = vrot.slane %v4682_v50, 1  ;;  %v10009_v12 = vadd.f32 %v9695_v52, %v4441_v29  ;;  %v11192_v49 = vmax.f32 %v9900_v32, 0.0 }
 0x485   : > { %v4690_v21 = vrot.slane %v4689_v10, 1  ;;  %v6464_v4 = vpop.f32.mrb[32].mxu0  ;;  %v4702_v18 = vrot.slane %v4701_v16, 2 }
 0x486   : > { %v5284_v0 = vcombine.high %v6464_v4, %v6464_v4  ;;  %v5291_v6 = vrot.slane %v6464_v4, %v11167_v55  ;;  %v10016_v9 = vmax.f32 %v4694_v5, %v4695_v17  ;;  %v5212_v59 = vpop.f32.mrb[33].mxu0  ;;  %v10025_v47 = vsel %vm4516_vm9, %v11192_v49, -inf }
 0x487   : > { %v5235_v60 = vcombine.high %v5212_v59, %v5212_v59  ;;  %v5242_v28 = vrot.slane %v5212_v59, %v11167_v55  ;;  %v10020_v62 = vmax.f32 %v4701_v16, %v4702_v18  ;;  %v10027_v52 = vmax.f32 %v4689_v10, %v4690_v21  ;;  %v10049_v59 = vld [vmem:[%s10434_s10] ss:$0 sm:$0xff] }
 0x488   : > { %v5299_v51 = vcombine.high %v5291_v6, %v5291_v6  ;;  %v5307_v41 = vrot.slane %v5291_v6, %v11167_v55  ;;  %v10030_v24 = vmax.f32 %v4682_v50, %v4683_v40  ;;  %v10033_v37 = vrot.slane %v5284_v0, %v11167_v55 }
 0x489   : > { %v5249_v36 = vrot.slane %v5235_v60, %v11167_v55  ;;  %v5250_v57 = vcombine.high %v5242_v28, %v5242_v28  ;;  %v5258_v5 = vrot.slane %v5242_v28, %v11167_v55  ;;  %v4697_v10 = vrot.slane %v10016_v9, 1 }
 0x48a   : > { %v5321_v38 = vrot.slane %v5299_v51, %v11167_v55  ;;  %v5329_v29 = vcombine.high %v5307_v41, %v5307_v41  ;;  %v5466_v16 = vrot.slane %v5307_v41, %v7303_v39 }
 0x48b   : > { %v5251_v17 = vcombine.high %v5249_v36, %v5249_v36  ;;  %v5265_v21 = vrot.slane %v5249_v36, %v11167_v55  ;;  %v5272_v50 = vrot.slane %v5250_v57, %v11167_v55  ;;  %v5280_v28 = vcombine.high %v5258_v5, %v5258_v5 }
 0x48c   : > { %v5331_v4 = vcombine.high %v5321_v38, %v5321_v38  ;;  %v5470_v18 = vrot.slane %v5321_v38, %v7303_v39  ;;  %v5474_v0 = vrot.slane %v5329_v29, %v7303_v39  ;;  %v5599_v6 = vadd.f32 %v5466_v16, %v9944_v33 }
 0x48d   : > { %v5279_v60 = vrot.slane %v5251_v17, %v11167_v55  ;;  %v5281_v49 = vcombine.high %v5265_v21, %v5265_v21  ;;  %v5282_v51 = vcombine.high %v5272_v50, %v5272_v50  ;;  %v5434_v33 = vrot.slane %v5258_v5, %v7303_v39 }
 0x48e   : > { %v5478_v41 = vrot.slane %v5331_v4, %v7303_v39  ;;  %v5600_v36 = vadd.f32 %v9939_v35, %v5470_v18  ;;  %v5601_v57 = vadd.f32 %v5474_v0, %v9957_v31  ;;  %v5631_v38 = vmul.f32 %v11171_v8, %v5599_v6 }
 0x48f   : > { %v5283_v29 = vcombine.high %v5279_v60, %v5279_v60  ;;  %v5438_v16 = vrot.slane %v5272_v50, %v7303_v39  ;;  %v5442_v30 = vrot.slane %v5280_v28, %v7303_v39  ;;  %v5446_v35 = vrot.slane %v5282_v51, %v7303_v39 }
 0x490   : > { %v5602_v17 = vadd.f32 %v9952_v26, %v5478_v41  ;;  %v5632_v27 = vmul.f32 %v11177_v44, %v5600_v36  ;;  %v5633_v40 = vmul.f32 %v11178_v56, %v5601_v57  ;;  %v5670_v4 = vadd.f32 %v10049_v59, %v5631_v38 }
 0x491   : > { %v5450_v31 = vrot.slane %v5265_v21, %v7303_v39  ;;  %v5454_v18 = vrot.slane %v5279_v60, %v7303_v39  ;;  %v5458_v5 = vrot.slane %v5281_v49, %v7303_v39  ;;  %v5462_v28 = vrot.slane %v5283_v29, %v7303_v39 }
 0x492   : > { %v5634_v50 = vmul.f32 %v11179_v14, %v5602_v17  ;;  %v5671_v0 = vadd.f32 %v10049_v59, %v5632_v27  ;;  %v5672_v26 = vadd.f32 %v10049_v59, %v5633_v40  ;;  %v5702_v6 = vmax.f32 %v5670_v4, 0.0 }
 0x493   : > { %v5591_v41 = vadd.f32 %v5434_v33, %v9854_v23  ;;  %v5592_v36 = vadd.f32 %v9850_v2, %v5438_v16  ;;  %v5593_v51 = vadd.f32 %v5442_v30, %v9870_v46  ;;  %v5594_v38 = vadd.f32 %v9864_v48, %v5446_v35  ;;  %v11193_v16 = vld [vmem:[#allocation70_spill] sm:$0xff] }
 0x494   : > { %v5673_v21 = vadd.f32 %v10049_v59, %v5634_v50  ;;  %v5703_v60 = vmax.f32 %v5671_v0, 0.0  ;;  %v5704_v57 = vmax.f32 %v5672_v26, 0.0  ;;  %v5734_v49 = vmul.f32 %v11171_v8, %v5702_v6  ;;  %v11197_v50 = vld [vmem:[#allocation105_spill] sm:$0xff] }
 0x495   : > { %v5595_v27 = vadd.f32 %v5450_v31, %v9885_v42  ;;  %v5596_v40 = vadd.f32 %v9880_v43, %v5454_v18  ;;  %v5597_v29 = vadd.f32 %v5458_v5, %v9932_v3  ;;  %v5598_v30 = vadd.f32 %v9925_v15, %v5462_v28  ;;  %v11194_v3 = vld [vmem:[#allocation98_spill] sm:$0xff]  ;;  %v11195_v18 = vld [vmem:[#allocation100_spill] sm:$0xff] }
 0x496   : > { %v5705_v17 = vmax.f32 %v5673_v21, 0.0  ;;  %v5735_v23 = vmul.f32 %v11177_v44, %v5703_v60  ;;  %v5736_v2 = vmul.f32 %v11178_v56, %v5704_v57  ;;  %v5806_v46 = vrot.slane %v5734_v49, 4  ;;  %v11196_v5 = vld [vmem:[#allocation108_spill] sm:$0xff] }
 0x497   : > { %v5623_v33 = vmul.f32 %v8842_v54, %v5591_v41  ;;  %v5624_v8 = vmul.f32 %v11170_v22, %v5592_v36  ;;  %v5625_v48 = vmul.f32 %v11193_v16, %v5593_v51  ;;  %v5626_v31 = vmul.f32 %v11194_v3, %v5594_v38  ;;  %v11198_v41 = vld [vmem:[#allocation104_spill] sm:$0xff] }
 0x498   : > { %v5737_v42 = vmul.f32 %v11179_v14, %v5705_v17  ;;  %v5807_v4 = vmax.f32 %v5734_v49, %v5806_v46  ;;  %v5812_v43 = vrot.slane %v5735_v23, 4  ;;  %v5818_v35 = vrot.slane %v5736_v2, 4 }
 0x499   : > { %v5627_v44 = vmul.f32 %v11195_v18, %v5595_v27  ;;  %v5628_v56 = vmul.f32 %v11196_v5, %v5596_v40  ;;  %v5629_v0 = vmul.f32 %v11197_v50, %v5597_v29  ;;  %v5630_v36 = vmul.f32 %v11198_v41, %v5598_v30 }
 0x49a   : > { %v5808_v15 = vrot.slane %v5807_v4, 2  ;;  %v5813_v26 = vmax.f32 %v5735_v23, %v5812_v43  ;;  %v5819_v6 = vmax.f32 %v5736_v2, %v5818_v35  ;;  %v5824_v28 = vrot.slane %v5737_v42, 4 }
 0x49b   : > { %v5662_v51 = vadd.f32 %v10049_v59, %v5623_v33  ;;  %v5663_v14 = vadd.f32 %v10049_v59, %v5624_v8  ;;  %v5664_v21 = vadd.f32 %v10049_v59, %v5625_v48  ;;  %v5665_v27 = vadd.f32 %v10049_v59, %v5626_v31 }
 0x49c   : > { %v5809_v60 = vmax.f32 %v5807_v4, %v5808_v15  ;;  %v5814_v57 = vrot.slane %v5813_v26, 2  ;;  %v5820_v49 = vrot.slane %v5819_v6, 2  ;;  %v5825_v38 = vmax.f32 %v5737_v42, %v5824_v28 }
 0x49d   : > { %v5666_v40 = vadd.f32 %v10049_v59, %v5627_v44  ;;  %v5667_v29 = vadd.f32 %v10049_v59, %v5628_v56  ;;  %v5668_v17 = vadd.f32 %v10049_v59, %v5629_v0  ;;  %v5669_v33 = vadd.f32 %v10049_v59, %v5630_v36 }
 0x49e   : > { %v5810_v23 = vrot.slane %v5809_v60, 1  ;;  %v10099_v2 = vmax.f32 %v5813_v26, %v5814_v57  ;;  %v10101_v46 = vmax.f32 %v5819_v6, %v5820_v49  ;;  %v5826_v30 = vrot.slane %v5825_v38, 2 }
 0x49f   : > { %v5694_v8 = vmax.f32 %v5662_v51, 0.0  ;;  %v5695_v48 = vmax.f32 %v5663_v14, 0.0  ;;  %v5696_v4 = vmax.f32 %v5664_v21, 0.0  ;;  %v10113_v31 = vmax.f32 %v10016_v9, %v4697_v10 }
 0x4a0   : > { %v10106_v43 = vmax.f32 %v5809_v60, %v5810_v23  ;;  %v10108_v35 = vmax.f32 %v5825_v38, %v5826_v30  ;;  %v5697_v44 = vmax.f32 %v5665_v27, 0.0  ;;  %v5698_v56 = vmax.f32 %v5666_v40, 0.0 }
 0x4a1   : > { %v5699_v0 = vmax.f32 %v5667_v29, 0.0  ;;  %v5700_v15 = vmax.f32 %v5668_v17, 0.0  ;;  %v5816_v26 = vrot.slane %v10099_v2, 1  ;;  %v5822_v6 = vrot.slane %v10101_v46, 1 }
 0x4a2   : > { %v5828_v28 = vrot.slane %v10108_v35, 1  ;;  %v5701_v36 = vmax.f32 %v5669_v33, 0.0  ;;  %v5726_v51 = vmul.f32 %v8842_v54, %v5694_v8  ;;  %v5727_v14 = vmul.f32 %v11170_v22, %v5695_v48 }
 0x4a3   : > { %v5728_v21 = vmul.f32 %v11193_v16, %v5696_v4  ;;  %v5729_v9 = vmul.f32 %v11194_v3, %v5697_v44  ;;  %v5730_v10 = vmul.f32 %v11195_v18, %v5698_v56  ;;  %v5731_v60 = vmul.f32 %v11196_v5, %v5699_v0 }
 0x4a4   : > { %v5732_v57 = vmul.f32 %v11197_v50, %v5700_v15  ;;  %v5733_v49 = vmul.f32 %v11198_v41, %v5701_v36  ;;  %v5758_v38 = vrot.slane %v5726_v51, 4  ;;  %v5764_v27 = vrot.slane %v5727_v14, 4 }
 0x4a5   : > { %v5770_v40 = vrot.slane %v5728_v21, 4  ;;  %v5776_v29 = vrot.slane %v5729_v9, 4  ;;  %v5782_v17 = vrot.slane %v5730_v10, 4  ;;  %v5788_v54 = vrot.slane %v5731_v60, 4 }
 0x4a6   : > { %v5794_v23 = vrot.slane %v5732_v57, 4  ;;  %v5800_v22 = vrot.slane %v5733_v49, 4  ;;  %v5759_v30 = vmax.f32 %v5726_v51, %v5758_v38  ;;  %v5765_v16 = vmax.f32 %v5727_v14, %v5764_v27 }
 0x4a7   : > { %v5771_v33 = vmax.f32 %v5728_v21, %v5770_v40  ;;  %v5777_v3 = vmax.f32 %v5729_v9, %v5776_v29  ;;  %v5783_v8 = vmax.f32 %v5730_v10, %v5782_v17  ;;  %v5789_v18 = vmax.f32 %v5731_v60, %v5788_v54 }
 0x4a8   : > { %v5795_v48 = vmax.f32 %v5732_v57, %v5794_v23  ;;  %v5801_v5 = vmax.f32 %v5733_v49, %v5800_v22  ;;  %v5760_v4 = vrot.slane %v5759_v30, 2  ;;  %v5766_v50 = vrot.slane %v5765_v16, 2 }
 0x4a9   : > { %v5772_v44 = vrot.slane %v5771_v33, 2  ;;  %v5778_v41 = vrot.slane %v5777_v3, 2  ;;  %v5784_v56 = vrot.slane %v5783_v8, 2  ;;  %v5790_v0 = vrot.slane %v5789_v18, 2 }
 0x4aa   : > { %v5796_v15 = vrot.slane %v5795_v48, 2  ;;  %v5802_v36 = vrot.slane %v5801_v5, 2  ;;  %v5761_v42 = vmax.f32 %v5759_v30, %v5760_v4  ;;  %v5767_v63 = vmax.f32 %v5765_v16, %v5766_v50 }
 0x4ab   : > { %v5773_v1 = vmax.f32 %v5771_v33, %v5772_v44  ;;  %v5779_v11 = vmax.f32 %v5777_v3, %v5778_v41  ;;  %v5785_v51 = vmax.f32 %v5783_v8, %v5784_v56  ;;  %v5791_v14 = vmax.f32 %v5789_v18, %v5790_v0 }
 0x4ac   : > { %v10126_v21 = vmax.f32 %v5795_v48, %v5796_v15  ;;  %v10128_v9 = vmax.f32 %v5801_v5, %v5802_v36  ;;  %v5762_v10 = vrot.slane %v5761_v42, 1  ;;  %v5768_v60 = vrot.slane %v5767_v63, 1 }
 0x4ad   : > { %v5774_v57 = vrot.slane %v5773_v1, 1  ;;  %v5780_v49 = vrot.slane %v5779_v11, 1  ;;  %v5817_v38 = vmax.f32 %v10099_v2, %v5816_v26  ;;  %v5823_v27 = vmax.f32 %v10101_v46, %v5822_v6 }
 0x4ae   : > { %v5786_v40 = vrot.slane %v5785_v51, 1  ;;  %v5792_v29 = vrot.slane %v5791_v14, 1  ;;  %v5763_v17 = vmax.f32 %v5761_v42, %v5762_v10  ;;  %v5769_v54 = vmax.f32 %v5767_v63, %v5768_v60 }
 0x4af   : > { %v5775_v23 = vmax.f32 %v5773_v1, %v5774_v57  ;;  %v5781_v22 = vmax.f32 %v5779_v11, %v5780_v49  ;;  %v5798_v16 = vrot.slane %v10126_v21, 1  ;;  %v5804_v33 = vrot.slane %v10128_v9, 1 }
 0x4b0   : > { %v5787_v30 = vmax.f32 %v5785_v51, %v5786_v40  ;;  %v11199_v3 = vrot.slane %v10020_v62, 1  ;;  %v5982_v18 = vsel %vm3893_vm3, %v5769_v54, %v5763_v17  ;;  %v11200_v2 = vcombine.high %v10033_v37, %v10033_v37 }
 0x4b1   : > { %v5314_v63 = vrot.slane %v10033_v37, %v11167_v55  ;;  %v5829_v1 = vmax.f32 %v10108_v35, %v5828_v28  ;;  %v5983_v11 = vsel %vm3895_vm4, %v5775_v23, %v5982_v18  ;;  %v5989_v42 = vsel %vm3893_vm3, %v5817_v38, %v10106_v43  ;;  %v11205_v38 = vld [vmem:[#allocation12_spill] sm:$0xff] }
 0x4b2   : > { %v4705_v8 = vmax.f32 %v10020_v62, %v11199_v3  ;;  %v5328_v46 = vrot.slane %v11200_v2, %v11167_v55  ;;  %v11201_v26 = vrot.slane %v10001_v61, 2  ;;  %v5130_v6 = vsel %vm3905_vm8, %v10030_v24, %v10005_v53 }
 0x4b3   : > { %v5984_v48 = vsel %vm3897_vm5, %v5781_v22, %v5983_v11  ;;  %v5482_v37 = vrot.slane %v5314_v63, %v7303_v39  ;;  %v5990_v35 = vsel %vm3895_vm4, %v5823_v27, %v5989_v42  ;;  %6465 = vmatprep.mubr.msk.f32.mxu0 %vm4516_vm9, %v5130_v6  ;;  %v4512_v4 = vmax.f32 %v10009_v12, 0.0  ;;  %v11202_v12 = vld [vmem:[#allocation55_spill] sm:$0xff] }
 0x4b4   : > { %v4710_v62 = vmax.f32 %v10001_v61, %v11201_v26  ;;  %v5486_v5 = vrot.slane %v5328_v46, %v7303_v39  ;;  %v5985_v43 = vsel %vm3899_vm6, %v5787_v30, %v5984_v48  ;;  %v10161_v28 = vsel %vm3897_vm5, %v5829_v1, %v5990_v35  ;;  %v11208_v48 = vld [vmem:[#allocation141_spill] sm:$0xff] }
 0x4b5   : > { %v5603_v24 = vadd.f32 %v5482_v37, %v9967_v58  ;;  %v4515_v50 = vmax.f32 %v10013_v20, 0.0  ;;  %v4721_v44 = vrot.slane %v10025_v47, 4  ;;  %v5793_v41 = vmax.f32 %v5791_v14, %v5792_v29  ;;  %6440 = vmatprep.mubr.msk.f32.mxu1 %vm4516_vm9, %v4512_v4 }
 0x4b6   : > { %v4711_v61 = vrot.slane %v4710_v62, 1  ;;  %v5604_v53 = vadd.f32 %v9964_v34, %v5486_v5  ;;  %v4713_v0 = vsel %vm4516_vm9, %v4512_v4, -inf  ;;  %v5131_v15 = vsel %vm3893_vm3, %v10113_v31, %v10027_v52  ;;  %v11203_v34 = vld [vmem:[#allocation102_spill] sm:$0xff] }
 0x4b7   : > { %v5635_v51 = vmul.f32 %v11203_v34, %v5603_v24  ;;  %v4714_v58 = vrot.slane %v4713_v0, 4  ;;  %v4722_v20 = vmax.f32 %v10025_v47, %v4721_v44  ;;  %v11204_v10 = vmax.f32 %v9900_v32, 0.0 }
 0x4b8   : > { %v4712_v56 = vmax.f32 %v4710_v62, %v4711_v61  ;;  %v5636_v36 = vmul.f32 %v11202_v12, %v5604_v53  ;;  %v4734_v14 = vsel %vm4516_vm9, %v4515_v50, -inf  ;;  %v5132_v60 = vsel %vm3895_vm4, %v4705_v8, %v5131_v15  ;;  %v11207_v62 = vld [vmem:[#allocation103_spill] sm:$0xff] }
 0x4b9   : > { %6441 = vmatmul.mubr.msk.f32.gmra.mrb[32].mxu1 %vm4516_vm9, %v11204_v10  ;;  %v5332_v57 = vcombine.high %v5328_v46, %v5328_v46  ;;  %v5330_v49 = vcombine.high %v5314_v63, %v5314_v63  ;;  %v11206_v27 = vmax.f32 %v11205_v38, 0.0  ;;  %v5674_v31 = vadd.f32 %v10049_v59, %v5635_v51 }
 0x4ba   : > { %v5675_v52 = vadd.f32 %v10049_v59, %v5636_v36  ;;  %v4715_v40 = vmax.f32 %v4713_v0, %v4714_v58  ;;  %v4723_v47 = vrot.slane %v4722_v20, 2  ;;  %v4735_v32 = vrot.slane %v4734_v14, 4 }
 0x4bb   : > { %6443 = vmatprep.mubr.msk.f32.mxu1 %vm4516_vm9, %v11206_v27  ;;  %v5133_v29 = vsel %vm3897_vm5, %v4712_v56, %v5132_v60  ;;  %v5494_v17 = vrot.slane %v5332_v57, %v7303_v39  ;;  %v5490_v54 = vrot.slane %v5330_v49, %v7303_v39  ;;  %v5706_v22 = vmax.f32 %v5674_v31, 0.0 }
 0x4bc   : > { %v5707_v23 = vmax.f32 %v5675_v52, 0.0  ;;  %v4716_v30 = vrot.slane %v4715_v40, 2  ;;  %v4724_v3 = vmax.f32 %v4722_v20, %v4723_v47  ;;  %v5799_v8 = vmax.f32 %v10126_v21, %v5798_v16 }
 0x4bd   : > { %6444 = vmatmul.mubr.msk.f32.gmra.mrb[34].mxu1 %vm4516_vm9, %v4515_v50  ;;  %v4736_v18 = vmax.f32 %v4734_v14, %v4735_v32  ;;  %v5606_v2 = vadd.f32 %v9974_v19, %v5494_v17  ;;  %v5605_v46 = vadd.f32 %v5490_v54, %v9980_v25  ;;  %v5738_v1 = vmul.f32 %v11203_v34, %v5706_v22 }
 0x4be   : > { %v5739_v63 = vmul.f32 %v11202_v12, %v5707_v23  ;;  %v4717_v11 = vmax.f32 %v4715_v40, %v4716_v30  ;;  %v4725_v42 = vrot.slane %v4724_v3, 1  ;;  %v5986_v21 = vsel %vm3901_vm7, %v5793_v41, %v5985_v43 }
 0x4bf   : > { %v4737_v26 = vrot.slane %v4736_v18, 2  ;;  %v5638_v6 = vmul.f32 %v11207_v62, %v5606_v2  ;;  %v5637_v5 = vmul.f32 %v11208_v48, %v5605_v46  ;;  %v5830_v37 = vrot.slane %v5738_v1, 4 }
 0x4c0   : > { %v5836_v16 = vrot.slane %v5739_v63, 4  ;;  %v4718_v19 = vrot.slane %v4717_v11, 1  ;;  %v5805_v25 = vmax.f32 %v10128_v9, %v5804_v33  ;;  %v5987_v53 = vsel %vm3903_vm0, %v5799_v8, %v5986_v21 }
 0x4c1   : > { %v4738_v35 = vmax.f32 %v4736_v18, %v4737_v26  ;;  %v5677_v61 = vadd.f32 %v10049_v59, %v5638_v6  ;;  %v5676_v4 = vadd.f32 %v10049_v59, %v5637_v5  ;;  %v5831_v50 = vmax.f32 %v5738_v1, %v5830_v37 }
 0x4c2   : > { %v5837_v24 = vmax.f32 %v5739_v63, %v5836_v16  ;;  %v4719_v44 = vmax.f32 %v4717_v11, %v4718_v19  ;;  %v5988_v56 = vsel %vm3905_vm8, %v5805_v25, %v5987_v53  ;;  %v4726_v43 = vmax.f32 %v4724_v3, %v4725_v42 }
 0x4c3   : > { %v4739_v41 = vrot.slane %v4738_v35, 1  ;;  %v5709_v0 = vmax.f32 %v5677_v61, 0.0  ;;  %v5708_v15 = vmax.f32 %v5676_v4, 0.0  ;;  %6014 = vst [vmem:[%s10208_s25] sm:$0xff] %v5988_v56  ;;  %v5832_v33 = vrot.slane %v5831_v50, 2 }
 0x4c4   : > { %v5838_v9 = vrot.slane %v5837_v24, 2  ;;  %v11209_v12 = vrot.slane %v9954_v13, 1  ;;  %v5134_v34 = vsel %vm3899_vm6, %v4719_v44, %v5133_v29 }
 0x4c5   : > { %v4740_v51 = vmax.f32 %v4738_v35, %v4739_v41  ;;  %v5135_v58 = vsel %vm3901_vm7, %v4726_v43, %v5134_v34  ;;  %v5741_v20 = vmul.f32 %v11207_v62, %v5709_v0  ;;  %v5740_v10 = vmul.f32 %v11208_v48, %v5708_v15 }
 0x4c6   : > { %v4733_v36 = vmax.f32 %v9954_v13, %v11209_v12  ;;  %v5839_v14 = vmax.f32 %v5837_v24, %v5838_v9  ;;  %v5833_v60 = vmax.f32 %v5831_v50, %v5832_v33 }
 0x4c7   : > { %v5848_v38 = vrot.slane %v5741_v20, 4  ;;  %v5842_v27 = vrot.slane %v5740_v10, 4 }
 0x4c8   : > { %v5136_v57 = vsel %vm3903_vm0, %v4733_v36, %v5135_v58  ;;  %v5840_v52 = vrot.slane %v5839_v14, 1  ;;  %v5834_v31 = vrot.slane %v5833_v60, 1 }
 0x4c9   : > { %v5137_v49 = vsel %vm3905_vm8, %v4740_v51, %v5136_v57  ;;  %v5849_v13 = vmax.f32 %v5741_v20, %v5848_v38  ;;  %v5843_v40 = vmax.f32 %v5740_v10, %v5842_v27 }
 0x4ca   : > { %6466 = vmatmul.mubr.msk.f32.gmra.mrb[34].mxu0 %vm4516_vm9, %v5137_v49  ;;  %v5835_v47 = vmax.f32 %v5833_v60, %v5834_v31  ;;  %v5841_v32 = vmax.f32 %v5839_v14, %v5840_v52 }
 0x4cb   : > { %v5850_v29 = vrot.slane %v5849_v13, 2  ;;  %v5844_v17 = vrot.slane %v5843_v40, 2 }
 0x4cc   : > { %v5992_v54 = vsel %vm3899_vm6, %v5835_v47, %v10161_v28 }
 0x4cd   : > { %v5851_v23 = vmax.f32 %v5849_v13, %v5850_v29  ;;  %v5845_v22 = vmax.f32 %v5843_v40, %v5844_v17  ;;  %v5993_v30 = vsel %vm3901_vm7, %v5841_v32, %v5992_v54  ;;  %v11210_v32 = vld [vmem:[#allocation16_spill] sm:$0xff] }
 0x4cf   : > { %v5852_v3 = vrot.slane %v5851_v23, 1  ;;  %v5846_v8 = vrot.slane %v5845_v22, 1 }
 0x4d1   : > { %v5847_v18 = vmax.f32 %v5845_v22, %v5846_v8  ;;  %v5853_v2 = vmax.f32 %v5851_v23, %v5852_v3 }
 0x4d3   : > { %v5994_v46 = vsel %vm3903_vm0, %v5847_v18, %v5993_v30 }
 0x4d4   : > { %v5995_v63 = vsel %vm3905_vm8, %v5853_v2, %v5994_v46 }
 0x4d5   : > { %6015 = vst [vmem:[%s10208_s25 + $0x8] sm:$0xff] %v5995_v63 }
 0x540   : > { %v10227_v1 = vpop.f32.mrb[20].mxu1 }
 0x541   : > { %v4991_v11 = vpop.f32.mrb[21].mxu1 }
 0x544   : > { %v10229_v42 = vpop.f32.mrb[22].mxu1 }
 0x545   : > { %v5001_v26 = vpop.f32.mrb[23].mxu1 }
 0x548   : > { %v10231_v28 = vpop.f32.mrb[24].mxu1 }
 0x549   : > { %v10233_v62 = vpop.f32.mrb[25].mxu1 }
 0x54d   : > { %v10235_v6 = vpop.f32.mrb[26].mxu1 }
 0x54e   : > { %v10237_v48 = vpop.f32.mrb[27].mxu1 }
 0x551   : > { %v6436_v5 = vpop.f32.mrb[28].mxu1 }
 0x552   : > { %v5031_v21 = vpop.f32.mrb[29].mxu1 }
 0x555   : > { %v6439_v16 = vpop.f32.mrb[30].mxu1 }
 0x556   : > { %v5041_v37 = vpop.f32.mrb[31].mxu1 }
 0x58c   : > { %v10239_v19 = vpop.f32.mrb[32].mxu1 }
 0x58d   : > { %v10241_v25 = vpop.f32.mrb[33].mxu1 }
 0x590   : > { %v10243_v35 = vpop.f32.mrb[34].mxu1 }
 0x591   : > { %v10245_v61 = vpop.f32.mrb[35].mxu1 }
 0x59d   : > { %v6467_v4 = vpop.f32.mrb[34].mxu0 }
 0x59e   : > { %v5382_v53 = vcombine.high %v6467_v4, %v6467_v4  ;;  %v5389_v24 = vrot.slane %v6467_v4, %v11167_v55  ;;  %v5222_v50 = vpop.f32.mrb[35].mxu0 }
 0x59f   : > { %v5333_v44 = vcombine.high %v5222_v50, %v5222_v50  ;;  %v5340_v56 = vrot.slane %v5222_v50, %v11167_v55 }
 0x5a0   : > { %v5397_v43 = vcombine.high %v5389_v24, %v5389_v24  ;;  %v5405_v41 = vrot.slane %v5389_v24, %v11167_v55  ;;  %v10253_v33 = vrot.slane %v5382_v53, %v11167_v55 }
 0x5a1   : > { %v5347_v0 = vrot.slane %v5333_v44, %v11167_v55  ;;  %v5348_v15 = vcombine.high %v5340_v56, %v5340_v56  ;;  %v5356_v9 = vrot.slane %v5340_v56, %v11167_v55 }
 0x5a2   : > { %v5419_v12 = vrot.slane %v5397_v43, %v11167_v55  ;;  %v5427_v36 = vcombine.high %v5405_v41, %v5405_v41  ;;  %v5530_v34 = vrot.slane %v5405_v41, %v7303_v39 }
 0x5a3   : > { %v5349_v51 = vcombine.high %v5347_v0, %v5347_v0  ;;  %v5363_v58 = vrot.slane %v5347_v0, %v11167_v55  ;;  %v5370_v20 = vrot.slane %v5348_v15, %v11167_v55  ;;  %v5378_v10 = vcombine.high %v5356_v9, %v5356_v9 }
 0x5a4   : > { %v5429_v14 = vcombine.high %v5419_v12, %v5419_v12  ;;  %v5534_v60 = vrot.slane %v5419_v12, %v7303_v39  ;;  %v5538_v57 = vrot.slane %v5427_v36, %v7303_v39  ;;  %v5615_v49 = vadd.f32 %v5530_v34, %v5031_v21  ;;  %v11211_v21 = vld [vmem:[#allocation9_spill] sm:$0xff] }
 0x5a5   : > { %v5377_v38 = vrot.slane %v5349_v51, %v11167_v55  ;;  %v5379_v27 = vcombine.high %v5363_v58, %v5363_v58  ;;  %v5380_v52 = vcombine.high %v5370_v20, %v5370_v20  ;;  %v5498_v31 = vrot.slane %v5356_v9, %v7303_v39  ;;  %v11212_v51 = vld [vmem:[#allocation8_spill] sm:$0xff] }
 0x5a6   : > { %v5542_v13 = vrot.slane %v5429_v14, %v7303_v39  ;;  %v5616_v40 = vadd.f32 %v6436_v5, %v5534_v60  ;;  %v5617_v47 = vadd.f32 %v5538_v57, %v5041_v37  ;;  %v5647_v29 = vmul.f32 %v11210_v32, %v5615_v49  ;;  %v11214_v14 = vld [vmem:[#allocation106_spill] sm:$0xff]  ;;  %v11215_v57 = vld [vmem:[#allocation13_spill] sm:$0xff] }
 0x5a7   : > { %v5381_v17 = vcombine.high %v5377_v38, %v5377_v38  ;;  %v5502_v54 = vrot.slane %v5370_v20, %v7303_v39  ;;  %v5506_v23 = vrot.slane %v5378_v10, %v7303_v39  ;;  %v5510_v22 = vrot.slane %v5380_v52, %v7303_v39  ;;  %v11213_v20 = vld [vmem:[#allocation107_spill] sm:$0xff]  ;;  %v11217_v52 = vld [vmem:[#allocation41_spill] sm:$0xff] }
 0x5a8   : > { %v5618_v30 = vadd.f32 %v6439_v16, %v5542_v13  ;;  %v5648_v3 = vmul.f32 %v9469_v7, %v5616_v40  ;;  %v5649_v8 = vmul.f32 %v9516_v45, %v5617_v47  ;;  %v5686_v18 = vadd.f32 %v10049_v59, %v5647_v29  ;;  %v11219_v13 = vld [vmem:[#allocation42_spill] sm:$0xff] }
 0x5a9   : > { %v5514_v2 = vrot.slane %v5363_v58, %v7303_v39  ;;  %v5518_v46 = vrot.slane %v5377_v38, %v7303_v39  ;;  %v5522_v63 = vrot.slane %v5379_v27, %v7303_v39  ;;  %v5526_v5 = vrot.slane %v5381_v17, %v7303_v39 }
 0x5aa   : > { %v5650_v37 = vmul.f32 %v11211_v21, %v5618_v30  ;;  %v5687_v4 = vadd.f32 %v10049_v59, %v5648_v3  ;;  %v5688_v16 = vadd.f32 %v10049_v59, %v5649_v8  ;;  %v5718_v53 = vmax.f32 %v5686_v18, 0.0 }
 0x5ab   : > { %v5607_v24 = vadd.f32 %v5498_v31, %v4991_v11  ;;  %v5608_v50 = vadd.f32 %v10227_v1, %v5502_v54  ;;  %v5609_v44 = vadd.f32 %v5506_v23, %v5001_v26  ;;  %v5610_v56 = vadd.f32 %v10229_v42, %v5510_v22  ;;  %v11218_v31 = vld [vmem:[#allocation115_spill] sm:$0xff] }
 0x5ac   : > { %v5689_v43 = vadd.f32 %v10049_v59, %v5650_v37  ;;  %v5719_v41 = vmax.f32 %v5687_v4, 0.0  ;;  %v5720_v0 = vmax.f32 %v5688_v16, 0.0  ;;  %v5750_v15 = vmul.f32 %v11210_v32, %v5718_v53 }
 0x5ad   : > { %v5611_v9 = vadd.f32 %v5514_v2, %v10233_v62  ;;  %v5612_v12 = vadd.f32 %v10231_v28, %v5518_v46  ;;  %v5613_v36 = vadd.f32 %v5522_v63, %v10237_v48  ;;  %v5614_v34 = vadd.f32 %v10235_v6, %v5526_v5  ;;  %v11216_v6 = vld [vmem:[#allocation15_spill] sm:$0xff] }
 0x5ae   : > { %v5721_v11 = vmax.f32 %v5689_v43, 0.0  ;;  %v5751_v1 = vmul.f32 %v9469_v7, %v5719_v41  ;;  %v5752_v26 = vmul.f32 %v9516_v45, %v5720_v0  ;;  %v5902_v42 = vrot.slane %v5750_v15, 4 }
 0x5af   : > { %v5639_v58 = vmul.f32 %v11212_v51, %v5607_v24  ;;  %v5640_v10 = vmul.f32 %v11213_v20, %v5608_v50  ;;  %v5641_v60 = vmul.f32 %v11214_v14, %v5609_v44  ;;  %v5642_v62 = vmul.f32 %v11215_v57, %v5610_v56 }
 0x5b0   : > { %v5753_v28 = vmul.f32 %v11211_v21, %v5721_v11  ;;  %v5903_v49 = vmax.f32 %v5750_v15, %v5902_v42  ;;  %v5908_v48 = vrot.slane %v5751_v1, 4  ;;  %v5914_v38 = vrot.slane %v5752_v26, 4 }
 0x5b1   : > { %v5643_v27 = vmul.f32 %v11216_v6, %v5611_v9  ;;  %v5644_v7 = vmul.f32 %v11217_v52, %v5612_v12  ;;  %v5645_v45 = vmul.f32 %v11218_v31, %v5613_v36  ;;  %v5646_v40 = vmul.f32 %v11219_v13, %v5614_v34 }
 0x5b2   : > { %v5904_v47 = vrot.slane %v5903_v49, 2  ;;  %v5909_v32 = vmax.f32 %v5751_v1, %v5908_v48  ;;  %v5915_v29 = vmax.f32 %v5752_v26, %v5914_v38  ;;  %v5920_v17 = vrot.slane %v5753_v28, 4 }
 0x5b3   : > { %v5678_v54 = vadd.f32 %v10049_v59, %v5639_v58  ;;  %v5679_v23 = vadd.f32 %v10049_v59, %v5640_v10  ;;  %v5680_v22 = vadd.f32 %v10049_v59, %v5641_v60  ;;  %v5681_v30 = vadd.f32 %v10049_v59, %v5642_v62 }
 0x5b4   : > { %v10301_v3 = vmax.f32 %v5903_v49, %v5904_v47  ;;  %v5910_v8 = vrot.slane %v5909_v32, 2  ;;  %v5916_v18 = vrot.slane %v5915_v29, 2  ;;  %v5921_v2 = vmax.f32 %v5753_v28, %v5920_v17 }
 0x5b5   : > { %v5682_v46 = vadd.f32 %v10049_v59, %v5643_v27  ;;  %v5683_v63 = vadd.f32 %v10049_v59, %v5644_v7  ;;  %v5684_v5 = vadd.f32 %v10049_v59, %v5645_v45  ;;  %v5685_v21 = vadd.f32 %v10049_v59, %v5646_v40 }
 0x5b6   : > { %v5911_v37 = vmax.f32 %v5909_v32, %v5910_v8  ;;  %v10307_v4 = vmax.f32 %v5915_v29, %v5916_v18  ;;  %v5922_v16 = vrot.slane %v5921_v2, 2  ;;  %v5710_v53 = vmax.f32 %v5678_v54, 0.0 }
 0x5b7   : > { %v5711_v24 = vmax.f32 %v5679_v23, 0.0  ;;  %v5712_v50 = vmax.f32 %v5680_v22, 0.0  ;;  %v5713_v44 = vmax.f32 %v5681_v30, 0.0  ;;  %v5398_v56 = vcombine.high %v10253_v33, %v10253_v33 }
 0x5b8   : > { %v5906_v43 = vrot.slane %v10301_v3, 1  ;;  %v5912_v41 = vrot.slane %v5911_v37, 1  ;;  %v10312_v0 = vmax.f32 %v5921_v2, %v5922_v16  ;;  %v5714_v15 = vmax.f32 %v5682_v46, 0.0 }
 0x5b9   : > { %v5715_v9 = vmax.f32 %v5683_v63, 0.0  ;;  %v5716_v12 = vmax.f32 %v5684_v5, 0.0  ;;  %v5717_v36 = vmax.f32 %v5685_v21, 0.0  ;;  %v5918_v11 = vrot.slane %v10307_v4, 1 }
 0x5ba   : > { %v10314_v34 = vmax.f32 %v5911_v37, %v5912_v41  ;;  %v5924_v1 = vrot.slane %v10312_v0, 1  ;;  %v5742_v26 = vmul.f32 %v11212_v51, %v5710_v53  ;;  %v5743_v42 = vmul.f32 %v11213_v20, %v5711_v24 }
 0x5bb   : > { %v5744_v58 = vmul.f32 %v11214_v14, %v5712_v50  ;;  %v5745_v10 = vmul.f32 %v11215_v57, %v5713_v44  ;;  %v5746_v60 = vmul.f32 %v11216_v6, %v5714_v15  ;;  %v5747_v62 = vmul.f32 %v11217_v52, %v5715_v9 }
 0x5bc   : > { %v5748_v28 = vmul.f32 %v11218_v31, %v5716_v12  ;;  %v5749_v49 = vmul.f32 %v11219_v13, %v5717_v36  ;;  %v5854_v48 = vrot.slane %v5742_v26, 4  ;;  %v5860_v38 = vrot.slane %v5743_v42, 4 }
 0x5bd   : > { %v5866_v27 = vrot.slane %v5744_v58, 4  ;;  %v5872_v7 = vrot.slane %v5745_v10, 4  ;;  %v5878_v45 = vrot.slane %v5746_v60, 4  ;;  %v5884_v40 = vrot.slane %v5747_v62, 4 }
 0x5be   : > { %v5855_v51 = vmax.f32 %v5742_v26, %v5854_v48  ;;  %v5890_v20 = vrot.slane %v5748_v28, 4  ;;  %v5896_v47 = vrot.slane %v5749_v49, 4  ;;  %v5861_v14 = vmax.f32 %v5743_v42, %v5860_v38 }
 0x5bf   : > { %v5867_v32 = vmax.f32 %v5744_v58, %v5866_v27  ;;  %v5873_v57 = vmax.f32 %v5745_v10, %v5872_v7  ;;  %v5879_v29 = vmax.f32 %v5746_v60, %v5878_v45  ;;  %v5885_v17 = vmax.f32 %v5747_v62, %v5884_v40 }
 0x5c0   : > { %v5856_v6 = vrot.slane %v5855_v51, 2  ;;  %v5891_v52 = vmax.f32 %v5748_v28, %v5890_v20  ;;  %v5897_v54 = vmax.f32 %v5749_v49, %v5896_v47  ;;  %v5862_v31 = vrot.slane %v5861_v14, 2 }
 0x5c1   : > { %v5868_v23 = vrot.slane %v5867_v32, 2  ;;  %v5874_v13 = vrot.slane %v5873_v57, 2  ;;  %v5880_v22 = vrot.slane %v5879_v29, 2  ;;  %v5886_v8 = vrot.slane %v5885_v17, 2 }
 0x5c2   : > { %v5857_v30 = vmax.f32 %v5855_v51, %v5856_v6  ;;  %v5892_v18 = vrot.slane %v5891_v52, 2  ;;  %v5898_v2 = vrot.slane %v5897_v54, 2  ;;  %v5863_v46 = vmax.f32 %v5861_v14, %v5862_v31 }
 0x5c3   : > { %v5869_v63 = vmax.f32 %v5867_v32, %v5868_v23  ;;  %v5875_v5 = vmax.f32 %v5873_v57, %v5874_v13  ;;  %v5881_v21 = vmax.f32 %v5879_v29, %v5880_v22  ;;  %v5887_v16 = vmax.f32 %v5885_v17, %v5886_v8  ;;  %v11220_v57 = vld [vmem:[#allocation11_spill] sm:$0xff]  ;;  %v11222_v13 = vld [vmem:[#allocation18_spill] sm:$0xff]  ;;  %v11223_v22 = vld [vmem:[#allocation113_spill] sm:$0xff] }
 0x5c4   : > { %v5858_v37 = vrot.slane %v5857_v30, 1  ;;  %v5893_v53 = vmax.f32 %v5891_v52, %v5892_v18  ;;  %v5899_v24 = vmax.f32 %v5897_v54, %v5898_v2  ;;  %v5864_v50 = vrot.slane %v5863_v46, 1  ;;  %v11221_v52 = vld [vmem:[#allocation53_spill] sm:$0xff] }
 0x5c5   : > { %v5870_v44 = vrot.slane %v5869_v63, 1  ;;  %v5876_v41 = vrot.slane %v5875_v5, 1  ;;  %v5882_v15 = vrot.slane %v5881_v21, 1  ;;  %v5907_v9 = vmax.f32 %v10301_v3, %v5906_v43 }
 0x5c6   : > { %v5919_v12 = vmax.f32 %v10307_v4, %v5918_v11  ;;  %v5859_v36 = vmax.f32 %v5857_v30, %v5858_v37  ;;  %v5888_v26 = vrot.slane %v5887_v16, 1  ;;  %v5865_v42 = vmax.f32 %v5863_v46, %v5864_v50 }
 0x5c7   : > { %v5871_v58 = vmax.f32 %v5869_v63, %v5870_v44  ;;  %v5877_v10 = vmax.f32 %v5875_v5, %v5876_v41  ;;  %v5894_v60 = vrot.slane %v5893_v53, 1  ;;  %v5883_v62 = vmax.f32 %v5881_v21, %v5882_v15 }
 0x5c8   : > { %v5889_v28 = vmax.f32 %v5887_v16, %v5888_v26  ;;  %v5900_v49 = vrot.slane %v5899_v24, 1  ;;  %v5426_v48 = vrot.slane %v5398_v56, %v11167_v55  ;;  %v5996_v38 = vsel %vm3893_vm3, %v5865_v42, %v5859_v36 }
 0x5c9   : > { %v5412_v3 = vrot.slane %v10253_v33, %v11167_v55  ;;  %v5925_v4 = vmax.f32 %v10312_v0, %v5924_v1  ;;  %v6003_v43 = vsel %vm3893_vm3, %v10314_v34, %v5907_v9  ;;  %v5997_v11 = vsel %vm3895_vm4, %v5871_v58, %v5996_v38 }
 0x5ca   : > { %v5550_v27 = vrot.slane %v5426_v48, %v7303_v39  ;;  %v6004_v7 = vsel %vm3895_vm4, %v5919_v12, %v6003_v43  ;;  %v5430_v45 = vcombine.high %v5426_v48, %v5426_v48  ;;  %v5998_v51 = vsel %vm3897_vm5, %v5877_v10, %v5997_v11 }
 0x5cb   : > { %v5546_v56 = vrot.slane %v5412_v3, %v7303_v39  ;;  %v6005_v40 = vsel %vm3897_vm5, %v5925_v4, %v6004_v7  ;;  %v5428_v20 = vcombine.high %v5412_v3, %v5412_v3  ;;  %v5895_v55 = vmax.f32 %v5893_v53, %v5894_v60 }
 0x5cc   : > { %v5999_v33 = vsel %vm3899_vm6, %v5883_v62, %v5998_v51  ;;  %v5620_v0 = vadd.f32 %v10239_v19, %v5550_v27  ;;  %v5558_v34 = vrot.slane %v5430_v45, %v7303_v39  ;;  %v5901_v1 = vmax.f32 %v5899_v24, %v5900_v49 }
 0x5cd   : > { %v5619_v47 = vadd.f32 %v5546_v56, %v10241_v25  ;;  %v5554_v14 = vrot.slane %v5428_v20, %v7303_v39  ;;  %v6000_v32 = vsel %vm3901_vm7, %v5889_v28, %v5999_v33 }
 0x5ce   : > { %v5652_v29 = vmul.f32 %v11220_v57, %v5620_v0  ;;  %v5622_v6 = vadd.f32 %v10243_v35, %v5558_v34  ;;  %v6001_v17 = vsel %vm3903_vm0, %v5895_v55, %v6000_v32 }
 0x5cf   : > { %v5651_v54 = vmul.f32 %v11221_v52, %v5619_v47  ;;  %v5621_v31 = vadd.f32 %v5554_v14, %v10245_v61  ;;  %v6002_v19 = vsel %vm3905_vm8, %v5901_v1, %v6001_v17 }
 0x5d0   : > { %v5691_v23 = vadd.f32 %v10049_v59, %v5652_v29  ;;  %v5654_v25 = vmul.f32 %v11222_v13, %v5622_v6  ;;  %6016 = vst [vmem:[%s10208_s25 + $0x10] sm:$0xff] %v6002_v19 }
 0x5d1   : > { %v5690_v39 = vadd.f32 %v10049_v59, %v5651_v54  ;;  %v5653_v30 = vmul.f32 %v11223_v22, %v5621_v31 }
 0x5d2   : > { %v5723_v8 = vmax.f32 %v5691_v23, 0.0  ;;  %v5693_v35 = vadd.f32 %v10049_v59, %v5654_v25 }
 0x5d3   : > { %v5722_v18 = vmax.f32 %v5690_v39, 0.0  ;;  %v5692_v2 = vadd.f32 %v10049_v59, %v5653_v30 }
 0x5d4   : > { %v5755_v46 = vmul.f32 %v11220_v57, %v5723_v8  ;;  %v5725_v61 = vmax.f32 %v5693_v35, 0.0 }
 0x5d5   : > { %v5754_v63 = vmul.f32 %v11221_v52, %v5722_v18  ;;  %v5724_v5 = vmax.f32 %v5692_v2, 0.0 }
 0x5d6   : > { %v5932_v21 = vrot.slane %v5755_v46, 4  ;;  %v5757_v37 = vmul.f32 %v11222_v13, %v5725_v61 }
 0x5d7   : > { %v5926_v16 = vrot.slane %v5754_v63, 4  ;;  %v5756_v53 = vmul.f32 %v11223_v22, %v5724_v5 }
 0x5d8   : > { %v5933_v24 = vmax.f32 %v5755_v46, %v5932_v21  ;;  %v5944_v50 = vrot.slane %v5757_v37, 4 }
 0x5d9   : > { %v5927_v44 = vmax.f32 %v5754_v63, %v5926_v16  ;;  %v5938_v41 = vrot.slane %v5756_v53, 4 }
 0x5da   : > { %v5934_v15 = vrot.slane %v5933_v24, 2  ;;  %v5945_v59 = vmax.f32 %v5757_v37, %v5944_v50 }
 0x5db   : > { %v5928_v9 = vrot.slane %v5927_v44, 2  ;;  %v5939_v12 = vmax.f32 %v5756_v53, %v5938_v41 }
 0x5dc   : > { %v5935_v36 = vmax.f32 %v5933_v24, %v5934_v15  ;;  %v5946_v26 = vrot.slane %v5945_v59, 2 }
 0x5dd   : > { %v5929_v42 = vmax.f32 %v5927_v44, %v5928_v9  ;;  %v5940_v58 = vrot.slane %v5939_v12, 2 }
 0x5de   : > { %v5936_v10 = vrot.slane %v5935_v36, 1  ;;  %v5947_v60 = vmax.f32 %v5945_v59, %v5946_v26 }
 0x5df   : > { %v5930_v62 = vrot.slane %v5929_v42, 1  ;;  %v5941_v28 = vmax.f32 %v5939_v12, %v5940_v58 }
 0x5e0   : > { %v5948_v49 = vrot.slane %v5947_v60, 1  ;;  %v5937_v3 = vmax.f32 %v5935_v36, %v5936_v10 }
 0x5e1   : > { %v5931_v48 = vmax.f32 %v5929_v42, %v5930_v62  ;;  %v5942_v38 = vrot.slane %v5941_v28, 1 }
 0x5e2   : > { %v5949_v11 = vmax.f32 %v5947_v60, %v5948_v49 }
 0x5e3   : > { %v6006_v4 = vsel %vm3899_vm6, %v5931_v48, %v6005_v40  ;;  %v5943_v43 = vmax.f32 %v5941_v28, %v5942_v38 }
 0x5e4   : > { %v6007_v27 = vsel %vm3901_vm7, %v5937_v3, %v6006_v4 }
 0x5e5   : > { %v6008_v7 = vsel %vm3903_vm0, %v5943_v43, %v6007_v27 }
 0x5e6   : > { %v6009_v45 = vsel %vm3905_vm8, %v5949_v11, %v6008_v7 }
 0x5e7   : > { %6017 = vst [vmem:[%s10208_s25 + $0x18] sm:$0xff] %v6009_v45 }
 0x5e8   : > { %6817 = shalt.err (!%p6814_p4)
}
 0x5e9   : > { %s6818_s13 = scalar_lea.hbm %s10374_s29, 512  ;;  %s6822_s24 = scalar_lea.hbm %s10435_s11, 1536 }
 0x5ea   : > { %p6819_p7 = scmp.ne.s32.totalorder %s10374_s29, %s6818_s13  ;;  %p6823_p10 = scmp.lt.u32.totalorder %s10374_s29, %s10435_s11 }
 0x5eb   : > { %p6824_p11 = scmp.lt.u32.totalorder %s6822_s24, %s6818_s13  ;;  %p6826_p13 = scmp.lt.u32.totalorder %s6818_s13, %s10374_s29 }
 0x5ec   : > { %p6820_p8 = pnand %p6819_p7, %p6975_p5 }
 0x5ed   : > { %p6825_p12 = por %p6824_p11, %p6823_p10 }
 0x5ee   : > { %p6821_p9 = pneg %p6820_p8 }
 0x5ef   : > { %p6827_p0 = por %p6826_p13, %p6825_p12 }
 0x5f1   : > { %p6828_p1 = pnand %p6827_p0, %p6821_p9 }
 0x5f3   : > { %6831 = shalt.err (!%p6828_p1)
}
 0x5f4   : > { %s6875_s30 = smov 128   ;;  %s6876_s15 = smov 8  }
 0x5f5   : > { %6508 = dma.vmem_to_hbm [thread:$0]  (%p6975_p5), %s10376_s16, 512, %s10374_s29, %s10383_s21, %s6875_s30, %s6875_s30, %s6876_s15  }
 0x5f6 PF: > { %p6514_p2 = scmp.ge.s32.totalorder %s6866_s20, 2  ;;  %s6047_s25 = sand.u32 1, %s6854_s17  }
 0x5f7   : > { %s6048_s13 = scalar_lea.sflag [#allocation3], %s6047_s25 }
 0x5f8   : > { %p6511_p3 = pnand %p6514_p2, %p6979_p6 }
 0x5fa   : > { %6849 = dma.done.wait (!%p6511_p3), %s6048_s13, 512  }
 0x5fb   : > { %6851 = vsyncadd (!%p6511_p3), %s6048_s13, 4294966784  ;;  %p21_p4 = scmp.ge.s32.totalorder %s6962_s23, 5   ;;  %s11224_s17 = smov %s6858_s18 }
 0x5fc   : > { %s11225_s18 = smov %s6862_s19  ;;  %s11226_s19 = smov %s6973_s26 }
 0x5fd   : > { %s11227_s20 = smov %s6962_s23  ;;  %23 = sbr.rel (!%p21_p4) target bundleno = 3 (0x3), region = 102 }
 0x604   :  { %6053 = vsyncpa [#allocation3], 1 }
 0x605   :  { %6055 = vsyncpa [#allocation3 + $0x1], 1 }

</bundles_post_ra>
